<compile_context>
chip_gen: v7x
topology: tpu7x:2x2x1
jax: 0.10.0
libtpu: 0.0.40
codegen_flags: <defaults>
</compile_context>

<pallas_src>
import numpy as np
import jax
import jax.numpy as jnp
from jax.experimental import pallas as pl
from jax.experimental.pallas import tpu as pltpu


B_PAD = 8        # graphs padded to one sublane group for the pooled accumulator
FIN_PAD = 8      # input feature dim (3) padded to one sublane group


def _round_up(x, m):
    return ((x + m - 1) // m) * m


def hardware_plan():
    """Generation-dependent tile targets + scoped-VMEM limit."""
    try:
        vmem_cap = pltpu.get_tpu_info().vmem_capacity_bytes
    except Exception:  # conservative fallback if the query is unavailable
        vmem_cap = None
    if vmem_cap is not None and vmem_cap <= 96 * 1024 * 1024:
        # v7x-class (64 MiB VMEM per TensorCore): smaller tiles, tighter cap.
        return dict(tm=256, tk=512, vmem_limit=48 * 1024 * 1024)
    if vmem_cap is not None:
        # v5e / v6e (128 MiB VMEM): big tiles to amortize the ~0.35 us/step
        # grid overhead and (v6e) fill the 256-deep MXU contraction.
        return dict(tm=512, tk=1024, vmem_limit=96 * 1024 * 1024)
    # Unknown chip: safe everywhere.
    return dict(tm=512, tk=512, vmem_limit=48 * 1024 * 1024)


def pick_tiles(num_nodes, tm_target, tk_target):
    """Pick (tm, tk, n_pad) with tm | n_pad and tk | n_pad, all 128-granular.

    Assumes tk_target is a multiple of tm_target (both multiples of 128).
    Note: on v7x an even row-tile count (n_pad // tm) load-balances the
    "parallel" axis across the two TensorCores for the non-final layers.
    """
    assert tm_target % 128 == 0 and tk_target % tm_target == 0
    n128 = _round_up(num_nodes, 128)
    if n128 <= tm_target:
        return n128, n128, n128                      # single whole-array tile
    tm = tm_target
    tk = tk_target if n128 >= tk_target else _round_up(n128, tm)
    n_pad = _round_up(n128, max(tm, tk))
    return tm, tk, n_pad


# ----------------------------------------------------------------------------
# Kernel 1: one GCNConv layer (not the last), block-sparse tiled
#   out = relu((A @ X) @ W + b)
# ----------------------------------------------------------------------------
def gcn_conv_kernel(tbl_ref, cnt_ref, a_ref, x_ref, w_ref, b_ref, out_ref, acc_ref):
    i = pl.program_id(0)          # node-row tile
    k = pl.program_id(1)          # position in this row tile's nonzero-block list

    @pl.when(k == 0)
    def _init():
        acc_ref[...] = jnp.zeros_like(acc_ref)

    # Skip all-zero A_hat blocks (block-diagonal structure). Keep this block
    # BEFORE the finalize so that when cnt[i] == num_blocks the last block is
    # accumulated before W/bias/ReLU are applied.
    @pl.when(k < cnt_ref[i])
    def _accumulate():
        acc_ref[...] += jnp.dot(a_ref[...], x_ref[...],
                                preferred_element_type=jnp.float32)

    @pl.when(k == pl.num_programs(1) - 1)
    def _finalize():
        h = jnp.dot(acc_ref[...].astype(jnp.bfloat16), w_ref[...],
                    preferred_element_type=jnp.float32) + b_ref[...]
        out_ref[...] = jnp.maximum(h, 0.0).astype(out_ref.dtype)
        # TODO(synk): train-mode dropout would go here via pltpu.prng_* (eval = identity).


def gcn_conv_layer(a_bf, x_bf, w_bf, b_f32, tbl, cnt, max_blocks, nnz_blocks,
                   *, tm, tk, vmem_limit):
    n = a_bf.shape[0]
    fin = x_bf.shape[1]
    hid = w_bf.shape[1]
    nrt = n // tm

    def a_map(i, k, tbl_ref, cnt_ref):
        return (i, tbl_ref[i * max_blocks + k])

    def x_map(i, k, tbl_ref, cnt_ref):
        return (tbl_ref[i * max_blocks + k], 0)

    grid_spec = pltpu.PrefetchScalarGridSpec(
        num_scalar_prefetch=2,
        grid=(nrt, max_blocks),
        in_specs=[
            pl.BlockSpec((tm, tk), a_map),
            pl.BlockSpec((tk, fin), x_map),
            pl.BlockSpec((fin, hid), lambda i, k, t, c: (0, 0)),
            pl.BlockSpec((1, hid), lambda i, k, t, c: (0, 0)),
        ],
        out_specs=pl.BlockSpec((tm, hid), lambda i, k, t, c: (i, 0)),
        scratch_shapes=[pltpu.VMEM((tm, fin), jnp.float32)],
    )
    cost = pl.CostEstimate(
        flops=2 * nnz_blocks * tm * tk * fin + 2 * nrt * tm * fin * hid,
        transcendentals=0,
        bytes_accessed=(nnz_blocks * (tm * tk + tk * fin) * 2
                        + nrt * tm * hid * 2 + fin * hid * 2 + hid * 4),
    )
    return pl.pallas_call(
        gcn_conv_kernel,
        out_shape=jax.ShapeDtypeStruct((n, hid), jnp.bfloat16),
        grid_spec=grid_spec,
        compiler_params=pltpu.CompilerParams(
            dimension_semantics=("parallel", "arbitrary"),
            vmem_limit_bytes=vmem_limit),
        cost_estimate=cost,
    )(tbl, cnt, a_bf, x_bf, w_bf, b_f32)


# ----------------------------------------------------------------------------
# Kernel 2: LAST GCNConv layer fused with global_mean_pool and the fc1/fc2 head.
# H of the last layer never touches HBM: while each (tm, hid) tile is resident
# the pooled segment sums / counts are accumulated into VMEM scratch; the tiny
# MLP head runs once at the very last grid step.
# ----------------------------------------------------------------------------
def gcn_conv_pool_head_kernel(tbl_ref, cnt_ref,
                              a_ref, x_ref, w_ref, b_ref, bid_ref,
                              fw1_ref, fb1_ref, fw2_ref, fb2_ref,
                              out_ref, acc_ref, pool_ref, pcnt_ref):
    i = pl.program_id(0)
    k = pl.program_id(1)
    last_i = pl.num_programs(0) - 1
    last_k = pl.num_programs(1) - 1

    @pl.when((i == 0) & (k == 0))
    def _init_pool():
        pool_ref[...] = jnp.zeros_like(pool_ref)
        pcnt_ref[...] = jnp.zeros_like(pcnt_ref)

    @pl.when(k == 0)
    def _init_acc():
        acc_ref[...] = jnp.zeros_like(acc_ref)

    @pl.when(k < cnt_ref[i])
    def _accumulate():
        acc_ref[...] += jnp.dot(a_ref[...], x_ref[...],
                                preferred_element_type=jnp.float32)

    @pl.when(k == last_k)
    def _row_finalize():
        h = jnp.dot(acc_ref[...].astype(jnp.bfloat16), w_ref[...],
                    preferred_element_type=jnp.float32) + b_ref[...]
        h = jnp.maximum(h, 0.0)
        # Membership mask from the [1, tm] graph-id tile. Padded nodes carry
        # id -1 and match nothing — this is what keeps their relu(bias) rows
        # out of the pooled means (documented correctness assumption).
        b_pad = pool_ref.shape[0]
        tm = h.shape[0]
        gid = jax.lax.broadcasted_iota(jnp.int32, (b_pad, tm), 0)
        member = (gid == bid_ref[...]).astype(jnp.float32)
        pool_ref[...] += jnp.dot(member.astype(jnp.bfloat16), h.astype(jnp.bfloat16),
                                 preferred_element_type=jnp.float32)
        pcnt_ref[...] += jnp.sum(member, axis=1, keepdims=True)

    @pl.when((i == last_i) & (k == last_k))
    def _head():
        g = pool_ref[...] / jnp.maximum(pcnt_ref[...], 1.0)      # global mean pool
        g = jnp.dot(g.astype(jnp.bfloat16), fw1_ref[...],
                    preferred_element_type=jnp.float32) + fb1_ref[...]
        g = jnp.maximum(g, 0.0)
        # fc2 has output width 1: VPU multiply + lane reduction instead of MXU.
        out_ref[...] = jnp.sum(g * fw2_ref[...], axis=-1, keepdims=True) + fb2_ref[...]


def gcn_conv_pool_head(a_bf, x_bf, w_bf, b_f32, bid_row, fw1_bf, fb1_f32,
                       fw2_row, fb2_f32, tbl, cnt, max_blocks, nnz_blocks,
                       *, tm, tk, b_pad, vmem_limit):
    n = a_bf.shape[0]
    fin = x_bf.shape[1]
    hid = w_bf.shape[1]
    dns = fw1_bf.shape[1]
    nrt = n // tm

    def a_map(i, k, tbl_ref, cnt_ref):
        return (i, tbl_ref[i * max_blocks + k])

    def x_map(i, k, tbl_ref, cnt_ref):
        return (tbl_ref[i * max_blocks + k], 0)

    grid_spec = pltpu.PrefetchScalarGridSpec(
        num_scalar_prefetch=2,
        grid=(nrt, max_blocks),
        in_specs=[
            pl.BlockSpec((tm, tk), a_map),
            pl.BlockSpec((tk, fin), x_map),
            pl.BlockSpec((fin, hid), lambda i, k, t, c: (0, 0)),
            pl.BlockSpec((1, hid), lambda i, k, t, c: (0, 0)),
            pl.BlockSpec((1, tm), lambda i, k, t, c: (0, i)),
            pl.BlockSpec((hid, dns), lambda i, k, t, c: (0, 0)),
            pl.BlockSpec((1, dns), lambda i, k, t, c: (0, 0)),
            pl.BlockSpec((1, dns), lambda i, k, t, c: (0, 0)),
            pl.BlockSpec((1, 1), lambda i, k, t, c: (0, 0)),
        ],
        out_specs=pl.BlockSpec((b_pad, 1), lambda i, k, t, c: (0, 0)),
        scratch_shapes=[pltpu.VMEM((tm, fin), jnp.float32),
                        pltpu.VMEM((b_pad, hid), jnp.float32),
                        pltpu.VMEM((b_pad, 1), jnp.float32)],
    )
    cost = pl.CostEstimate(
        flops=(2 * nnz_blocks * tm * tk * fin
               + 2 * nrt * (tm * fin * hid + b_pad * tm * hid)
               + 2 * b_pad * hid * dns),
        transcendentals=0,
        bytes_accessed=(nnz_blocks * (tm * tk + tk * fin) * 2
                        + fin * hid * 2 + hid * 4 + hid * dns * 2 + dns * 8
                        + nrt * tm * 4 + b_pad * 4),
    )
    return pl.pallas_call(
        gcn_conv_pool_head_kernel,
        out_shape=jax.ShapeDtypeStruct((b_pad, 1), jnp.float32),
        grid_spec=grid_spec,
        # Both axes "arbitrary": the pooled accumulator (VMEM scratch) must see
        # every row tile on one core, so the row axis cannot be megacore-split.
        compiler_params=pltpu.CompilerParams(
            dimension_semantics=("arbitrary", "arbitrary"),
            vmem_limit_bytes=vmem_limit),
        cost_estimate=cost,
    )(tbl, cnt, a_bf, x_bf, w_bf, b_f32, bid_row, fw1_bf, fb1_f32, fw2_row, fb2_f32)


def gcn_forward(a_bf, x_bf, bid_row, tbl, cnt, max_blocks, nnz_blocks, params,
                num_graphs, *, tm, tk, b_pad, vmem_limit):
    h = x_bf
    convs = params["convs"]
    for w_bf, b_f32 in convs[:-1]:
        h = gcn_conv_layer(a_bf, h, w_bf, b_f32, tbl, cnt, max_blocks, nnz_blocks,
                           tm=tm, tk=tk, vmem_limit=vmem_limit)
    w_last, b_last = convs[-1]
    out_pad = gcn_conv_pool_head(
        a_bf, h, w_last, b_last, bid_row,
        params["fc1_w"], params["fc1_b"], params["fc2_w_row"], params["fc2_b"],
        tbl, cnt, max_blocks, nnz_blocks,
        tm=tm, tk=tk, b_pad=b_pad, vmem_limit=vmem_limit)
    return out_pad[:num_graphs]


# ----------------------------------------------------------------------------
# Plain-JAX / numpy glue.
# ----------------------------------------------------------------------------
def build_gcn_adjacency(edge_index, num_nodes):
    """Dense D^-1/2 (A + I) D^-1/2 from a [2, E] edge_index (GCNConv norm)."""
    src, dst = edge_index[0], edge_index[1]
    adj = jnp.zeros((num_nodes, num_nodes), jnp.float32)
    adj = adj.at[dst, src].add(1.0)
    adj = adj + jnp.eye(num_nodes, dtype=jnp.float32)
    deg = adj.sum(axis=1)
    dinv = jnp.where(deg > 0, 1.0 / jnp.sqrt(deg), 0.0)
    return adj * dinv[:, None] * dinv[None, :]


def build_block_table(a_np, tm, tk):
    """Per row-tile list of nonzero A column blocks (block-sparse skip table)."""
    n = a_np.shape[0]
    nrt, nkt = n // tm, n // tk
    nz = np.abs(a_np.reshape(nrt, tm, nkt, tk)).sum(axis=(1, 3)) > 0
    cnt = nz.sum(axis=1).astype(np.int32)
    maxb = max(int(cnt.max()), 1)
    tbl = np.zeros((nrt, maxb), np.int32)
    for i in range(nrt):
        idx = np.nonzero(nz[i])[0].astype(np.int32)
        if idx.size == 0:
            idx = np.zeros((1,), np.int32)
        # Pad with the last valid block so padded steps reuse the resident tile
        # (DMA elided); the `k < cnt[i]` gate skips their accumulation.
        tbl[i] = np.concatenate(
            [idx, np.full(maxb - idx.size, idx[-1], np.int32)])[:maxb]
    nnz_blocks = max(int(cnt.sum()), 1)
    return jnp.asarray(tbl.reshape(-1)), jnp.asarray(cnt), maxb, nnz_blocks


def init_params(key, in_feats, in_feats_pad, hidden, dense):
    ks = jax.random.split(key, 8)
    s = 0.1
    w0 = s * jax.random.normal(ks[0], (in_feats, hidden), jnp.float32)
    w0 = jnp.zeros((in_feats_pad, hidden), jnp.float32).at[:in_feats, :].set(w0)
    return {
        "convs": [
            (w0.astype(jnp.bfloat16),
             s * jax.random.normal(ks[1], (1, hidden), jnp.float32)),
            ((s * jax.random.normal(ks[2], (hidden, hidden), jnp.float32)).astype(jnp.bfloat16),
             s * jax.random.normal(ks[3], (1, hidden), jnp.float32)),
        ],
        "fc1_w": (s * jax.random.normal(ks[4], (hidden, dense), jnp.float32)).astype(jnp.bfloat16),
        "fc1_b": s * jax.random.normal(ks[5], (1, dense), jnp.float32),
        "fc2_w_row": s * jax.random.normal(ks[6], (1, dense), jnp.float32),  # fc2 weight as a row
        "fc2_b": s * jax.random.normal(ks[7], (1, 1), jnp.float32),
    }


def gcn_ref(a_bf, x_bf, bid_row, params, num_graphs):
    """Pure-JAX reference mirroring the kernel's (A@X)@W order and precision."""
    h = x_bf
    for w_bf, b_f32 in params["convs"]:
        ax = jnp.dot(a_bf, h, preferred_element_type=jnp.float32)
        h = jnp.dot(ax.astype(jnp.bfloat16), w_bf,
                    preferred_element_type=jnp.float32) + b_f32
        h = jnp.maximum(h, 0.0).astype(jnp.bfloat16)
    member = (jnp.arange(num_graphs)[:, None] == bid_row).astype(jnp.float32)
    pooled = jnp.dot(member.astype(jnp.bfloat16), h,
                     preferred_element_type=jnp.float32)
    counts = jnp.maximum(member.sum(axis=1, keepdims=True), 1.0)
    g = pooled / counts
    g = jnp.maximum(jnp.dot(g.astype(jnp.bfloat16), params["fc1_w"],
                            preferred_element_type=jnp.float32) + params["fc1_b"], 0.0)
    return jnp.sum(g * params["fc2_w_row"], axis=-1, keepdims=True) + params["fc2_b"]


if __name__ == "__main__":
    # 3 graphs x 120 nodes (= 360 nodes), 3 input feats,
    # GCN(num_layers=2, hidden_channels=128, dense_units=128, ReLU).
    NUM_GRAPHS, NODES_PER_GRAPH = 3, 120
    NUM_NODES = NUM_GRAPHS * NODES_PER_GRAPH
    IN_FEATS, HIDDEN, DENSE = 3, 128, 128

    plan = hardware_plan()
    TM, TK, N_PAD = pick_tiles(NUM_NODES, plan["tm"], plan["tk"])
    VMEM_LIMIT = plan["vmem_limit"]

    key = jax.random.PRNGKey(0)
    k_x, k_p = jax.random.split(key)
    x = jax.random.normal(k_x, (NUM_NODES, IN_FEATS), jnp.float32)
    batch = np.repeat(np.arange(NUM_GRAPHS, dtype=np.int32), NODES_PER_GRAPH)

    # bidirectional ring within each graph
    src, dst = [], []
    for g in range(NUM_GRAPHS):
        base = g * NODES_PER_GRAPH
        for i in range(NODES_PER_GRAPH):
            u, v = base + i, base + (i + 1) % NODES_PER_GRAPH
            src += [u, v]
            dst += [v, u]
    edge_index = jnp.array([src, dst], jnp.int32)

    a_hat = build_gcn_adjacency(edge_index, NUM_NODES)

    # Pad & cast once (glue). Padded A rows/cols are zero; padded nodes carry
    # graph id -1, so pooling excludes their relu(bias) H rows.
    a_pad = jnp.zeros((N_PAD, N_PAD), jnp.float32).at[:NUM_NODES, :NUM_NODES].set(a_hat)
    x_pad = jnp.zeros((N_PAD, FIN_PAD), jnp.float32).at[:NUM_NODES, :IN_FEATS].set(x)
    bid_row = jnp.full((1, N_PAD), -1, jnp.int32).at[0, :NUM_NODES].set(jnp.asarray(batch))
    a_bf = a_pad.astype(jnp.bfloat16)
    x_bf = x_pad.astype(jnp.bfloat16)

    tbl, cnt, maxb, nnzb = build_block_table(np.asarray(a_pad), TM, TK)
    params = init_params(k_p, IN_FEATS, FIN_PAD, HIDDEN, DENSE)

    fwd = jax.jit(lambda a, xx, bid, t, c: gcn_forward(
        a, xx, bid, t, c, maxb, nnzb, params, NUM_GRAPHS,
        tm=TM, tk=TK, b_pad=B_PAD, vmem_limit=VMEM_LIMIT))
    out = jax.block_until_ready(fwd(a_bf, x_bf, bid_row, tbl, cnt))

    ref = gcn_ref(a_bf, x_bf, bid_row, params, NUM_GRAPHS)
    assert out.shape == (NUM_GRAPHS, 1), out.shape
    assert jnp.allclose(out, ref, atol=1e-2, rtol=1e-2), (out, ref)

    print("KERNEL_OK")
</pallas_src>

<mosaic_0001>
module attributes {stable_mosaic.version = 11 : i64} {
  func.func @gcn_conv_kernel(%arg0: i32, %arg1: i32, %arg2: memref<1xi32, #tpu.memory_space<smem>>, %arg3: memref<1xi32, #tpu.memory_space<smem>>, %arg4: memref<384x384xbf16, #tpu.memory_space<vmem>>, %arg5: memref<384x8xbf16, #tpu.memory_space<vmem>>, %arg6: memref<8x128xbf16, #tpu.memory_space<vmem>>, %arg7: memref<1x128xf32, #tpu.memory_space<vmem>>, %arg8: memref<384x128xbf16, #tpu.memory_space<vmem>>, %arg9: memref<384x8xf32, #tpu.memory_space<vmem>>) attributes {dimension_semantics = [#tpu.dimension_semantics<parallel>, #tpu.dimension_semantics<arbitrary>], iteration_bounds = array<i64: 1, 1>, scalar_prefetch = 2 : i64, scratch_operands = 1 : i64, tpu.core_type = #tpu.core_type<tc>, window_params = [{transform_indices = @transform_0, window_bounds = array<i64: 384, 384>}, {transform_indices = @transform_1, window_bounds = array<i64: 384, 8>}, {pipeline_mode = #tpu.pipeline_mode<synchronous>, transform_indices = @transform_2, window_bounds = array<i64: 8, 128>}, {pipeline_mode = #tpu.pipeline_mode<synchronous>, transform_indices = @transform_3, window_bounds = array<i64: 1, 128>}, {transform_indices = @transform_4, window_bounds = array<i64: 384, 128>}]} {
    %c0_i32 = arith.constant 0 : i32
    %0 = arith.cmpi eq, %arg1, %c0_i32 : i32
    %1 = arith.extui %0 : i1 to i32
    %c0_i32_0 = arith.constant 0 : i32
    %2 = arith.cmpi ne, %1, %c0_i32_0 : i32
    scf.if %2 {
      %cst = arith.constant 0.000000e+00 : f32
      %11 = vector.broadcast %cst : f32 to vector<384x8xf32>
      %c0 = arith.constant 0 : index
      %c0_4 = arith.constant 0 : index
      %12 = vector.load %arg9[%c0, %c0_4] : memref<384x8xf32, #tpu.memory_space<vmem>>, vector<384x8xf32>
      tpu.vector_store %arg9[%c0, %c0_4], %11 {strides = array<i32>} : memref<384x8xf32, #tpu.memory_space<vmem>>, vector<384x8xf32>,
    } else {
    }
    %3 = arith.index_cast %arg0 : i32 to index
    %4 = memref.load %arg3[%3] : memref<1xi32, #tpu.memory_space<smem>>
    %5 = arith.cmpi slt, %arg1, %4 : i32
    %6 = arith.extui %5 : i1 to i32
    %c0_i32_1 = arith.constant 0 : i32
    %7 = arith.cmpi ne, %6, %c0_i32_1 : i32
    scf.if %7 {
      %c0 = arith.constant 0 : index
      %c0_4 = arith.constant 0 : index
      %11 = vector.load %arg9[%c0, %c0_4] : memref<384x8xf32, #tpu.memory_space<vmem>>, vector<384x8xf32>
      %c0_5 = arith.constant 0 : index
      %c0_6 = arith.constant 0 : index
      %12 = vector.load %arg4[%c0_5, %c0_6] : memref<384x384xbf16, #tpu.memory_space<vmem>>, vector<384x384xbf16>
      %c0_7 = arith.constant 0 : index
      %c0_8 = arith.constant 0 : index
      %13 = vector.load %arg5[%c0_7, %c0_8] : memref<384x8xbf16, #tpu.memory_space<vmem>>, vector<384x8xbf16>
      %cst = arith.constant dense<0.000000e+00> : vector<384x8xf32>
      %14 = tpu.matmul %12, %13, %cst {dimension_numbers = #tpu.dot_dimension_numbers<[1], [0], [0], [1], [0, 0, 1, 1], [], []>} : vector<384x384xbf16>, vector<384x8xbf16>, vector<384x8xf32> -> vector<384x8xf32>
      %15 = arith.addf %11, %14 : vector<384x8xf32>
      %c0_9 = arith.constant 0 : index
      %c0_10 = arith.constant 0 : index
      %16 = vector.load %arg9[%c0_9, %c0_10] : memref<384x8xf32, #tpu.memory_space<vmem>>, vector<384x8xf32>
      tpu.vector_store %arg9[%c0_9, %c0_10], %15 {strides = array<i32>} : memref<384x8xf32, #tpu.memory_space<vmem>>, vector<384x8xf32>,
    } else {
    }
    %c0_i32_2 = arith.constant 0 : i32
    %8 = arith.cmpi eq, %arg1, %c0_i32_2 : i32
    %9 = arith.extui %8 : i1 to i32
    %c0_i32_3 = arith.constant 0 : i32
    %10 = arith.cmpi ne, %9, %c0_i32_3 : i32
    scf.if %10 {
      %c0 = arith.constant 0 : index
      %c0_4 = arith.constant 0 : index
      %11 = vector.load %arg9[%c0, %c0_4] : memref<384x8xf32, #tpu.memory_space<vmem>>, vector<384x8xf32>
      %12 = arith.truncf %11 : vector<384x8xf32> to vector<384x8xbf16>
      %c0_5 = arith.constant 0 : index
      %c0_6 = arith.constant 0 : index
      %13 = vector.load %arg6[%c0_5, %c0_6] : memref<8x128xbf16, #tpu.memory_space<vmem>>, vector<8x128xbf16>
      %cst = arith.constant dense<0.000000e+00> : vector<384x128xf32>
      %14 = tpu.matmul %12, %13, %cst {dimension_numbers = #tpu.dot_dimension_numbers<[1], [0], [0], [1], [0, 0, 1, 1], [], []>} : vector<384x8xbf16>, vector<8x128xbf16>, vector<384x128xf32> -> vector<384x128xf32>
      %c0_7 = arith.constant 0 : index
      %c0_8 = arith.constant 0 : index
      %15 = vector.load %arg7[%c0_7, %c0_8] : memref<1x128xf32, #tpu.memory_space<vmem>>, vector<1x128xf32>
      %16 = vector.broadcast %15 : vector<1x128xf32> to vector<384x128xf32>
      %17 = arith.addf %14, %16 : vector<384x128xf32>
      %cst_9 = arith.constant 0.000000e+00 : f32
      %18 = vector.broadcast %cst_9 : f32 to vector<384x128xf32>
      %19 = arith.maximumf %17, %18 : vector<384x128xf32>
      %20 = arith.truncf %19 : vector<384x128xf32> to vector<384x128xbf16>
      %c0_10 = arith.constant 0 : index
      %c0_11 = arith.constant 0 : index
      %21 = vector.load %arg8[%c0_10, %c0_11] : memref<384x128xbf16, #tpu.memory_space<vmem>>, vector<384x128xbf16>
      tpu.vector_store %arg8[%c0_10, %c0_11], %20 {strides = array<i32>} : memref<384x128xbf16, #tpu.memory_space<vmem>>, vector<384x128xbf16>,
    } else {
    }
    return
  }
  func.func @transform_0(%arg0: i32, %arg1: i32, %arg2: memref<1xi32, #tpu.memory_space<smem>>, %arg3: memref<1xi32, #tpu.memory_space<smem>>) -> (i32, i32) {
    %c1_i32 = arith.constant 1 : i32
    %0 = arith.muli %arg0, %c1_i32 : i32
    %1 = arith.addi %0, %arg1 : i32
    %2 = arith.index_cast %1 : i32 to index
    %3 = memref.load %arg2[%2] : memref<1xi32, #tpu.memory_space<smem>>
    %c0_i32 = arith.constant 0 : i32
    return %arg0, %3 : i32, i32
  }
  func.func @transform_1(%arg0: i32, %arg1: i32, %arg2: memref<1xi32, #tpu.memory_space<smem>>, %arg3: memref<1xi32, #tpu.memory_space<smem>>) -> (i32, i32) {
    %c1_i32 = arith.constant 1 : i32
    %0 = arith.muli %arg0, %c1_i32 : i32
    %1 = arith.addi %0, %arg1 : i32
    %2 = arith.index_cast %1 : i32 to index
    %3 = memref.load %arg2[%2] : memref<1xi32, #tpu.memory_space<smem>>
    %c0_i32 = arith.constant 0 : i32
    %c0_i32_0 = arith.constant 0 : i32
    return %3, %c0_i32 : i32, i32
  }
  func.func @transform_2(%arg0: i32, %arg1: i32, %arg2: memref<1xi32, #tpu.memory_space<smem>>, %arg3: memref<1xi32, #tpu.memory_space<smem>>) -> (i32, i32) {
    %c0_i32 = arith.constant 0 : i32
    %c0_i32_0 = arith.constant 0 : i32
    %c0_i32_1 = arith.constant 0 : i32
    return %c0_i32, %c0_i32_0 : i32, i32
  }
  func.func @transform_3(%arg0: i32, %arg1: i32, %arg2: memref<1xi32, #tpu.memory_space<smem>>, %arg3: memref<1xi32, #tpu.memory_space<smem>>) -> (i32, i32) {
    %c0_i32 = arith.constant 0 : i32
    %c0_i32_0 = arith.constant 0 : i32
    %c0_i32_1 = arith.constant 0 : i32
    return %c0_i32, %c0_i32_0 : i32, i32
  }
  func.func @transform_4(%arg0: i32, %arg1: i32, %arg2: memref<1xi32, #tpu.memory_space<smem>>, %arg3: memref<1xi32, #tpu.memory_space<smem>>) -> (i32, i32) {
    %c0_i32 = arith.constant 0 : i32
    %c0_i32_0 = arith.constant 0 : i32
    return %arg0, %c0_i32 : i32, i32
  }
}

module attributes {stable_mosaic.version = 11 : i64} {
  func.func @gcn_conv_pool_head_kernel(%arg0: i32, %arg1: i32, %arg2: memref<1xi32, #tpu.memory_space<smem>>, %arg3: memref<1xi32, #tpu.memory_space<smem>>, %arg4: memref<384x384xbf16, #tpu.memory_space<vmem>>, %arg5: memref<384x128xbf16, #tpu.memory_space<vmem>>, %arg6: memref<128x128xbf16, #tpu.memory_space<vmem>>, %arg7: memref<1x128xf32, #tpu.memory_space<vmem>>, %arg8: memref<1x384xi32, #tpu.memory_space<vmem>>, %arg9: memref<128x128xbf16, #tpu.memory_space<vmem>>, %arg10: memref<1x128xf32, #tpu.memory_space<vmem>>, %arg11: memref<1x128xf32, #tpu.memory_space<vmem>>, %arg12: memref<1x1xf32, #tpu.memory_space<vmem>>, %arg13: memref<8x1xf32, #tpu.memory_space<vmem>>, %arg14: memref<384x128xf32, #tpu.memory_space<vmem>>, %arg15: memref<8x128xf32, #tpu.memory_space<vmem>>, %arg16: memref<8x1xf32, #tpu.memory_space<vmem>>) attributes {dimension_semantics = [#tpu.dimension_semantics<arbitrary>, #tpu.dimension_semantics<arbitrary>], iteration_bounds = array<i64: 1, 1>, scalar_prefetch = 2 : i64, scratch_operands = 3 : i64, tpu.core_type = #tpu.core_type<tc>, window_params = [{transform_indices = @transform_0, window_bounds = array<i64: 384, 384>}, {transform_indices = @transform_1, window_bounds = array<i64: 384, 128>}, {pipeline_mode = #tpu.pipeline_mode<synchronous>, transform_indices = @transform_2, window_bounds = array<i64: 128, 128>}, {pipeline_mode = #tpu.pipeline_mode<synchronous>, transform_indices = @transform_3, window_bounds = array<i64: 1, 128>}, {transform_indices = @transform_4, window_bounds = array<i64: 1, 384>}, {pipeline_mode = #tpu.pipeline_mode<synchronous>, transform_indices = @transform_5, window_bounds = array<i64: 128, 128>}, {pipeline_mode = #tpu.pipeline_mode<synchronous>, transform_indices = @transform_6, window_bounds = array<i64: 1, 128>}, {pipeline_mode = #tpu.pipeline_mode<synchronous>, transform_indices = @transform_7, window_bounds = array<i64: 1, 128>}, {pipeline_mode = #tpu.pipeline_mode<synchronous>, transform_indices = @transform_8, window_bounds = array<i64: 1, 1>}, {pipeline_mode = #tpu.pipeline_mode<synchronous>, transform_indices = @transform_9, window_bounds = array<i64: 8, 1>}]} {
    %c0_i32 = arith.constant 0 : i32
    %0 = arith.cmpi eq, %arg0, %c0_i32 : i32
    %c0_i32_0 = arith.constant 0 : i32
    %1 = arith.cmpi eq, %arg1, %c0_i32_0 : i32
    %2 = arith.andi %0, %1 : i1
    %3 = arith.extui %2 : i1 to i32
    %c0_i32_1 = arith.constant 0 : i32
    %4 = arith.cmpi ne, %3, %c0_i32_1 : i32
    scf.if %4 {
      %cst = arith.constant 0.000000e+00 : f32
      %21 = vector.broadcast %cst : f32 to vector<8x128xf32>
      %c0 = arith.constant 0 : index
      %c0_10 = arith.constant 0 : index
      %22 = vector.load %arg15[%c0, %c0_10] : memref<8x128xf32, #tpu.memory_space<vmem>>, vector<8x128xf32>
      tpu.vector_store %arg15[%c0, %c0_10], %21 {strides = array<i32>} : memref<8x128xf32, #tpu.memory_space<vmem>>, vector<8x128xf32>,
      %cst_11 = arith.constant 0.000000e+00 : f32
      %23 = vector.broadcast %cst_11 : f32 to vector<8x1xf32>
      %c0_12 = arith.constant 0 : index
      %c0_13 = arith.constant 0 : index
      %24 = vector.load %arg16[%c0_12, %c0_13] : memref<8x1xf32, #tpu.memory_space<vmem>>, vector<8x1xf32>
      tpu.vector_store %arg16[%c0_12, %c0_13], %23 {strides = array<i32>} : memref<8x1xf32, #tpu.memory_space<vmem>>, vector<8x1xf32>,
    } else {
    }
    %c0_i32_2 = arith.constant 0 : i32
    %5 = arith.cmpi eq, %arg1, %c0_i32_2 : i32
    %6 = arith.extui %5 : i1 to i32
    %c0_i32_3 = arith.constant 0 : i32
    %7 = arith.cmpi ne, %6, %c0_i32_3 : i32
    scf.if %7 {
      %cst = arith.constant 0.000000e+00 : f32
      %21 = vector.broadcast %cst : f32 to vector<384x128xf32>
      %c0 = arith.constant 0 : index
      %c0_10 = arith.constant 0 : index
      %22 = vector.load %arg14[%c0, %c0_10] : memref<384x128xf32, #tpu.memory_space<vmem>>, vector<384x128xf32>
      tpu.vector_store %arg14[%c0, %c0_10], %21 {strides = array<i32>} : memref<384x128xf32, #tpu.memory_space<vmem>>, vector<384x128xf32>,
    } else {
    }
    %8 = arith.index_cast %arg0 : i32 to index
    %9 = memref.load %arg3[%8] : memref<1xi32, #tpu.memory_space<smem>>
    %10 = arith.cmpi slt, %arg1, %9 : i32
    %11 = arith.extui %10 : i1 to i32
    %c0_i32_4 = arith.constant 0 : i32
    %12 = arith.cmpi ne, %11, %c0_i32_4 : i32
    scf.if %12 {
      %c0 = arith.constant 0 : index
      %c0_10 = arith.constant 0 : index
      %21 = vector.load %arg14[%c0, %c0_10] : memref<384x128xf32, #tpu.memory_space<vmem>>, vector<384x128xf32>
      %c0_11 = arith.constant 0 : index
      %c0_12 = arith.constant 0 : index
      %22 = vector.load %arg4[%c0_11, %c0_12] : memref<384x384xbf16, #tpu.memory_space<vmem>>, vector<384x384xbf16>
      %c0_13 = arith.constant 0 : index
      %c0_14 = arith.constant 0 : index
      %23 = vector.load %arg5[%c0_13, %c0_14] : memref<384x128xbf16, #tpu.memory_space<vmem>>, vector<384x128xbf16>
      %cst = arith.constant dense<0.000000e+00> : vector<384x128xf32>
      %24 = tpu.matmul %22, %23, %cst {dimension_numbers = #tpu.dot_dimension_numbers<[1], [0], [0], [1], [0, 0, 1, 1], [], []>} : vector<384x384xbf16>, vector<384x128xbf16>, vector<384x128xf32> -> vector<384x128xf32>
      %25 = arith.addf %21, %24 : vector<384x128xf32>
      %c0_15 = arith.constant 0 : index
      %c0_16 = arith.constant 0 : index
      %26 = vector.load %arg14[%c0_15, %c0_16] : memref<384x128xf32, #tpu.memory_space<vmem>>, vector<384x128xf32>
      tpu.vector_store %arg14[%c0_15, %c0_16], %25 {strides = array<i32>} : memref<384x128xf32, #tpu.memory_space<vmem>>, vector<384x128xf32>,
    } else {
    }
    %c0_i32_5 = arith.constant 0 : i32
    %13 = arith.cmpi eq, %arg1, %c0_i32_5 : i32
    %14 = arith.extui %13 : i1 to i32
    %c0_i32_6 = arith.constant 0 : i32
    %15 = arith.cmpi ne, %14, %c0_i32_6 : i32
    scf.if %15 {
      %c0 = arith.constant 0 : index
      %c0_10 = arith.constant 0 : index
      %21 = vector.load %arg14[%c0, %c0_10] : memref<384x128xf32, #tpu.memory_space<vmem>>, vector<384x128xf32>
      %22 = arith.truncf %21 : vector<384x128xf32> to vector<384x128xbf16>
      %c0_11 = arith.constant 0 : index
      %c0_12 = arith.constant 0 : index
      %23 = vector.load %arg6[%c0_11, %c0_12] : memref<128x128xbf16, #tpu.memory_space<vmem>>, vector<128x128xbf16>
      %cst = arith.constant dense<0.000000e+00> : vector<384x128xf32>
      %24 = tpu.matmul %22, %23, %cst {dimension_numbers = #tpu.dot_dimension_numbers<[1], [0], [0], [1], [0, 0, 1, 1], [], []>} : vector<384x128xbf16>, vector<128x128xbf16>, vector<384x128xf32> -> vector<384x128xf32>
      %c0_13 = arith.constant 0 : index
      %c0_14 = arith.constant 0 : index
      %25 = vector.load %arg7[%c0_13, %c0_14] : memref<1x128xf32, #tpu.memory_space<vmem>>, vector<1x128xf32>
      %26 = vector.broadcast %25 : vector<1x128xf32> to vector<384x128xf32>
      %27 = arith.addf %24, %26 : vector<384x128xf32>
      %cst_15 = arith.constant 0.000000e+00 : f32
      %28 = vector.broadcast %cst_15 : f32 to vector<384x128xf32>
      %29 = arith.maximumf %27, %28 : vector<384x128xf32>
      %30 = tpu.iota {dimensions = array<i32: 0>} : vector<8x384xi32>
      %c0_16 = arith.constant 0 : index
      %c0_17 = arith.constant 0 : index
      %31 = vector.load %arg8[%c0_16, %c0_17] : memref<1x384xi32, #tpu.memory_space<vmem>>, vector<1x384xi32>
      %32 = vector.broadcast %31 : vector<1x384xi32> to vector<8x384xi32>
      %33 = arith.cmpi eq, %30, %32 : vector<8x384xi32>
      %34 = arith.extui %33 : vector<8x384xi1> to vector<8x384xi32>
      %35 = arith.sitofp %34 : vector<8x384xi32> to vector<8x384xf32>
      %c0_18 = arith.constant 0 : index
      %c0_19 = arith.constant 0 : index
      %36 = vector.load %arg15[%c0_18, %c0_19] : memref<8x128xf32, #tpu.memory_space<vmem>>, vector<8x128xf32>
      %37 = arith.truncf %35 : vector<8x384xf32> to vector<8x384xbf16>
      %38 = arith.truncf %29 : vector<384x128xf32> to vector<384x128xbf16>
      %cst_20 = arith.constant dense<0.000000e+00> : vector<8x128xf32>
      %39 = tpu.matmul %37, %38, %cst_20 {dimension_numbers = #tpu.dot_dimension_numbers<[1], [0], [0], [1], [0, 0, 1, 1], [], []>} : vector<8x384xbf16>, vector<384x128xbf16>, vector<8x128xf32> -> vector<8x128xf32>
      %40 = arith.addf %36, %39 : vector<8x128xf32>
      %c0_21 = arith.constant 0 : index
      %c0_22 = arith.constant 0 : index
      %41 = vector.load %arg15[%c0_21, %c0_22] : memref<8x128xf32, #tpu.memory_space<vmem>>, vector<8x128xf32>
      tpu.vector_store %arg15[%c0_21, %c0_22], %40 {strides = array<i32>} : memref<8x128xf32, #tpu.memory_space<vmem>>, vector<8x128xf32>,
      %c0_23 = arith.constant 0 : index
      %c0_24 = arith.constant 0 : index
      %42 = vector.load %arg16[%c0_23, %c0_24] : memref<8x1xf32, #tpu.memory_space<vmem>>, vector<8x1xf32>
      %cst_25 = arith.constant dense<0.000000e+00> : vector<8xf32>
      %43 = vector.multi_reduction <add>, %35, %cst_25 [1] : vector<8x384xf32> to vector<8xf32>
      %44 = vector.shape_cast %43 : vector<8xf32> to vector<8x1xf32>
      %45 = arith.addf %42, %44 : vector<8x1xf32>
      %c0_26 = arith.constant 0 : index
      %c0_27 = arith.constant 0 : index
      %46 = vector.load %arg16[%c0_26, %c0_27] : memref<8x1xf32, #tpu.memory_space<vmem>>, vector<8x1xf32>
      tpu.vector_store %arg16[%c0_26, %c0_27], %45 {strides = array<i32>} : memref<8x1xf32, #tpu.memory_space<vmem>>, vector<8x1xf32>,
    } else {
    }
    %c0_i32_7 = arith.constant 0 : i32
    %16 = arith.cmpi eq, %arg0, %c0_i32_7 : i32
    %c0_i32_8 = arith.constant 0 : i32
    %17 = arith.cmpi eq, %arg1, %c0_i32_8 : i32
    %18 = arith.andi %16, %17 : i1
    %19 = arith.extui %18 : i1 to i32
    %c0_i32_9 = arith.constant 0 : i32
    %20 = arith.cmpi ne, %19, %c0_i32_9 : i32
    scf.if %20 {
      %c0 = arith.constant 0 : index
      %c0_10 = arith.constant 0 : index
      %21 = vector.load %arg15[%c0, %c0_10] : memref<8x128xf32, #tpu.memory_space<vmem>>, vector<8x128xf32>
      %c0_11 = arith.constant 0 : index
      %c0_12 = arith.constant 0 : index
      %22 = vector.load %arg16[%c0_11, %c0_12] : memref<8x1xf32, #tpu.memory_space<vmem>>, vector<8x1xf32>
      %cst = arith.constant 1.000000e+00 : f32
      %23 = vector.broadcast %cst : f32 to vector<8x1xf32>
      %24 = arith.maximumf %22, %23 : vector<8x1xf32>
      %25 = vector.broadcast %24 : vector<8x1xf32> to vector<8x128xf32>
      %26 = arith.divf %21, %25 : vector<8x128xf32>
      %27 = arith.truncf %26 : vector<8x128xf32> to vector<8x128xbf16>
      %c0_13 = arith.constant 0 : index
      %c0_14 = arith.constant 0 : index
      %28 = vector.load %arg9[%c0_13, %c0_14] : memref<128x128xbf16, #tpu.memory_space<vmem>>, vector<128x128xbf16>
      %cst_15 = arith.constant dense<0.000000e+00> : vector<8x128xf32>
      %29 = tpu.matmul %27, %28, %cst_15 {dimension_numbers = #tpu.dot_dimension_numbers<[1], [0], [0], [1], [0, 0, 1, 1], [], []>} : vector<8x128xbf16>, vector<128x128xbf16>, vector<8x128xf32> -> vector<8x128xf32>
      %c0_16 = arith.constant 0 : index
      %c0_17 = arith.constant 0 : index
      %30 = vector.load %arg10[%c0_16, %c0_17] : memref<1x128xf32, #tpu.memory_space<vmem>>, vector<1x128xf32>
      %31 = vector.broadcast %30 : vector<1x128xf32> to vector<8x128xf32>
      %32 = arith.addf %29, %31 : vector<8x128xf32>
      %cst_18 = arith.constant 0.000000e+00 : f32
      %33 = vector.broadcast %cst_18 : f32 to vector<8x128xf32>
      %34 = arith.maximumf %32, %33 : vector<8x128xf32>
      %c0_19 = arith.constant 0 : index
      %c0_20 = arith.constant 0 : index
      %35 = vector.load %arg11[%c0_19, %c0_20] : memref<1x128xf32, #tpu.memory_space<vmem>>, vector<1x128xf32>
      %36 = vector.broadcast %35 : vector<1x128xf32> to vector<8x128xf32>
      %37 = arith.mulf %34, %36 : vector<8x128xf32>
      %cst_21 = arith.constant dense<0.000000e+00> : vector<8xf32>
      %38 = vector.multi_reduction <add>, %37, %cst_21 [1] : vector<8x128xf32> to vector<8xf32>
      %39 = vector.shape_cast %38 : vector<8xf32> to vector<8x1xf32>
      %c0_22 = arith.constant 0 : index
      %c0_23 = arith.constant 0 : index
      %40 = vector.load %arg12[%c0_22, %c0_23] : memref<1x1xf32, #tpu.memory_space<vmem>>, vector<1x1xf32>
      %41 = vector.broadcast %40 : vector<1x1xf32> to vector<8x1xf32>
      %42 = arith.addf %39, %41 : vector<8x1xf32>
      %c0_24 = arith.constant 0 : index
      %c0_25 = arith.constant 0 : index
      %43 = vector.load %arg13[%c0_24, %c0_25] : memref<8x1xf32, #tpu.memory_space<vmem>>, vector<8x1xf32>
      tpu.vector_store %arg13[%c0_24, %c0_25], %42 {strides = array<i32>} : memref<8x1xf32, #tpu.memory_space<vmem>>, vector<8x1xf32>,
    } else {
    }
    return
  }
  func.func @transform_0(%arg0: i32, %arg1: i32, %arg2: memref<1xi32, #tpu.memory_space<smem>>, %arg3: memref<1xi32, #tpu.memory_space<smem>>) -> (i32, i32) {
    %c1_i32 = arith.constant 1 : i32
    %0 = arith.muli %arg0, %c1_i32 : i32
    %1 = arith.addi %0, %arg1 : i32
    %2 = arith.index_cast %1 : i32 to index
    %3 = memref.load %arg2[%2] : memref<1xi32, #tpu.memory_space<smem>>
    %c0_i32 = arith.constant 0 : i32
    return %arg0, %3 : i32, i32
  }
  func.func @transform_1(%arg0: i32, %arg1: i32, %arg2: memref<1xi32, #tpu.memory_space<smem>>, %arg3: memref<1xi32, #tpu.memory_space<smem>>) -> (i32, i32) {
    %c1_i32 = arith.constant 1 : i32
    %0 = arith.muli %arg0, %c1_i32 : i32
    %1 = arith.addi %0, %arg1 : i32
    %2 = arith.index_cast %1 : i32 to index
    %3 = memref.load %arg2[%2] : memref<1xi32, #tpu.memory_space<smem>>
    %c0_i32 = arith.constant 0 : i32
    %c0_i32_0 = arith.constant 0 : i32
    return %3, %c0_i32 : i32, i32
  }
  func.func @transform_2(%arg0: i32, %arg1: i32, %arg2: memref<1xi32, #tpu.memory_space<smem>>, %arg3: memref<1xi32, #tpu.memory_space<smem>>) -> (i32, i32) {
    %c0_i32 = arith.constant 0 : i32
    %c0_i32_0 = arith.constant 0 : i32
    %c0_i32_1 = arith.constant 0 : i32
    return %c0_i32, %c0_i32_0 : i32, i32
  }
  func.func @transform_3(%arg0: i32, %arg1: i32, %arg2: memref<1xi32, #tpu.memory_space<smem>>, %arg3: memref<1xi32, #tpu.memory_space<smem>>) -> (i32, i32) {
    %c0_i32 = arith.constant 0 : i32
    %c0_i32_0 = arith.constant 0 : i32
    %c0_i32_1 = arith.constant 0 : i32
    return %c0_i32, %c0_i32_0 : i32, i32
  }
  func.func @transform_4(%arg0: i32, %arg1: i32, %arg2: memref<1xi32, #tpu.memory_space<smem>>, %arg3: memref<1xi32, #tpu.memory_space<smem>>) -> (i32, i32) {
    %c0_i32 = arith.constant 0 : i32
    %c0_i32_0 = arith.constant 0 : i32
    return %c0_i32, %arg0 : i32, i32
  }
  func.func @transform_5(%arg0: i32, %arg1: i32, %arg2: memref<1xi32, #tpu.memory_space<smem>>, %arg3: memref<1xi32, #tpu.memory_space<smem>>) -> (i32, i32) {
    %c0_i32 = arith.constant 0 : i32
    %c0_i32_0 = arith.constant 0 : i32
    %c0_i32_1 = arith.constant 0 : i32
    return %c0_i32, %c0_i32_0 : i32, i32
  }
  func.func @transform_6(%arg0: i32, %arg1: i32, %arg2: memref<1xi32, #tpu.memory_space<smem>>, %arg3: memref<1xi32, #tpu.memory_space<smem>>) -> (i32, i32) {
    %c0_i32 = arith.constant 0 : i32
    %c0_i32_0 = arith.constant 0 : i32
    %c0_i32_1 = arith.constant 0 : i32
    return %c0_i32, %c0_i32_0 : i32, i32
  }
  func.func @transform_7(%arg0: i32, %arg1: i32, %arg2: memref<1xi32, #tpu.memory_space<smem>>, %arg3: memref<1xi32, #tpu.memory_space<smem>>) -> (i32, i32) {
    %c0_i32 = arith.constant 0 : i32
    %c0_i32_0 = arith.constant 0 : i32
    %c0_i32_1 = arith.constant 0 : i32
    return %c0_i32, %c0_i32_0 : i32, i32
  }
  func.func @transform_8(%arg0: i32, %arg1: i32, %arg2: memref<1xi32, #tpu.memory_space<smem>>, %arg3: memref<1xi32, #tpu.memory_space<smem>>) -> (i32, i32) {
    %c0_i32 = arith.constant 0 : i32
    %c0_i32_0 = arith.constant 0 : i32
    %c0_i32_1 = arith.constant 0 : i32
    return %c0_i32, %c0_i32_0 : i32, i32
  }
  func.func @transform_9(%arg0: i32, %arg1: i32, %arg2: memref<1xi32, #tpu.memory_space<smem>>, %arg3: memref<1xi32, #tpu.memory_space<smem>>) -> (i32, i32) {
    %c0_i32 = arith.constant 0 : i32
    %c0_i32_0 = arith.constant 0 : i32
    %c0_i32_1 = arith.constant 0 : i32
    return %c0_i32, %c0_i32_0 : i32, i32
  }
}

</mosaic_0001>

<bundles_post_ra>
// kernel: _lambda_.3
= control target key start
LH: loop header
LB: loop body
LE: loop exit
PB: predicated region body
PF: predicated region fallthrough
CT: control target
= control target key end

     0   :  { %vm100_vm0 = vcmask 7168   ;;  %v2723_v1 = vmov 0.0   ;;  %s3253_s0 = inlined_call_operand.<no memory space> [shape: s32[1], index: 0, kind: input, shape index: {}]   ;;  %s3254_s1 = inlined_call_operand.<no memory space> [shape: s32[1], index: 1, kind: input, shape index: {}]   ;;  %s3255_s4 = inlined_call_operand.vmem [shape: bf16[128,128], index: 4, kind: input, shape index: {}]   ;;  %s3256_s5 = inlined_call_operand.vmem [shape: f32[1,128], index: 5, kind: input, shape index: {}]   ;;  %s3257_s6 = inlined_call_operand.vmem [shape: s32[1,384], index: 6, kind: input, shape index: {}]   ;;  %s3258_s7 = inlined_call_operand.vmem [shape: bf16[128,128], index: 7, kind: input, shape index: {}]   ;;  %s3259_s8 = inlined_call_operand.vmem [shape: f32[1,128], index: 8, kind: input, shape index: {}]   ;;  %s3260_s9 = inlined_call_operand.vmem [shape: f32[1,128], index: 9, kind: input, shape index: {}]   ;;  %s3261_s10 = inlined_call_operand.<no memory space> [shape: f32[1,1], index: 10, kind: input, shape index: {}]   ;;  %s3262_s11 = inlined_call_operand.vmem [shape: f32[8,1], index: 11, kind: output, shape index: {}]   ;;  %s3263_s2 = inlined_call_operand.vmem [shape: bf16[384,384], index: 2, kind: input, shape index: {}]   ;;  %s3264_s3 = inlined_call_operand.vmem [shape: bf16[384,128], index: 3, kind: input, shape index: {}]  }
   0x1   :  { %v18_v0 = vstv %s3261_s10  ;;  %s74_s21 = smul.u32 3, %s3253_s0  ;;  %99 = vst [vmem:[#allocation3] sm:$0xff] %v2723_v1  ;;  %105 = vst [vmem:[#allocation2] sm:$0xff] %v2723_v1  ;;  %p2149_p2 = scmp.le.s32.totalorder %s3254_s1, 0 }
   0x2   :  { %106 = vst [vmem:[#allocation2 + $0x8] sm:$0xff] %v2723_v1  ;;  %107 = vst [vmem:[#allocation2 + $0x10] sm:$0xff] %v2723_v1  ;;  %s84_s23 = smul.u32 48, %s3253_s0  ;;  %v2724_v3 = vmov (!%p2149_p2), 0  }
   0x3   :  { %108 = vst [vmem:[#allocation2 + $0x18] sm:$0xff] %v2723_v1  ;;  %109 = vst [vmem:[#allocation2 + $0x20] sm:$0xff] %v2723_v1  ;;  %p75_p0 = scmp.lt.s32.totalorder %s74_s21, 2  ;;  %878 = vmatprep.subr.bf16.mxu0 (!%p2149_p2), %v2724_v3  ;;  %2547 = vmatprep.subr.bf16.mxu1 (!%p2149_p2), %v2724_v3 }
   0x4   :  { %110 = vst [vmem:[#allocation2 + $0x28] sm:$0xff] %v2723_v1  ;;  %111 = vst [vmem:[#allocation2 + $0x30] sm:$0xff] %v2723_v1  ;;  %p85_p1 = scmp.lt.s32.totalorder %s84_s23, 47 }
   0x5   :  { %112 = vst [vmem:[#allocation2 + $0x38] sm:$0xff] %v2723_v1  ;;  %113 = vst [vmem:[#allocation2 + $0x40] sm:$0xff] %v2723_v1  ;;  %s3266_s21 = smov (!%p75_p0, %s74_s21), 2 }
   0x6   :  { %114 = vst [vmem:[#allocation2 + $0x48] sm:$0xff] %v2723_v1  ;;  %115 = vst [vmem:[#allocation2 + $0x50] sm:$0xff] %v2723_v1  ;;  %s3268_s23 = smov (!%p85_p1, %s84_s23), 47  ;;  %s2146_s28 = sshll.u32 %s3266_s21, 2 }
   0x7   :  { %116 = vst [vmem:[#allocation2 + $0x58] sm:$0xff] %v2723_v1  ;;  %117 = vst [vmem:[#allocation2 + $0x60] sm:$0xff] %v2723_v1  ;;  %s2859_s12 = scalar_lea.vmem %s3263_s2, %s2146_s28  ;;  %s2147_s13 = sshll.u32 %s3268_s23, 2 }
   0x8   :  { %118 = vst [vmem:[#allocation2 + $0x68] sm:$0xff] %v2723_v1  ;;  %119 = vst [vmem:[#allocation2 + $0x70] sm:$0xff] %v2723_v1  ;;  %s2864_s16 = scalar_lea.vmem %s3264_s3, %s2147_s13  ;;  %v2602_v8 = vld [vmem:[%s2859_s12 + $0x4] ss:$12 sps:$4 sm:$0xff] (!%p2149_p2)   ;;  %v2605_v10 = vld [vmem:[%s2859_s12 + $0x1b4] ss:$12 sps:$4 sm:$0xff] (!%p2149_p2)  }
   0x9   :  { %120 = vst [vmem:[#allocation2 + $0x78] sm:$0xff] %v2723_v1  ;;  %121 = vst [vmem:[#allocation2 + $0x80] sm:$0xff] %v2723_v1  ;;  %v2584_v2 = vld [vmem:[%s2864_s16] sm:$0xff] (!%p2149_p2)   ;;  %v2585_v4 = vld [vmem:[%s2864_s16 + $0x8] sm:$0xff] (!%p2149_p2)   ;;  %910 = vmatprep.mubr.bf16.mxu0 (!%p2149_p2), %v2602_v8  ;;  %1054 = vmatprep.mubr.bf16.mxu1 (!%p2149_p2), %v2605_v10 }
   0xa   :  { %122 = vst [vmem:[#allocation2 + $0x88] sm:$0xff] %v2723_v1  ;;  %123 = vst [vmem:[#allocation2 + $0x90] sm:$0xff] %v2723_v1  ;;  %879 = vmatpush1.bf16.msra.mxu0 (!%p2149_p2), %v2584_v2  ;;  %2563 = vmatpush1.bf16.msra.mxu1 (!%p2149_p2), %v2584_v2  ;;  %v2586_v5 = vld [vmem:[%s2864_s16 + $0x10] sm:$0xff] (!%p2149_p2)   ;;  %v2587_v6 = vld [vmem:[%s2864_s16 + $0x18] sm:$0xff] (!%p2149_p2)  }
   0xb   :  { %124 = vst [vmem:[#allocation2 + $0x98] sm:$0xff] %v2723_v1  ;;  %125 = vst [vmem:[#allocation2 + $0xa0] sm:$0xff] %v2723_v1  ;;  %880 = vmatprep.subr.bf16.mxu0 (!%p2149_p2), %v2724_v3  ;;  %2548 = vmatprep.subr.bf16.mxu1 (!%p2149_p2), %v2724_v3  ;;  %v2588_v7 = vld [vmem:[%s2864_s16 + $0x20] sm:$0xff] (!%p2149_p2)   ;;  %v2589_v9 = vld [vmem:[%s2864_s16 + $0x28] sm:$0xff] (!%p2149_p2)  }
   0xc   :  { %126 = vst [vmem:[#allocation2 + $0xa8] sm:$0xff] %v2723_v1  ;;  %127 = vst [vmem:[#allocation2 + $0xb0] sm:$0xff] %v2723_v1  ;;  %v2590_v11 = vld [vmem:[%s2864_s16 + $0x30] sm:$0xff] (!%p2149_p2)   ;;  %v2591_v12 = vld [vmem:[%s2864_s16 + $0x38] sm:$0xff] (!%p2149_p2)  }
   0xd   :  { %128 = vst [vmem:[#allocation2 + $0xb8] sm:$0xff] %v2723_v1  ;;  %129 = vst [vmem:[#allocation2 + $0xc0] sm:$0xff] %v2723_v1  ;;  %v2592_v13 = vld [vmem:[%s2864_s16 + $0x40] sm:$0xff] (!%p2149_p2)   ;;  %v2593_v14 = vld [vmem:[%s2864_s16 + $0x48] sm:$0xff] (!%p2149_p2)  }
   0xe   :  { %130 = vst [vmem:[#allocation2 + $0xc8] sm:$0xff] %v2723_v1  ;;  %131 = vst [vmem:[#allocation2 + $0xd0] sm:$0xff] %v2723_v1  ;;  %881 = vmatpush1.bf16.msra.mxu0 (!%p2149_p2), %v2585_v4  ;;  %2564 = vmatpush1.bf16.msra.mxu1 (!%p2149_p2), %v2585_v4  ;;  %v2594_v15 = vld [vmem:[%s2864_s16 + $0x50] sm:$0xff] (!%p2149_p2)   ;;  %v2595_v16 = vld [vmem:[%s2864_s16 + $0x58] sm:$0xff] (!%p2149_p2)  }
   0xf   :  { %132 = vst [vmem:[#allocation2 + $0xd8] sm:$0xff] %v2723_v1  ;;  %133 = vst [vmem:[#allocation2 + $0xe0] sm:$0xff] %v2723_v1  ;;  %882 = vmatprep.subr.bf16.mxu0 (!%p2149_p2), %v2724_v3  ;;  %2549 = vmatprep.subr.bf16.mxu1 (!%p2149_p2), %v2724_v3  ;;  %v2596_v17 = vld [vmem:[%s2864_s16 + $0x60] sm:$0xff] (!%p2149_p2)   ;;  %v2597_v18 = vld [vmem:[%s2864_s16 + $0x68] sm:$0xff] (!%p2149_p2)  }
  0x10   :  { %134 = vst [vmem:[#allocation2 + $0xe8] sm:$0xff] %v2723_v1  ;;  %135 = vst [vmem:[#allocation2 + $0xf0] sm:$0xff] %v2723_v1  ;;  %v2598_v19 = vld [vmem:[%s2864_s16 + $0x70] sm:$0xff] (!%p2149_p2)   ;;  %v2599_v20 = vld [vmem:[%s2864_s16 + $0x78] sm:$0xff] (!%p2149_p2)  }
  0x11   :  { %136 = vst [vmem:[#allocation2 + $0xf8] sm:$0xff] %v2723_v1  ;;  %137 = vst [vmem:[#allocation2 + $0x100] sm:$0xff] %v2723_v1  ;;  %v2600_v21 = vld [vmem:[%s2859_s12] ss:$12 sps:$4 sm:$0xff] (!%p2149_p2)   ;;  %v2603_v23 = vld [vmem:[%s2859_s12 + $0x1b0] ss:$12 sps:$4 sm:$0xff] (!%p2149_p2)  }
  0x12   :  { %138 = vst [vmem:[#allocation2 + $0x108] sm:$0xff] %v2723_v1  ;;  %139 = vst [vmem:[#allocation2 + $0x110] sm:$0xff] %v2723_v1  ;;  %883 = vmatpush1.bf16.msra.mxu0 (!%p2149_p2), %v2586_v5  ;;  %2565 = vmatpush1.bf16.msra.mxu1 (!%p2149_p2), %v2586_v5  ;;  %v2606_v22 = vld [vmem:[%s2864_s16 + $0x80] sm:$0xff] (!%p2149_p2)   ;;  %v2607_v24 = vld [vmem:[%s2864_s16 + $0x88] sm:$0xff] (!%p2149_p2)  }
  0x13   :  { %140 = vst [vmem:[#allocation2 + $0x118] sm:$0xff] %v2723_v1  ;;  %141 = vst [vmem:[#allocation2 + $0x120] sm:$0xff] %v2723_v1  ;;  %884 = vmatprep.subr.bf16.mxu0 (!%p2149_p2), %v2724_v3  ;;  %2550 = vmatprep.subr.bf16.mxu1 (!%p2149_p2), %v2724_v3  ;;  %v2608_v25 = vld [vmem:[%s2859_s12 + $0x1c] ss:$12 sps:$4 sm:$0xff] (!%p2149_p2)   ;;  %v2610_v26 = vld [vmem:[%s2859_s12 + $0x1cc] ss:$12 sps:$4 sm:$0xff] (!%p2149_p2)  }
  0x14   :  { %142 = vst [vmem:[#allocation2 + $0x128] sm:$0xff] %v2723_v1  ;;  %143 = vst [vmem:[#allocation2 + $0x130] sm:$0xff] %v2723_v1  ;;  %157 = sbr.rel (%p2149_p2) target bundleno = 429 (0x1ad), region = 49  ;;  %v2614_v27 = vld [vmem:[%s2864_s16 + $0x90] sm:$0xff] (!%p2149_p2)   ;;  %v2612_v28 = vld [vmem:[%s2859_s12 + $0x18] ss:$12 sps:$4 sm:$0xff] (!%p2149_p2)  }
  0x15   :  { %144 = vst [vmem:[#allocation2 + $0x138] sm:$0xff] %v2723_v1  ;;  %145 = vst [vmem:[#allocation2 + $0x140] sm:$0xff] %v2723_v1  ;;  %v2613_v29 = vld [vmem:[%s2859_s12 + $0x1c8] ss:$12 sps:$4 sm:$0xff] (!%p2149_p2)   ;;  %v2617_v31 = vld [vmem:[%s2859_s12 + $0x1e4] ss:$12 sps:$4 sm:$0xff] (!%p2149_p2)  }
  0x16   :  { %146 = vst [vmem:[#allocation2 + $0x148] sm:$0xff] %v2723_v1  ;;  %147 = vst [vmem:[#allocation2 + $0x150] sm:$0xff] %v2723_v1  ;;  %885 = vmatpush1.bf16.msra.mxu0 (!%p2149_p2), %v2587_v6  ;;  %2566 = vmatpush1.bf16.msra.mxu1 (!%p2149_p2), %v2587_v6  ;;  %v2615_v30 = vld [vmem:[%s2859_s12 + $0x34] ss:$12 sps:$4 sm:$0xff] (!%p2149_p2)   ;;  %v2621_v32 = vld [vmem:[%s2864_s16 + $0x98] sm:$0xff] (!%p2149_p2)  }
  0x17   :  { %148 = vst [vmem:[#allocation2 + $0x158] sm:$0xff] %v2723_v1  ;;  %149 = vst [vmem:[#allocation2 + $0x160] sm:$0xff] %v2723_v1  ;;  %886 = vmatprep.subr.bf16.mxu0 (!%p2149_p2), %v2724_v3  ;;  %2551 = vmatprep.subr.bf16.mxu1 (!%p2149_p2), %v2724_v3  ;;  %v2628_v33 = vld [vmem:[%s2864_s16 + $0xa0] sm:$0xff] (!%p2149_p2)   ;;  %v2619_v34 = vld [vmem:[%s2859_s12 + $0x30] ss:$12 sps:$4 sm:$0xff] (!%p2149_p2)  }
  0x18   :  { %150 = vst [vmem:[#allocation2 + $0x168] sm:$0xff] %v2723_v1  ;;  %151 = vst [vmem:[#allocation2 + $0x170] sm:$0xff] %v2723_v1  ;;  %v2620_v35 = vld [vmem:[%s2859_s12 + $0x1e0] ss:$12 sps:$4 sm:$0xff] (!%p2149_p2)   ;;  %v2624_v37 = vld [vmem:[%s2859_s12 + $0x1fc] ss:$12 sps:$4 sm:$0xff] (!%p2149_p2)  }
  0x19   :  { %152 = vst [vmem:[#allocation2 + $0x178] sm:$0xff] %v2723_v1  ;;  %101 = vst.msk [vmem:[#allocation4] sm:$0xff] %vm100_vm0, %v2723_v1  ;;  %v2622_v36 = vld [vmem:[%s2859_s12 + $0x4c] ss:$12 sps:$4 sm:$0xff] (!%p2149_p2)   ;;  %v2636_v39 = vld [vmem:[%s2864_s16 + $0xb0] sm:$0xff] (!%p2149_p2)  }
  0x1a   :  { %19 = vst [vmem:[#allocation8] sm:$0x1] %v18_v0  ;;  %887 = vmatpush1.bf16.msra.mxu0 (!%p2149_p2), %v2588_v7  ;;  %2567 = vmatpush1.bf16.msra.mxu1 (!%p2149_p2), %v2588_v7  ;;  %v2629_v38 = vld [vmem:[%s2864_s16 + $0xa8] sm:$0xff] (!%p2149_p2)   ;;  %v2627_v41 = vld [vmem:[%s2859_s12 + $0x1f8] ss:$12 sps:$4 sm:$0xff] (!%p2149_p2)  }
  0x1b   :  { %888 = vmatprep.subr.bf16.mxu0 %v2724_v3  ;;  %2552 = vmatprep.subr.bf16.mxu1 %v2724_v3  ;;  %v2626_v40 = vld [vmem:[%s2859_s12 + $0x48] ss:$12 sps:$4 sm:$0xff]   ;;  %v2630_v42 = vld [vmem:[%s2859_s12 + $0x64] ss:$12 sps:$4 sm:$0xff]   ;;  %v2643_v44 = vld [vmem:[%s2864_s16 + $0xb8] sm:$0xff]  }
  0x1c   :  { %v2632_v43 = vld [vmem:[%s2859_s12 + $0x214] ss:$12 sps:$4 sm:$0xff]   ;;  %v2635_v46 = vld [vmem:[%s2859_s12 + $0x210] ss:$12 sps:$4 sm:$0xff]   ;;  %v2639_v48 = vld [vmem:[%s2859_s12 + $0x22c] ss:$12 sps:$4 sm:$0xff]  }
  0x1d   :  { %v2634_v45 = vld [vmem:[%s2859_s12 + $0x60] ss:$12 sps:$4 sm:$0xff]   ;;  %v2637_v47 = vld [vmem:[%s2859_s12 + $0x7c] ss:$12 sps:$4 sm:$0xff]   ;;  %v2641_v49 = vld [vmem:[%s2859_s12 + $0x78] ss:$12 sps:$4 sm:$0xff]  }
  0x1e   :  { %889 = vmatpush1.bf16.msra.mxu0 %v2589_v9  ;;  %2568 = vmatpush1.bf16.msra.mxu1 %v2589_v9  ;;  %v2642_v50 = vld [vmem:[%s2859_s12 + $0x228] ss:$12 sps:$4 sm:$0xff]   ;;  %v2647_v53 = vld [vmem:[%s2859_s12 + $0x90] ss:$12 sps:$4 sm:$0xff]   ;;  %v2648_v54 = vld [vmem:[%s2859_s12 + $0x20] ss:$12 sps:$4 sm:$0xff]  }
  0x1f   :  { %890 = vmatprep.subr.bf16.mxu0 %v2724_v3  ;;  %2553 = vmatprep.subr.bf16.mxu1 %v2724_v3  ;;  %v2644_v51 = vld [vmem:[%s2859_s12 + $0x94] ss:$12 sps:$4 sm:$0xff]   ;;  %v2649_v55 = vld [vmem:[%s2859_s12 + $0xac] ss:$12 sps:$4 sm:$0xff]   ;;  %v2653_v58 = vld [vmem:[%s2859_s12 + $0x50] ss:$12 sps:$4 sm:$0xff]  }
  0x20   :  { %v2646_v52 = vld [vmem:[%s2859_s12 + $0x8] ss:$12 sps:$4 sm:$0xff]   ;;  %v2651_v56 = vld [vmem:[%s2859_s12 + $0x38] ss:$12 sps:$4 sm:$0xff]   ;;  %v2657_v61 = vld [vmem:[%s2859_s12 + $0xc0] ss:$12 sps:$4 sm:$0xff]  }
  0x21   :  { %v2652_v57 = vld [vmem:[%s2859_s12 + $0xa8] ss:$12 sps:$4 sm:$0xff]   ;;  %v2654_v59 = vld [vmem:[%s2859_s12 + $0xc4] ss:$12 sps:$4 sm:$0xff]   ;;  %v2658_v62 = vld [vmem:[%s2859_s12 + $0x80] ss:$12 sps:$4 sm:$0xff]  }
  0x22   :  { %891 = vmatpush1.bf16.msra.mxu0 %v2590_v11  ;;  %2569 = vmatpush1.bf16.msra.mxu1 %v2590_v11  ;;  %v2656_v60 = vld [vmem:[%s2859_s12 + $0x68] ss:$12 sps:$4 sm:$0xff]   ;;  %v2661_v0 = vld [vmem:[%s2859_s12 + $0x98] ss:$12 sps:$4 sm:$0xff]   ;;  %v2667_v6 = vld [vmem:[%s2859_s12 + $0xf0] ss:$12 sps:$4 sm:$0xff]  }
  0x23   :  { %892 = vmatprep.subr.bf16.mxu0 %v2724_v3  ;;  %2554 = vmatprep.subr.bf16.mxu1 %v2724_v3  ;;  %v2659_v63 = vld [vmem:[%s2859_s12 + $0xdc] ss:$12 sps:$4 sm:$0xff]   ;;  %v2662_v2 = vld [vmem:[%s2859_s12 + $0xd8] ss:$12 sps:$4 sm:$0xff]   ;;  %v2664_v4 = vld [vmem:[%s2859_s12 + $0xf4] ss:$12 sps:$4 sm:$0xff]  }
  0x24   :  { %v2666_v5 = vld [vmem:[%s2859_s12 + $0xc8] ss:$12 sps:$4 sm:$0xff]   ;;  %v2668_v7 = vld [vmem:[%s2859_s12 + $0xe0] ss:$12 sps:$4 sm:$0xff]   ;;  %v2671_v9 = vld [vmem:[%s2859_s12 + $0xf8] ss:$12 sps:$4 sm:$0xff]  }
  0x25   :  { %v2669_v8 = vld [vmem:[%s2859_s12 + $0x10c] ss:$12 sps:$4 sm:$0xff]   ;;  %v2672_v10 = vld [vmem:[%s2859_s12 + $0x108] ss:$12 sps:$4 sm:$0xff]   ;;  %v2673_v11 = vld [vmem:[%s2859_s12 + $0x110] ss:$12 sps:$4 sm:$0xff]  }
  0x26   :  { %893 = vmatpush1.bf16.msra.mxu0 %v2591_v12  ;;  %2570 = vmatpush1.bf16.msra.mxu1 %v2591_v12  ;;  %v2674_v12 = vld [vmem:[%s2859_s12 + $0x124] ss:$12 sps:$4 sm:$0xff]  }
  0x27   :  { %894 = vmatprep.subr.bf16.mxu0 %v2724_v3  ;;  %2555 = vmatprep.subr.bf16.mxu1 %v2724_v3 }
  0x2a   :  { %895 = vmatpush1.bf16.msra.mxu0 %v2592_v13  ;;  %2571 = vmatpush1.bf16.msra.mxu1 %v2592_v13  ;;  %v2676_v13 = vld [vmem:[%s2859_s12 + $0x128] ss:$12 sps:$4 sm:$0xff]  }
  0x2b   :  { %896 = vmatprep.subr.bf16.mxu0 %v2724_v3  ;;  %2556 = vmatprep.subr.bf16.mxu1 %v2724_v3 }
  0x2e   :  { %897 = vmatpush1.bf16.msra.mxu0 %v2593_v14  ;;  %2572 = vmatpush1.bf16.msra.mxu1 %v2593_v14  ;;  %v2677_v14 = vld [vmem:[%s2859_s12 + $0x120] ss:$12 sps:$4 sm:$0xff]  }
  0x2f   :  { %898 = vmatprep.subr.bf16.mxu0 %v2724_v3  ;;  %2557 = vmatprep.subr.bf16.mxu1 %v2724_v3 }
  0x32   :  { %899 = vmatpush1.bf16.msra.mxu0 %v2594_v15  ;;  %2573 = vmatpush1.bf16.msra.mxu1 %v2594_v15  ;;  %v2678_v15 = vld [vmem:[%s2859_s12 + $0x140] ss:$12 sps:$4 sm:$0xff]  }
  0x33   :  { %900 = vmatprep.subr.bf16.mxu0 %v2724_v3  ;;  %2558 = vmatprep.subr.bf16.mxu1 %v2724_v3 }
  0x36   :  { %901 = vmatpush1.bf16.msra.mxu0 %v2595_v16  ;;  %2574 = vmatpush1.bf16.msra.mxu1 %v2595_v16  ;;  %v2679_v16 = vld [vmem:[%s2859_s12 + $0x13c] ss:$12 sps:$4 sm:$0xff]  }
  0x37   :  { %902 = vmatprep.subr.bf16.mxu0 %v2724_v3  ;;  %2559 = vmatprep.subr.bf16.mxu1 %v2724_v3 }
  0x3a   :  { %903 = vmatpush1.bf16.msra.mxu0 %v2596_v17  ;;  %2575 = vmatpush1.bf16.msra.mxu1 %v2596_v17  ;;  %v2681_v17 = vld [vmem:[%s2859_s12 + $0x158] ss:$12 sps:$4 sm:$0xff]  }
  0x3b   :  { %904 = vmatprep.subr.bf16.mxu0 %v2724_v3  ;;  %2560 = vmatprep.subr.bf16.mxu1 %v2724_v3 }
  0x3e   :  { %905 = vmatpush1.bf16.msra.mxu0 %v2597_v18  ;;  %2576 = vmatpush1.bf16.msra.mxu1 %v2597_v18  ;;  %v2682_v18 = vld [vmem:[%s2859_s12 + $0x138] ss:$12 sps:$4 sm:$0xff]  }
  0x3f   :  { %906 = vmatprep.subr.bf16.mxu0 %v2724_v3  ;;  %2561 = vmatprep.subr.bf16.mxu1 %v2724_v3 }
  0x42   :  { %907 = vmatpush1.bf16.msra.mxu0 %v2598_v19  ;;  %2577 = vmatpush1.bf16.msra.mxu1 %v2598_v19  ;;  %v2683_v19 = vld [vmem:[%s2859_s12 + $0x170] ss:$12 sps:$4 sm:$0xff]  }
  0x43   :  { %908 = vmatprep.subr.bf16.mxu0 %v2724_v3  ;;  %2562 = vmatprep.subr.bf16.mxu1 %v2724_v3  ;;  %v2663_v3 = vld [vmem:[%s2859_s12 + $0xb0] ss:$12 sps:$4 sm:$0xff]  }
  0x46   :  { %909 = vmatpush1.bf16.msra.mxu0 %v2599_v20  ;;  %2578 = vmatpush1.bf16.msra.mxu1 %v2599_v20  ;;  %v2684_v20 = vld [vmem:[%s2859_s12 + $0x154] ss:$12 sps:$4 sm:$0xff]  }
  0x47   :  { %2379 = vmatprep.subr.bf16.mxu1 %v2606_v22 }
  0x49   :  { %911 = vmatmul.mubr.bf16.vlgmr.msra.gmra.mrb[0].mxu0 %v2600_v21  ;;  %1055 = vmatmul.mubr.bf16.vlgmr.msra.gmra.mrb[0].mxu1 %v2603_v23  ;;  %v2686_v21 = vld [vmem:[%s2859_s12 + $0x188] ss:$12 sps:$4 sm:$0xff]   ;;  %v2688_v23 = vld [vmem:[%s2859_s12 + $0x1a0] ss:$12 sps:$4 sm:$0xff]  }
  0x4a   :  { %2380 = vmatpush3.bf16.msra.mxu1 %v2606_v22  ;;  %918 = vmatprep.mubr.bf16.mxu0 %v2608_v25  ;;  %v2687_v22 = vld [vmem:[%s2859_s12 + $0x150] ss:$12 sps:$4 sm:$0xff]   ;;  %v2691_v25 = vld [vmem:[%s2859_s12 + $0x1b8] ss:$12 sps:$4 sm:$0xff]  }
  0x4b   :  { %2381 = vmatprep.subr.bf16.mxu1 %v2607_v24  ;;  %1062 = vmatprep.mubr.bf16.mxu1 %v2610_v26  ;;  %v2692_v26 = vld [vmem:[%s2859_s12 + $0x168] ss:$12 sps:$4 sm:$0xff]  }
  0x4e   :  { %2382 = vmatpush3.bf16.msra.mxu1 %v2607_v24  ;;  %v2689_v24 = vld [vmem:[%s2859_s12 + $0x16c] ss:$12 sps:$4 sm:$0xff]  }
  0x4f   :  { %2383 = vmatprep.subr.bf16.mxu1 %v2614_v27 }
  0x51   :  { %919 = vmatmul.mubr.bf16.gmra.mrb[4].mxu0 %v2612_v28  ;;  %1063 = vmatmul.mubr.bf16.gmra.mrb[4].mxu1 %v2613_v29  ;;  %v2694_v28 = vld [vmem:[%s2859_s12 + $0x184] ss:$12 sps:$4 sm:$0xff]   ;;  %v2696_v29 = vld [vmem:[%s2859_s12 + $0x1e8] ss:$12 sps:$4 sm:$0xff]  }
  0x52   :  { %2384 = vmatpush3.bf16.msra.mxu1 %v2614_v27  ;;  %926 = vmatprep.mubr.bf16.mxu0 %v2615_v30  ;;  %v2693_v27 = vld [vmem:[%s2859_s12 + $0x1d0] ss:$12 sps:$4 sm:$0xff]   ;;  %v2697_v30 = vld [vmem:[%s2859_s12 + $0x180] ss:$12 sps:$4 sm:$0xff]  }
  0x53   :  { %1070 = vmatprep.mubr.bf16.mxu1 %v2617_v31  ;;  %2385 = vmatprep.subr.bf16.mxu1 %v2621_v32  ;;  %v2698_v31 = vld [vmem:[%s2859_s12 + $0x200] ss:$12 sps:$4 sm:$0xff]  }
  0x56   :  { %2386 = vmatpush3.bf16.msra.mxu1 %v2621_v32  ;;  %v2699_v32 = vld [vmem:[%s2859_s12 + $0x19c] ss:$12 sps:$4 sm:$0xff]  }
  0x57   :  { %2387 = vmatprep.subr.bf16.mxu1 %v2628_v33 }
  0x59   :  { %927 = vmatmul.mubr.bf16.gmra.mrb[8].mxu0 %v2619_v34  ;;  %1071 = vmatmul.mubr.bf16.gmra.mrb[8].mxu1 %v2620_v35  ;;  %v2702_v34 = vld [vmem:[%s2859_s12 + $0x198] ss:$12 sps:$4 sm:$0xff]   ;;  %v2703_v35 = vld [vmem:[%s2859_s12 + $0x230] ss:$12 sps:$4 sm:$0xff]  }
  0x5a   :  { %934 = vmatprep.mubr.bf16.mxu0 %v2622_v36  ;;  %1078 = vmatprep.mubr.bf16.mxu1 %v2624_v37 }
  0x5b   :  { %2388 = vmatpush3.bf16.msra.mxu1 %v2628_v33  ;;  %v2701_v33 = vld [vmem:[%s2859_s12 + $0x218] ss:$12 sps:$4 sm:$0xff]  }
  0x5c   :  { %2389 = vmatprep.subr.bf16.mxu1 %v2629_v38 }
  0x5f   :  { %2390 = vmatpush3.bf16.msra.mxu1 %v2629_v38 }
  0x60   :  { %2391 = vmatprep.subr.bf16.mxu1 %v2636_v39 }
  0x61   :  { %935 = vmatmul.mubr.bf16.gmra.mrb[12].mxu0 %v2626_v40  ;;  %1079 = vmatmul.mubr.bf16.gmra.mrb[12].mxu1 %v2627_v41 }
  0x62   :  { %942 = vmatprep.mubr.bf16.mxu0 %v2630_v42  ;;  %1086 = vmatprep.mubr.bf16.mxu1 %v2632_v43 }
  0x63   :  { %2392 = vmatpush3.bf16.msra.mxu1 %v2636_v39 }
  0x64   :  { %2393 = vmatprep.subr.bf16.mxu1 %v2643_v44 }
  0x67   :  { %2394 = vmatpush3.bf16.msra.mxu1 %v2643_v44 }
  0x69   :  { %943 = vmatmul.mubr.bf16.gmra.mrb[16].mxu0 %v2634_v45  ;;  %1087 = vmatmul.mubr.bf16.gmra.mrb[16].mxu1 %v2635_v46 }
  0x6a   :  { %950 = vmatprep.mubr.bf16.mxu0 %v2637_v47  ;;  %1094 = vmatprep.mubr.bf16.mxu1 %v2639_v48 }
  0x71   :  { %951 = vmatmul.mubr.bf16.gmra.mrb[20].mxu0 %v2641_v49  ;;  %1095 = vmatmul.mubr.bf16.gmra.mrb[20].mxu1 %v2642_v50 }
  0x72   :  { %958 = vmatprep.mubr.bf16.mxu0 %v2644_v51  ;;  %2395 = vmatprep.mubr.bf16.mxu1 %v2646_v52 }
  0x79   :  { %959 = vmatmul.mubr.bf16.gmra.mrb[24].mxu0 %v2647_v53  ;;  %2396 = vmatmul.mubr.bf16.vlgmr.msra.gmra.mrb[24].mxu1 %v2648_v54 }
  0x7a   :  { %966 = vmatprep.mubr.bf16.mxu0 %v2649_v55  ;;  %2399 = vmatprep.mubr.bf16.mxu1 %v2651_v56 }
  0x81   :  { %967 = vmatmul.mubr.bf16.gmra.mrb[28].mxu0 %v2652_v57  ;;  %2400 = vmatmul.mubr.bf16.gmra.mrb[28].mxu1 %v2653_v58 }
  0x82   :  { %974 = vmatprep.mubr.bf16.mxu0 %v2654_v59  ;;  %2403 = vmatprep.mubr.bf16.mxu1 %v2656_v60 }
  0x89   :  { %975 = vmatmul.mubr.bf16.gmra.mrb[32].mxu0 %v2657_v61  ;;  %2404 = vmatmul.mubr.bf16.gmra.mrb[32].mxu1 %v2658_v62 }
  0x8a   :  { %982 = vmatprep.mubr.bf16.mxu0 %v2659_v63  ;;  %2407 = vmatprep.mubr.bf16.mxu1 %v2661_v0 }
  0x91   :  { %983 = vmatmul.mubr.bf16.gmra.mrb[36].mxu0 %v2662_v2  ;;  %2408 = vmatmul.mubr.bf16.gmra.mrb[36].mxu1 %v2663_v3 }
  0x92   :  { %990 = vmatprep.mubr.bf16.mxu0 %v2664_v4  ;;  %2411 = vmatprep.mubr.bf16.mxu1 %v2666_v5 }
  0x99   :  { %991 = vmatmul.mubr.bf16.gmra.mrb[40].mxu0 %v2667_v6  ;;  %2412 = vmatmul.mubr.bf16.gmra.mrb[40].mxu1 %v2668_v7 }
  0x9a   :  { %998 = vmatprep.mubr.bf16.mxu0 %v2669_v8  ;;  %2415 = vmatprep.mubr.bf16.mxu1 %v2671_v9 }
  0xa1   :  { %999 = vmatmul.mubr.bf16.gmra.mrb[44].mxu0 %v2672_v10  ;;  %2416 = vmatmul.mubr.bf16.gmra.mrb[44].mxu1 %v2673_v11 }
  0xa2   :  { %1006 = vmatprep.mubr.bf16.mxu0 %v2674_v12  ;;  %2419 = vmatprep.mubr.bf16.mxu1 %v2676_v13 }
  0xa9   :  { %1007 = vmatmul.mubr.bf16.gmra.mrb[48].mxu0 %v2677_v14  ;;  %2420 = vmatmul.mubr.bf16.gmra.mrb[48].mxu1 %v2678_v15 }
  0xaa   :  { %1014 = vmatprep.mubr.bf16.mxu0 %v2679_v16  ;;  %2423 = vmatprep.mubr.bf16.mxu1 %v2681_v17 }
  0xb1   :  { %1015 = vmatmul.mubr.bf16.gmra.mrb[52].mxu0 %v2682_v18  ;;  %2424 = vmatmul.mubr.bf16.gmra.mrb[52].mxu1 %v2683_v19 }
  0xb2   :  { %1022 = vmatprep.mubr.bf16.mxu0 %v2684_v20  ;;  %2427 = vmatprep.mubr.bf16.mxu1 %v2686_v21 }
  0xb9   :  { %1023 = vmatmul.mubr.bf16.gmra.mrb[56].mxu0 %v2687_v22  ;;  %2428 = vmatmul.mubr.bf16.gmra.mrb[56].mxu1 %v2688_v23  ;;  %v160_v22 = vld [vmem:[#allocation2 + $0x10] sm:$0xff] }
  0xba   :  { %1030 = vmatprep.mubr.bf16.mxu0 %v2689_v24  ;;  %2431 = vmatprep.mubr.bf16.mxu1 %v2691_v25 }
  0xc1   :  { %1031 = vmatmul.mubr.bf16.gmra.mrb[60].mxu0 %v2692_v26  ;;  %2432 = vmatmul.mubr.bf16.gmra.mrb[60].mxu1 %v2693_v27  ;;  %v158_v26 = vld [vmem:[#allocation2] sm:$0xff] }
  0xc2   :  { %1038 = vmatprep.mubr.bf16.mxu0 %v2694_v28  ;;  %2435 = vmatprep.mubr.bf16.mxu1 %v2696_v29 }
  0xc9   :  { %1039 = vmatmul.mubr.bf16.gmra.mrb[64].mxu0 %v2697_v30  ;;  %2436 = vmatmul.mubr.bf16.gmra.mrb[64].mxu1 %v2698_v31  ;;  %v161_v30 = vld [vmem:[#allocation2 + $0x18] sm:$0xff] }
  0xca   :  { %1046 = vmatprep.mubr.bf16.mxu0 %v2699_v32  ;;  %2439 = vmatprep.mubr.bf16.mxu1 %v2701_v33 }
  0xd1   :  { %1047 = vmatmul.mubr.bf16.gmra.mrb[68].mxu0 %v2702_v34  ;;  %2440 = vmatmul.mubr.bf16.gmra.mrb[68].mxu1 %v2703_v35  ;;  %v159_v35 = vld [vmem:[#allocation2 + $0x8] sm:$0xff] }
 0x11c   :  { %v912_v36 = vpop.f32.mrb[0].mxu0  ;;  %v2997_v37 = vpop.f32.mrb[0].mxu1 }
 0x11d   :  { %v914_v38 = vpop.f32.mrb[1].mxu0  ;;  %v1058_v39 = vpop.f32.mrb[1].mxu1 }
 0x11e   :  { %v915_v40 = vpop.f32.mrb[2].mxu0  ;;  %v2999_v41 = vpop.f32.mrb[2].mxu1 }
 0x11f   :  { %v917_v42 = vpop.f32.mrb[3].mxu0  ;;  %v1061_v43 = vpop.f32.mrb[3].mxu1 }
 0x124   :  { %v920_v44 = vpop.f32.mrb[4].mxu0  ;;  %v3001_v45 = vpop.f32.mrb[4].mxu1 }
 0x125   :  { %v922_v46 = vpop.f32.mrb[5].mxu0  ;;  %v1066_v47 = vpop.f32.mrb[5].mxu1 }
 0x126   :  { %v923_v48 = vpop.f32.mrb[6].mxu0  ;;  %v3003_v49 = vpop.f32.mrb[6].mxu1  ;;  %v164_v47 = vld [vmem:[#allocation2 + $0x30] sm:$0xff] }
 0x127   :  { %v925_v50 = vpop.f32.mrb[7].mxu0  ;;  %v1069_v51 = vpop.f32.mrb[7].mxu1 }
 0x12c   :  { %v3005_v52 = vpop.f32.mrb[8].mxu0  ;;  %v3007_v53 = vpop.f32.mrb[8].mxu1 }
 0x12d   :  { %v930_v54 = vpop.f32.mrb[9].mxu0  ;;  %v1074_v55 = vpop.f32.mrb[9].mxu1 }
 0x12e   :  { %v3009_v56 = vpop.f32.mrb[10].mxu0  ;;  %v3011_v57 = vpop.f32.mrb[10].mxu1  ;;  %v162_v54 = vld [vmem:[#allocation2 + $0x20] sm:$0xff] }
 0x12f   :  { %v933_v58 = vpop.f32.mrb[11].mxu0  ;;  %v1077_v59 = vpop.f32.mrb[11].mxu1 }
 0x130   :  { %v165_v59 = vld [vmem:[#allocation2 + $0x38] sm:$0xff] }
 0x134   :  { %v936_v60 = vpop.f32.mrb[12].mxu0  ;;  %v3013_v61 = vpop.f32.mrb[12].mxu1 }
 0x135   :  { %v938_v62 = vpop.f32.mrb[13].mxu0  ;;  %v1082_v63 = vpop.f32.mrb[13].mxu1 }
 0x136   :  { %v939_v0 = vpop.f32.mrb[14].mxu0  ;;  %v3015_v2 = vpop.f32.mrb[14].mxu1 }
 0x137   :  { %v941_v3 = vpop.f32.mrb[15].mxu0  ;;  %v1085_v4 = vpop.f32.mrb[15].mxu1 }
 0x138   :  { %v163_v4 = vld [vmem:[#allocation2 + $0x28] sm:$0xff] }
 0x13c   :  { %v3017_v5 = vpop.f32.mrb[16].mxu0  ;;  %v3019_v6 = vpop.f32.mrb[16].mxu1 }
 0x13d   :  { %v946_v7 = vpop.f32.mrb[17].mxu0  ;;  %v1090_v8 = vpop.f32.mrb[17].mxu1 }
 0x13e   :  { %v3021_v9 = vpop.f32.mrb[18].mxu0  ;;  %v3023_v10 = vpop.f32.mrb[18].mxu1 }
 0x13f   :  { %v949_v11 = vpop.f32.mrb[19].mxu0  ;;  %v1093_v12 = vpop.f32.mrb[19].mxu1 }
 0x144   :  { %v952_v13 = vpop.f32.mrb[20].mxu0  ;;  %v3025_v14 = vpop.f32.mrb[20].mxu1 }
 0x145   :  { %v954_v15 = vpop.f32.mrb[21].mxu0  ;;  %v1098_v16 = vpop.f32.mrb[21].mxu1 }
 0x146   :  { %v3027_v17 = vpop.f32.mrb[22].mxu0  ;;  %v3029_v18 = vpop.f32.mrb[22].mxu1  ;;  %v168_v16 = vld [vmem:[#allocation2 + $0x50] sm:$0xff] }
 0x147   :  { %v957_v19 = vpop.f32.mrb[23].mxu0  ;;  %v1101_v20 = vpop.f32.mrb[23].mxu1 }
 0x14c   :  { %v3031_v21 = vpop.f32.mrb[24].mxu0  ;;  %v2397_v23 = vpop.f32.mrb[24].mxu1 }
 0x14d   :  { %v1146_v24 = vadd.f32 %v2397_v23, %v920_v44  ;;  %v962_v25 = vpop.f32.mrb[25].mxu0  ;;  %v1137_v27 = vpop.f32.mrb[25].mxu1 }
 0x14e   :  { %v1138_v28 = vadd.f32 %v1137_v27, %v912_v36  ;;  %v3033_v29 = vpop.f32.mrb[26].mxu0  ;;  %v2398_v31 = vpop.f32.mrb[26].mxu1  ;;  %v169_v25 = vld [vmem:[#allocation2 + $0x58] sm:$0xff] }
 0x14f   :  { %v1330_v32 = vadd.f32 %v1146_v24, %v160_v22  ;;  %v1149_v33 = vadd.f32 %v2398_v31, %v923_v48  ;;  %v965_v34 = vpop.f32.mrb[27].mxu0  ;;  %v1140_v38 = vpop.f32.mrb[27].mxu1  ;;  %v166_v22 = vld [vmem:[#allocation2 + $0x40] sm:$0xff] }
 0x150   :  { %v1328_v39 = vadd.f32 %v1138_v28, %v158_v26  ;;  %v1141_v42 = vadd.f32 %v1140_v38, %v915_v40 }
 0x151   :  { %1378 = vst [vmem:[#allocation2 + $0x10] sm:$0xff] %v1330_v32  ;;  %v1331_v43 = vadd.f32 %v1149_v33, %v161_v30  ;;  %v167_v30 = vld [vmem:[#allocation2 + $0x48] sm:$0xff] }
 0x152   :  { %1376 = vst [vmem:[#allocation2] sm:$0xff] %v1328_v39  ;;  %v1329_v46 = vadd.f32 %v1141_v42, %v159_v35 }
 0x153   :  { %1379 = vst [vmem:[#allocation2 + $0x18] sm:$0xff] %v1331_v43  ;;  %v170_v43 = vld [vmem:[#allocation2 + $0x60] sm:$0xff] }
 0x154   :  { %1377 = vst [vmem:[#allocation2 + $0x8] sm:$0xff] %v1329_v46  ;;  %v968_v44 = vpop.f32.mrb[28].mxu0  ;;  %v2401_v36 = vpop.f32.mrb[28].mxu1 }
 0x155   :  { %v1162_v50 = vadd.f32 %v2401_v36, %v936_v60  ;;  %v970_v51 = vpop.f32.mrb[29].mxu0  ;;  %v1153_v55 = vpop.f32.mrb[29].mxu1  ;;  %v173_v36 = vld [vmem:[#allocation2 + $0x78] sm:$0xff] }
 0x156   :  { %v1154_v48 = vadd.f32 %v1153_v55, %v3005_v52  ;;  %v971_v58 = vpop.f32.mrb[30].mxu0  ;;  %v2402_v62 = vpop.f32.mrb[30].mxu1  ;;  %v171_v55 = vld [vmem:[#allocation2 + $0x68] sm:$0xff] }
 0x157   :  { %v1334_v63 = vadd.f32 %v1162_v50, %v164_v47  ;;  %v1165_v40 = vadd.f32 %v2402_v62, %v939_v0  ;;  %v973_v3 = vpop.f32.mrb[31].mxu0  ;;  %v1156_v7 = vpop.f32.mrb[31].mxu1 }
 0x158   :  { %v1332_v8 = vadd.f32 %v1154_v48, %v162_v54  ;;  %v1157_v11 = vadd.f32 %v1156_v7, %v3009_v56  ;;  %v176_v3 = vld [vmem:[#allocation2 + $0x90] sm:$0xff] }
 0x159   :  { %1382 = vst [vmem:[#allocation2 + $0x30] sm:$0xff] %v1334_v63  ;;  %v1335_v12 = vadd.f32 %v1165_v40, %v165_v59 }
 0x15a   :  { %1380 = vst [vmem:[#allocation2 + $0x20] sm:$0xff] %v1332_v8  ;;  %v1333_v60 = vadd.f32 %v1157_v11, %v163_v4  ;;  %v174_v8 = vld [vmem:[#allocation2 + $0x80] sm:$0xff] }
 0x15b   :  { %1383 = vst [vmem:[#allocation2 + $0x38] sm:$0xff] %v1335_v12 }
 0x15c   :  { %1381 = vst [vmem:[#allocation2 + $0x28] sm:$0xff] %v1333_v60  ;;  %v976_v15 = vpop.f32.mrb[32].mxu0  ;;  %v2405_v52 = vpop.f32.mrb[32].mxu1  ;;  %v177_v60 = vld [vmem:[#allocation2 + $0x98] sm:$0xff] }
 0x15d   :  { %v1178_v19 = vadd.f32 %v2405_v52, %v952_v13  ;;  %v978_v20 = vpop.f32.mrb[33].mxu0  ;;  %v1169_v23 = vpop.f32.mrb[33].mxu1 }
 0x15e   :  { %v1170_v0 = vadd.f32 %v1169_v23, %v3017_v5  ;;  %v979_v24 = vpop.f32.mrb[34].mxu0  ;;  %v2406_v26 = vpop.f32.mrb[34].mxu1  ;;  %v172_v5 = vld [vmem:[#allocation2 + $0x70] sm:$0xff]  ;;  %v175_v20 = vld [vmem:[#allocation2 + $0x88] sm:$0xff] }
 0x15f   :  { %v1338_v27 = vadd.f32 %v1178_v19, %v168_v16  ;;  %v1181_v56 = vadd.f32 %v2406_v26, %v3027_v17  ;;  %v981_v28 = vpop.f32.mrb[35].mxu0  ;;  %v1172_v31 = vpop.f32.mrb[35].mxu1 }
 0x160   :  { %v1336_v32 = vadd.f32 %v1170_v0, %v166_v22  ;;  %v1173_v33 = vadd.f32 %v1172_v31, %v3021_v9  ;;  %v178_v31 = vld [vmem:[#allocation2 + $0xa0] sm:$0xff] }
 0x161   :  { %1386 = vst [vmem:[#allocation2 + $0x50] sm:$0xff] %v1338_v27  ;;  %v1339_v34 = vadd.f32 %v1181_v56, %v169_v25  ;;  %v180_v56 = vld [vmem:[#allocation2 + $0xb0] sm:$0xff] }
 0x162   :  { %1384 = vst [vmem:[#allocation2 + $0x40] sm:$0xff] %v1336_v32  ;;  %v1337_v13 = vadd.f32 %v1173_v33, %v167_v30 }
 0x163   :  { %1387 = vst [vmem:[#allocation2 + $0x58] sm:$0xff] %v1339_v34 }
 0x164   :  { %1385 = vst [vmem:[#allocation2 + $0x48] sm:$0xff] %v1337_v13  ;;  %v984_v35 = vpop.f32.mrb[36].mxu0  ;;  %v2409_v38 = vpop.f32.mrb[36].mxu1  ;;  %v181_v13 = vld [vmem:[#allocation2 + $0xb8] sm:$0xff] }
 0x165   :  { %v1194_v39 = vadd.f32 %v2409_v38, %v968_v44  ;;  %v986_v42 = vpop.f32.mrb[37].mxu0  ;;  %v1185_v46 = vpop.f32.mrb[37].mxu1 }
 0x166   :  { %v1186_v17 = vadd.f32 %v1185_v46, %v3031_v21  ;;  %v987_v47 = vpop.f32.mrb[38].mxu0  ;;  %v2410_v50 = vpop.f32.mrb[38].mxu1 }
 0x167   :  { %v1342_v51 = vadd.f32 %v1194_v39, %v172_v5  ;;  %v1197_v9 = vadd.f32 %v2410_v50, %v971_v58  ;;  %v989_v54 = vpop.f32.mrb[39].mxu0  ;;  %v1188_v48 = vpop.f32.mrb[39].mxu1  ;;  %v179_v39 = vld [vmem:[#allocation2 + $0xa8] sm:$0xff] }
 0x168   :  { %v1340_v59 = vadd.f32 %v1186_v17, %v170_v43  ;;  %v1189_v62 = vadd.f32 %v1188_v48, %v3033_v29 }
 0x169   :  { %1390 = vst [vmem:[#allocation2 + $0x70] sm:$0xff] %v1342_v51  ;;  %v1343_v63 = vadd.f32 %v1197_v9, %v173_v36  ;;  %v182_v9 = vld [vmem:[#allocation2 + $0xc0] sm:$0xff] }
 0x16a   :  { %1388 = vst [vmem:[#allocation2 + $0x60] sm:$0xff] %v1340_v59  ;;  %v1341_v44 = vadd.f32 %v1189_v62, %v171_v55 }
 0x16b   :  { %1391 = vst [vmem:[#allocation2 + $0x78] sm:$0xff] %v1343_v63  ;;  %v183_v63 = vld [vmem:[#allocation2 + $0xc8] sm:$0xff] }
 0x16c   :  { %1389 = vst [vmem:[#allocation2 + $0x68] sm:$0xff] %v1341_v44  ;;  %v992_v40 = vpop.f32.mrb[40].mxu0  ;;  %v2413_v21 = vpop.f32.mrb[40].mxu1 }
 0x16d   :  { %v1210_v4 = vadd.f32 %v2413_v21, %v984_v35  ;;  %v994_v7 = vpop.f32.mrb[41].mxu0  ;;  %v1201_v11 = vpop.f32.mrb[41].mxu1 }
 0x16e   :  { %v1202_v58 = vadd.f32 %v1201_v11, %v976_v15  ;;  %v995_v12 = vpop.f32.mrb[42].mxu0  ;;  %v2414_v16 = vpop.f32.mrb[42].mxu1 }
 0x16f   :  { %v1346_v52 = vadd.f32 %v1210_v4, %v176_v3  ;;  %v1213_v19 = vadd.f32 %v2414_v16, %v987_v47  ;;  %v997_v29 = vpop.f32.mrb[43].mxu0  ;;  %v1204_v22 = vpop.f32.mrb[43].mxu1  ;;  %v184_v4 = vld [vmem:[#allocation2 + $0xd0] sm:$0xff] }
 0x170   :  { %v1344_v23 = vadd.f32 %v1202_v58, %v174_v8  ;;  %v1205_v0 = vadd.f32 %v1204_v22, %v979_v24 }
 0x171   :  { %1394 = vst [vmem:[#allocation2 + $0x90] sm:$0xff] %v1346_v52  ;;  %v1347_v25 = vadd.f32 %v1213_v19, %v177_v60  ;;  %v185_v60 = vld [vmem:[#allocation2 + $0xd8] sm:$0xff] }
 0x172   :  { %1392 = vst [vmem:[#allocation2 + $0x80] sm:$0xff] %v1344_v23  ;;  %v1345_v26 = vadd.f32 %v1205_v0, %v175_v20  ;;  %v186_v0 = vld [vmem:[#allocation2 + $0xe0] sm:$0xff] }
 0x173   :  { %1395 = vst [vmem:[#allocation2 + $0x98] sm:$0xff] %v1347_v25 }
 0x174   :  { %1393 = vst [vmem:[#allocation2 + $0x88] sm:$0xff] %v1345_v26  ;;  %v1000_v27 = vpop.f32.mrb[44].mxu0  ;;  %v2417_v28 = vpop.f32.mrb[44].mxu1 }
 0x175   :  { %v1226_v15 = vadd.f32 %v2417_v28, %v1000_v27  ;;  %v1002_v30 = vpop.f32.mrb[45].mxu0  ;;  %v1217_v32 = vpop.f32.mrb[45].mxu1 }
 0x176   :  { %v1218_v33 = vadd.f32 %v1217_v32, %v992_v40  ;;  %v1003_v34 = vpop.f32.mrb[46].mxu0  ;;  %v2418_v35 = vpop.f32.mrb[46].mxu1 }
 0x177   :  { %v1350_v5 = vadd.f32 %v1226_v15, %v180_v56  ;;  %v1229_v38 = vadd.f32 %v2418_v35, %v1003_v34  ;;  %v1005_v24 = vpop.f32.mrb[47].mxu0  ;;  %v1220_v42 = vpop.f32.mrb[47].mxu1  ;;  %v187_v15 = vld [vmem:[#allocation2 + $0xe8] sm:$0xff] }
 0x178   :  { %v1348_v43 = vadd.f32 %v1218_v33, %v178_v31  ;;  %v1221_v46 = vadd.f32 %v1220_v42, %v995_v12  ;;  %v196_v24 = vld [vmem:[#allocation2 + $0x130] sm:$0xff] }
 0x179   :  { %1398 = vst [vmem:[#allocation2 + $0xb0] sm:$0xff] %v1350_v5  ;;  %v1351_v17 = vadd.f32 %v1229_v38, %v181_v13  ;;  %v188_v5 = vld [vmem:[#allocation2 + $0xf0] sm:$0xff] }
 0x17a   :  { %1396 = vst [vmem:[#allocation2 + $0xa0] sm:$0xff] %v1348_v43  ;;  %v1349_v47 = vadd.f32 %v1221_v46, %v179_v39 }
 0x17b   :  { %1399 = vst [vmem:[#allocation2 + $0xb8] sm:$0xff] %v1351_v17  ;;  %v194_v17 = vld [vmem:[#allocation2 + $0x120] sm:$0xff] }
 0x17c   :  { %1397 = vst [vmem:[#allocation2 + $0xa8] sm:$0xff] %v1349_v47  ;;  %v1008_v36 = vpop.f32.mrb[48].mxu0  ;;  %v2421_v50 = vpop.f32.mrb[48].mxu1 }
 0x17d   :  { %v1010_v51 = vpop.f32.mrb[49].mxu0  ;;  %v1233_v54 = vpop.f32.mrb[49].mxu1 }
 0x17e   :  { %v1234_v55 = vadd.f32 %v1233_v54, %v1008_v36  ;;  %v1011_v48 = vpop.f32.mrb[50].mxu0  ;;  %v2422_v59 = vpop.f32.mrb[50].mxu1 }
 0x17f   :  { %v1013_v62 = vpop.f32.mrb[51].mxu0  ;;  %v1236_v44 = vpop.f32.mrb[51].mxu1 }
 0x180   :  { %v1352_v40 = vadd.f32 %v1234_v55, %v182_v9  ;;  %v1237_v3 = vadd.f32 %v1236_v44, %v1011_v48  ;;  %v197_v9 = vld [vmem:[#allocation2 + $0x138] sm:$0xff]  ;;  %v195_v44 = vld [vmem:[#allocation2 + $0x128] sm:$0xff] }
 0x182   :  { %1400 = vst [vmem:[#allocation2 + $0xc0] sm:$0xff] %v1352_v40  ;;  %v1353_v21 = vadd.f32 %v1237_v3, %v183_v63 }
 0x184   :  { %1401 = vst [vmem:[#allocation2 + $0xc8] sm:$0xff] %v1353_v21  ;;  %v1016_v7 = vpop.f32.mrb[52].mxu0  ;;  %v2425_v8 = vpop.f32.mrb[52].mxu1 }
 0x185   :  { %v1242_v11 = vadd.f32 %v2421_v50, %v1016_v7  ;;  %v1018_v58 = vpop.f32.mrb[53].mxu0  ;;  %v1249_v12 = vpop.f32.mrb[53].mxu1  ;;  %v189_v50 = vld [vmem:[#allocation2 + $0xf8] sm:$0xff]  ;;  %v190_v7 = vld [vmem:[#allocation2 + $0x100] sm:$0xff] }
 0x186   :  { %v1019_v16 = vpop.f32.mrb[54].mxu0  ;;  %v2426_v52 = vpop.f32.mrb[54].mxu1 }
 0x187   :  { %v1354_v19 = vadd.f32 %v1242_v11, %v184_v4  ;;  %v1245_v29 = vadd.f32 %v2422_v59, %v1019_v16  ;;  %v1021_v20 = vpop.f32.mrb[55].mxu0  ;;  %v1252_v22 = vpop.f32.mrb[55].mxu1  ;;  %v200_v11 = vld [vmem:[#allocation2 + $0x150] sm:$0xff]  ;;  %v198_v16 = vld [vmem:[#allocation2 + $0x140] sm:$0xff] }
 0x188   :  { %v201_v20 = vld [vmem:[#allocation2 + $0x158] sm:$0xff] }
 0x189   :  { %1402 = vst [vmem:[#allocation2 + $0xd0] sm:$0xff] %v1354_v19  ;;  %v1355_v23 = vadd.f32 %v1245_v29, %v185_v60  ;;  %v191_v19 = vld [vmem:[#allocation2 + $0x108] sm:$0xff] }
 0x18b   :  { %1403 = vst [vmem:[#allocation2 + $0xd8] sm:$0xff] %v1355_v23 }
 0x18c   :  { %v1024_v25 = vpop.f32.mrb[56].mxu0  ;;  %v3042_v26 = vpop.f32.mrb[56].mxu1 }
 0x18d   :  { %v1250_v27 = vadd.f32 %v1249_v12, %v1024_v25  ;;  %v1026_v56 = vpop.f32.mrb[57].mxu0  ;;  %v1265_v28 = vpop.f32.mrb[57].mxu1 }
 0x18e   :  { %v1027_v30 = vpop.f32.mrb[58].mxu0  ;;  %v3044_v31 = vpop.f32.mrb[58].mxu1 }
 0x18f   :  { %v1356_v32 = vadd.f32 %v1250_v27, %v186_v0  ;;  %v1253_v33 = vadd.f32 %v1252_v22, %v1027_v30  ;;  %v1029_v34 = vpop.f32.mrb[59].mxu0  ;;  %v1268_v13 = vpop.f32.mrb[59].mxu1 }
 0x190   :  { %v192_v34 = vld [vmem:[#allocation2 + $0x110] sm:$0xff] }
 0x191   :  { %1404 = vst [vmem:[#allocation2 + $0xe0] sm:$0xff] %v1356_v32  ;;  %v1357_v35 = vadd.f32 %v1253_v33, %v187_v15  ;;  %v199_v15 = vld [vmem:[#allocation2 + $0x148] sm:$0xff] }
 0x193   :  { %1405 = vst [vmem:[#allocation2 + $0xe8] sm:$0xff] %v1357_v35 }
 0x194   :  { %v1032_v38 = vpop.f32.mrb[60].mxu0  ;;  %v2433_v39 = vpop.f32.mrb[60].mxu1 }
 0x195   :  { %v1258_v42 = vadd.f32 %v2425_v8, %v1032_v38  ;;  %v1290_v43 = vadd.f32 %v2433_v39, %v3001_v45  ;;  %v1034_v46 = vpop.f32.mrb[61].mxu0  ;;  %v1281_v47 = vpop.f32.mrb[61].mxu1  ;;  %v202_v39 = vld [vmem:[#allocation2 + $0x160] sm:$0xff] }
 0x196   :  { %v1282_v36 = vadd.f32 %v1281_v47, %v2997_v37  ;;  %v1035_v51 = vpop.f32.mrb[62].mxu0  ;;  %v2434_v54 = vpop.f32.mrb[62].mxu1 }
 0x197   :  { %v1358_v55 = vadd.f32 %v1258_v42, %v188_v5  ;;  %v1366_v48 = vadd.f32 %v1290_v43, %v196_v24  ;;  %v1261_v59 = vadd.f32 %v2426_v52, %v1035_v51  ;;  %v1293_v62 = vadd.f32 %v2434_v54, %v3003_v49  ;;  %v1037_v63 = vpop.f32.mrb[63].mxu0  ;;  %v1284_v40 = vpop.f32.mrb[63].mxu1  ;;  %v193_v43 = vld [vmem:[#allocation2 + $0x118] sm:$0xff] }
 0x198   :  { %v1364_v3 = vadd.f32 %v1282_v36, %v194_v17  ;;  %v1285_v45 = vadd.f32 %v1284_v40, %v2999_v41  ;;  %v205_v17 = vld [vmem:[#allocation2 + $0x178] sm:$0xff] }
 0x199   :  { %1406 = vst [vmem:[#allocation2 + $0xf0] sm:$0xff] %v1358_v55  ;;  %1414 = vst [vmem:[#allocation2 + $0x130] sm:$0xff] %v1366_v48  ;;  %v1359_v21 = vadd.f32 %v1261_v59, %v189_v50  ;;  %v1367_v4 = vadd.f32 %v1293_v62, %v197_v9  ;;  %v203_v55 = vld [vmem:[#allocation2 + $0x168] sm:$0xff] }
 0x19a   :  { %1412 = vst [vmem:[#allocation2 + $0x120] sm:$0xff] %v1364_v3  ;;  %v1365_v37 = vadd.f32 %v1285_v45, %v195_v44 }
 0x19b   :  { %1407 = vst [vmem:[#allocation2 + $0xf8] sm:$0xff] %v1359_v21  ;;  %1415 = vst [vmem:[#allocation2 + $0x138] sm:$0xff] %v1367_v4 }
 0x19c   :  { %1413 = vst [vmem:[#allocation2 + $0x128] sm:$0xff] %v1365_v37  ;;  %v1040_v8 = vpop.f32.mrb[64].mxu0  ;;  %v2437_v58 = vpop.f32.mrb[64].mxu1 }
 0x19d   :  { %v1266_v49 = vadd.f32 %v1265_v28, %v1040_v8  ;;  %v1306_v12 = vadd.f32 %v2437_v58, %v3013_v61  ;;  %v1042_v60 = vpop.f32.mrb[65].mxu0  ;;  %v1297_v52 = vpop.f32.mrb[65].mxu1 }
 0x19e   :  { %v1298_v41 = vadd.f32 %v1297_v52, %v3007_v53  ;;  %v1043_v29 = vpop.f32.mrb[66].mxu0  ;;  %v2438_v22 = vpop.f32.mrb[66].mxu1 }
 0x19f   :  { %v1360_v23 = vadd.f32 %v1266_v49, %v190_v7  ;;  %v1370_v0 = vadd.f32 %v1306_v12, %v200_v11  ;;  %v1269_v25 = vadd.f32 %v1268_v13, %v1043_v29  ;;  %v1309_v27 = vadd.f32 %v2438_v22, %v3015_v2  ;;  %v1045_v56 = vpop.f32.mrb[67].mxu0  ;;  %v1300_v30 = vpop.f32.mrb[67].mxu1  ;;  %v204_v13 = vld [vmem:[#allocation2 + $0x170] sm:$0xff] }
 0x1a0   :  { %v1368_v28 = vadd.f32 %v1298_v41, %v198_v16  ;;  %v1301_v61 = vadd.f32 %v1300_v30, %v3011_v57 }
 0x1a1   :  { %1408 = vst [vmem:[#allocation2 + $0x100] sm:$0xff] %v1360_v23  ;;  %1418 = vst [vmem:[#allocation2 + $0x150] sm:$0xff] %v1370_v0  ;;  %v1361_v32 = vadd.f32 %v1269_v25, %v191_v19  ;;  %v1371_v33 = vadd.f32 %v1309_v27, %v201_v20 }
 0x1a2   :  { %1416 = vst [vmem:[#allocation2 + $0x140] sm:$0xff] %v1368_v28  ;;  %v1369_v53 = vadd.f32 %v1301_v61, %v199_v15 }
 0x1a3   :  { %1409 = vst [vmem:[#allocation2 + $0x108] sm:$0xff] %v1361_v32  ;;  %1419 = vst [vmem:[#allocation2 + $0x158] sm:$0xff] %v1371_v33 }
 0x1a4   :  { %1417 = vst [vmem:[#allocation2 + $0x148] sm:$0xff] %v1369_v53  ;;  %v1048_v35 = vpop.f32.mrb[68].mxu0  ;;  %v2441_v5 = vpop.f32.mrb[68].mxu1 }
 0x1a5   :  { %v1274_v2 = vadd.f32 %v3042_v26, %v1048_v35  ;;  %v1322_v38 = vadd.f32 %v2441_v5, %v3025_v14  ;;  %v1050_v24 = vpop.f32.mrb[69].mxu0  ;;  %v1313_v57 = vpop.f32.mrb[69].mxu1 }
 0x1a6   :  { %v1314_v42 = vadd.f32 %v1313_v57, %v3019_v6  ;;  %v1051_v46 = vpop.f32.mrb[70].mxu0  ;;  %v2442_v47 = vpop.f32.mrb[70].mxu1 }
 0x1a7   :  { %v1362_v36 = vadd.f32 %v1274_v2, %v192_v34  ;;  %v1374_v50 = vadd.f32 %v1322_v38, %v204_v13  ;;  %v1277_v51 = vadd.f32 %v3044_v31, %v1051_v46  ;;  %v1325_v9 = vadd.f32 %v2442_v47, %v3029_v18  ;;  %v1053_v54 = vpop.f32.mrb[71].mxu0  ;;  %v1316_v26 = vpop.f32.mrb[71].mxu1 }
 0x1a8   :  { %v1372_v48 = vadd.f32 %v1314_v42, %v202_v39  ;;  %v1317_v14 = vadd.f32 %v1316_v26, %v3023_v10 }
 0x1a9   :  { %1410 = vst [vmem:[#allocation2 + $0x110] sm:$0xff] %v1362_v36  ;;  %1422 = vst [vmem:[#allocation2 + $0x170] sm:$0xff] %v1374_v50  ;;  %v1363_v59 = vadd.f32 %v1277_v51, %v193_v43  ;;  %v1375_v6 = vadd.f32 %v1325_v9, %v205_v17 }
 0x1aa   :  { %1420 = vst [vmem:[#allocation2 + $0x160] sm:$0xff] %v1372_v48  ;;  %v1373_v62 = vadd.f32 %v1317_v14, %v203_v55 }
 0x1ab   :  { %1411 = vst [vmem:[#allocation2 + $0x118] sm:$0xff] %v1363_v59  ;;  %1423 = vst [vmem:[#allocation2 + $0x178] sm:$0xff] %v1375_v6 }
 0x1ac   :  { %1421 = vst [vmem:[#allocation2 + $0x168] sm:$0xff] %v1373_v62 }
 0x1ad PF:  { %v2705_v18 = vld [vmem:[%s3255_s4] sm:$0xff]   ;;  %v2706_v31 = vld [vmem:[%s3255_s4 + $0x8] sm:$0xff]   ;;  %v2707_v10 = vld [vmem:[%s3255_s4 + $0x10] sm:$0xff]   ;;  %vm2727_vm6 = vmmov 0  }
 0x1ae   :  { %2443 = vmatprep.subr.bf16.mxu0 %v2705_v18  ;;  %v2708_v63 = vld [vmem:[%s3255_s4 + $0x18] sm:$0xff]   ;;  %v1427_v44 = vld [vmem:[#allocation2] sm:$0xff]  ;;  %v1428_v40 = vld [vmem:[#allocation2 + $0x8] sm:$0xff] }
 0x1af   :  { %2444 = vmatpush3.bf16.msra.mxu0 %v2705_v18  ;;  %v1475_v3 = vpack.c.bf16 %v1428_v40, %v1427_v44  ;;  %v2709_v45 = vld [vmem:[%s3255_s4 + $0x20] sm:$0xff]   ;;  %v2710_v21 = vld [vmem:[%s3255_s4 + $0x28] sm:$0xff]   ;;  %v2711_v4 = vld [vmem:[%s3255_s4 + $0x30] sm:$0xff]  }
 0x1b0   :  { %2445 = vmatprep.subr.bf16.mxu0 %v2706_v31  ;;  %v2712_v37 = vld [vmem:[%s3255_s4 + $0x38] sm:$0xff]   ;;  %v1429_v7 = vld [vmem:[#allocation2 + $0x10] sm:$0xff]  ;;  %v1431_v11 = vld [vmem:[#allocation2 + $0x20] sm:$0xff] }
 0x1b1   :  { %2459 = vmatprep.mubr.bf16.mxu0 %v1475_v3  ;;  %v1430_v8 = vld [vmem:[#allocation2 + $0x18] sm:$0xff]  ;;  %v1432_v58 = vld [vmem:[#allocation2 + $0x28] sm:$0xff]  ;;  %v1433_v60 = vld [vmem:[#allocation2 + $0x30] sm:$0xff] }
 0x1b2   :  { %v1476_v49 = vpack.c.bf16 %v1430_v8, %v1429_v7  ;;  %v1477_v12 = vpack.c.bf16 %v1432_v58, %v1431_v11  ;;  %v1434_v16 = vld [vmem:[#allocation2 + $0x38] sm:$0xff]  ;;  %v1435_v52 = vld [vmem:[#allocation2 + $0x40] sm:$0xff]  ;;  %v1436_v41 = vld [vmem:[#allocation2 + $0x48] sm:$0xff] }
 0x1b3   :  { %2446 = vmatpush3.bf16.msra.mxu0 %v2706_v31  ;;  %v1478_v19 = vpack.c.bf16 %v1434_v16, %v1433_v60  ;;  %v1479_v29 = vpack.c.bf16 %v1436_v41, %v1435_v52  ;;  %v1437_v20 = vld [vmem:[#allocation2 + $0x50] sm:$0xff]  ;;  %v1438_v22 = vld [vmem:[#allocation2 + $0x58] sm:$0xff]  ;;  %v1439_v23 = vld [vmem:[#allocation2 + $0x60] sm:$0xff]  ;;  %v1843_v60 = vlaneseq }
 0x1b4   :  { %2447 = vmatprep.subr.bf16.mxu0 %v2707_v10  ;;  %v1440_v0 = vld [vmem:[#allocation2 + $0x68] sm:$0xff]  ;;  %v1480_v25 = vpack.c.bf16 %v1438_v22, %v1437_v20  ;;  %v1441_v56 = vld [vmem:[#allocation2 + $0x70] sm:$0xff]  ;;  %v1442_v15 = vld [vmem:[#allocation2 + $0x78] sm:$0xff] }
 0x1b5   :  { %v1481_v27 = vpack.c.bf16 %v1440_v0, %v1439_v23  ;;  %v1443_v30 = vld [vmem:[#allocation2 + $0x80] sm:$0xff]  ;;  %v1444_v28 = vld [vmem:[#allocation2 + $0x88] sm:$0xff]  ;;  %v1482_v61 = vpack.c.bf16 %v1442_v15, %v1441_v56  ;;  %v1445_v33 = vld [vmem:[#allocation2 + $0x90] sm:$0xff]  ;;  %v3084_v16 = vshrl.u32 %v1843_v60, 7 }
 0x1b6   :  { %v1483_v32 = vpack.c.bf16 %v1444_v28, %v1443_v30  ;;  %v1446_v53 = vld [vmem:[#allocation2 + $0x98] sm:$0xff]  ;;  %v1447_v34 = vld [vmem:[#allocation2 + $0xa0] sm:$0xff]  ;;  %v1448_v35 = vld [vmem:[#allocation2 + $0xa8] sm:$0xff]  ;;  %v2725_v30 = vmov 1.0|1.0   ;;  %v2726_v28 = vmov 0  }
 0x1b7   :  { %2448 = vmatpush3.bf16.msra.mxu0 %v2707_v10  ;;  %v1484_v13 = vpack.c.bf16 %v1446_v53, %v1445_v33  ;;  %v1485_v5 = vpack.c.bf16 %v1448_v35, %v1447_v34  ;;  %v1449_v2 = vld [vmem:[#allocation2 + $0xb0] sm:$0xff]  ;;  %v1450_v38 = vld [vmem:[#allocation2 + $0xb8] sm:$0xff]  ;;  %v1451_v24 = vld [vmem:[#allocation2 + $0xc0] sm:$0xff]  ;;  %v1848_v52 = vsub.s32 0, %v3084_v16  ;;  %v1852_v41 = vsub.s32 1, %v3084_v16  ;;  %2704 = vset.pattern.permute.xlu0 %v2726_v28 }
 0x1b8   :  { %2449 = vmatprep.subr.bf16.mxu0 %v2708_v63  ;;  %v1452_v39 = vld [vmem:[#allocation2 + $0xc8] sm:$0xff]  ;;  %v1486_v57 = vpack.c.bf16 %v1450_v38, %v1449_v2  ;;  %v1453_v43 = vld [vmem:[#allocation2 + $0xd0] sm:$0xff]  ;;  %v1454_v46 = vld [vmem:[#allocation2 + $0xd8] sm:$0xff]  ;;  %v1856_v22 = vsub.s32 2, %v3084_v16 }
 0x1b9   :  { %v1487_v42 = vpack.c.bf16 %v1452_v39, %v1451_v24  ;;  %v1455_v17 = vld [vmem:[#allocation2 + $0xe0] sm:$0xff]  ;;  %v1456_v47 = vld [vmem:[#allocation2 + $0xe8] sm:$0xff]  ;;  %v1488_v36 = vpack.c.bf16 %v1454_v46, %v1453_v43  ;;  %v1457_v51 = vld [vmem:[#allocation2 + $0xf0] sm:$0xff] }
 0x1ba   :  { %v1489_v50 = vpack.c.bf16 %v1456_v47, %v1455_v17  ;;  %v1458_v9 = vld [vmem:[#allocation2 + $0xf8] sm:$0xff]  ;;  %v1459_v54 = vld [vmem:[#allocation2 + $0x100] sm:$0xff]  ;;  %v1460_v55 = vld [vmem:[#allocation2 + $0x108] sm:$0xff] }
 0x1bb   :  { %2450 = vmatpush3.bf16.msra.mxu0 %v2708_v63  ;;  %v1490_v26 = vpack.c.bf16 %v1458_v9, %v1457_v51  ;;  %v1491_v48 = vpack.c.bf16 %v1460_v55, %v1459_v54  ;;  %v1461_v14 = vld [vmem:[#allocation2 + $0x110] sm:$0xff]  ;;  %v1462_v59 = vld [vmem:[#allocation2 + $0x118] sm:$0xff]  ;;  %v1463_v6 = vld [vmem:[#allocation2 + $0x120] sm:$0xff] }
 0x1bc   :  { %2451 = vmatprep.subr.bf16.mxu0 %v2709_v45  ;;  %v1464_v62 = vld [vmem:[#allocation2 + $0x128] sm:$0xff]  ;;  %v1492_v18 = vpack.c.bf16 %v1462_v59, %v1461_v14  ;;  %v1465_v10 = vld [vmem:[#allocation2 + $0x130] sm:$0xff]  ;;  %v1466_v63 = vld [vmem:[#allocation2 + $0x138] sm:$0xff] }
 0x1bd   :  { %v1493_v31 = vpack.c.bf16 %v1464_v62, %v1463_v6  ;;  %v1467_v44 = vld [vmem:[#allocation2 + $0x140] sm:$0xff]  ;;  %v1468_v40 = vld [vmem:[#allocation2 + $0x148] sm:$0xff]  ;;  %v1494_v3 = vpack.c.bf16 %v1466_v63, %v1465_v10  ;;  %v1473_v58 = vld [vmem:[#allocation2 + $0x170] sm:$0xff] }
 0x1be   :  { %v1472_v7 = vld [vmem:[#allocation2 + $0x168] sm:$0xff] }
 0x1bf   :  { %2452 = vmatpush3.bf16.msra.mxu0 %v2709_v45  ;;  %v1495_v45 = vpack.c.bf16 %v1468_v40, %v1467_v44 }
 0x1c0   :  { %2453 = vmatprep.subr.bf16.mxu0 %v2710_v21 }
 0x1c3   :  { %2454 = vmatpush3.bf16.msra.mxu0 %v2710_v21  ;;  %v1469_v21 = vld [vmem:[#allocation2 + $0x150] sm:$0xff] }
 0x1c4   :  { %2455 = vmatprep.subr.bf16.mxu0 %v2711_v4 }
 0x1c7   :  { %2456 = vmatpush3.bf16.msra.mxu0 %v2711_v4  ;;  %v1470_v4 = vld [vmem:[#allocation2 + $0x158] sm:$0xff] }
 0x1c8   :  { %2457 = vmatprep.subr.bf16.mxu0 %v2712_v37  ;;  %v1496_v8 = vpack.c.bf16 %v1470_v4, %v1469_v21 }
 0x1cb   :  { %2458 = vmatpush3.bf16.msra.mxu0 %v2712_v37  ;;  %v1471_v37 = vld [vmem:[#allocation2 + $0x160] sm:$0xff] }
 0x1cc   :  { %v1497_v11 = vpack.c.bf16 %v1472_v7, %v1471_v37 }
 0x1ce   :  { %2460 = vmatmul.mubr.bf16.vlgmr.msra.gmra.mrb[0].mxu0 %v1476_v49  ;;  %v1474_v49 = vld [vmem:[#allocation2 + $0x178] sm:$0xff] }
 0x1cf   :  { %2463 = vmatprep.mubr.bf16.mxu0 %v1477_v12  ;;  %v1498_v12 = vpack.c.bf16 %v1474_v49, %v1473_v58 }
 0x1d6   :  { %2464 = vmatmul.mubr.bf16.gmra.mrb[4].mxu0 %v1478_v19  ;;  %v1845_v19 = vld [vmem:[%s3257_s6] sm:$0x7] }
 0x1d7   :  { %2467 = vmatprep.mubr.bf16.mxu0 %v1479_v29  ;;  %v3091_v29 = vrot.slane %v1845_v19, %v1848_v52  ;;  %v1853_v20 = vrot.slane %v1845_v19, %v1852_v41  ;;  %v3094_v23 = vrot.slane %v1845_v19, %v1856_v22 }
 0x1d9   :  { %vm1858_vm1 = vcmp.eq.s32.totalorder %v3084_v16, %v3091_v29  ;;  %vm1859_vm2 = vcmp.eq.s32.totalorder %v3084_v16, %v1853_v20  ;;  %vm1860_vm3 = vcmp.eq.s32.totalorder %v3084_v16, %v3094_v23  ;;  %v2715_v16 = vld [vmem:[%s3258_s7 + $0x10] sm:$0xff]   ;;  %v2716_v23 = vld [vmem:[%s3258_s7 + $0x18] sm:$0xff]  }
 0x1da   :  { %v2255_v0 = vsel %vm1858_vm1, 1.0, %v2723_v1  ;;  %v2257_v56 = vsel %vm1860_vm3, 1.0, %v2723_v1  ;;  %vm2258_vm4 = vmpackc.low %vm1859_vm2, %vm1859_vm2 }
 0x1db   :  { %2259 = vmatprep.mubr.msk.bf16.mxu1 %vm2258_vm4, %v2725_v30  ;;  %vm2260_vm5 = vmpackc.low %vm1858_vm1, %vm1858_vm1 }
 0x1dc   :  { %vm2262_vm7 = vmpackc.low %vm1860_vm3, %vm1860_vm3 }
 0x1de   :  { %2468 = vmatmul.mubr.bf16.gmra.mrb[8].mxu0 %v1480_v25  ;;  %v2256_v25 = vsel %vm1859_vm2, 1.0, %v2723_v1 }
 0x1df   :  { %2471 = vmatprep.mubr.bf16.mxu0 %v1481_v27  ;;  %v1978_v27 = vadd.f32 %v2256_v25, %v2255_v0 }
 0x1e1   :  { %v1979_v15 = vadd.f32 %v2257_v56, %v1978_v27 }
 0x1e3   :  { %1980 = vadd.xlane.f32.xlu0 %v1979_v15 }
 0x1e6   :  { %2472 = vmatmul.mubr.bf16.gmra.mrb[12].mxu0 %v1482_v61  ;;  %v3114_v61 = vld [vmem:[%s3256_s5] ss:$0 sm:$0xff] }
 0x1e7   :  { %2475 = vmatprep.mubr.bf16.mxu0 %v1483_v32 }
 0x1ee   :  { %2476 = vmatmul.mubr.bf16.gmra.mrb[16].mxu0 %v1484_v13 }
 0x1ef   :  { %2479 = vmatprep.mubr.bf16.mxu0 %v1485_v5 }
 0x1f6   :  { %2480 = vmatmul.mubr.bf16.gmra.mrb[20].mxu0 %v1486_v57 }
 0x1f7   :  { %2483 = vmatprep.mubr.bf16.mxu0 %v1487_v42 }
 0x1fe   :  { %2484 = vmatmul.mubr.bf16.gmra.mrb[24].mxu0 %v1488_v36 }
 0x1ff   :  { %2487 = vmatprep.mubr.bf16.mxu0 %v1489_v50 }
 0x206   :  { %2488 = vmatmul.mubr.bf16.gmra.mrb[28].mxu0 %v1490_v26 }
 0x207   :  { %2491 = vmatprep.mubr.bf16.mxu0 %v1491_v48 }
 0x20e   :  { %2492 = vmatmul.mubr.bf16.gmra.mrb[32].mxu0 %v1492_v18 }
 0x20f   :  { %2495 = vmatprep.mubr.bf16.mxu0 %v1493_v31 }
 0x216   :  { %2496 = vmatmul.mubr.bf16.gmra.mrb[36].mxu0 %v1494_v3 }
 0x217   :  { %2499 = vmatprep.mubr.bf16.mxu0 %v1495_v45 }
 0x21e   :  { %2500 = vmatmul.mubr.bf16.gmra.mrb[40].mxu0 %v1496_v8 }
 0x21f   :  { %2503 = vmatprep.mubr.bf16.mxu0 %v1497_v11 }
 0x226   :  { %2504 = vmatmul.mubr.bf16.gmra.mrb[44].mxu0 %v1498_v12 }
 0x2a1   :  { %v2461_v32 = vpop.f32.mrb[0].mxu0 }
 0x2a2   :  { %v1613_v33 = vadd.f32 %v2461_v32, %v3114_v61  ;;  %v1604_v53 = vpop.f32.mrb[1].mxu0 }
 0x2a3   :  { %v1605_v34 = vadd.f32 %v3114_v61, %v1604_v53  ;;  %v2462_v35 = vpop.f32.mrb[2].mxu0 }
 0x2a4   :  { %v1616_v13 = vadd.f32 %v2462_v35, %v3114_v61  ;;  %v1607_v5 = vpop.f32.mrb[3].mxu0  ;;  %v1797_v38 = vmax.f32 %v1613_v33, 0.0 }
 0x2a5   :  { %v1608_v2 = vadd.f32 %v3114_v61, %v1607_v5  ;;  %v1795_v39 = vmax.f32 %v1605_v34, 0.0 }
 0x2a6   :  { %v1798_v24 = vmax.f32 %v1616_v13, 0.0 }
 0x2a7   :  { %v1796_v57 = vmax.f32 %v1608_v2, 0.0 }
 0x2a8   :  { %v3120_v42 = vpack.c.bf16 %v1798_v24, %v1797_v38 }
 0x2a9   :  { %v2465_v43 = vpop.f32.mrb[4].mxu0  ;;  %v3122_v46 = vpack.c.bf16 %v1796_v57, %v1795_v39 }
 0x2aa   :  { %v1629_v17 = vadd.f32 %v2465_v43, %v3114_v61  ;;  %v1620_v47 = vpop.f32.mrb[5].mxu0 }
 0x2ab   :  { %v1621_v36 = vadd.f32 %v3114_v61, %v1620_v47  ;;  %v2466_v50 = vpop.f32.mrb[6].mxu0 }
 0x2ac   :  { %v1632_v51 = vadd.f32 %v2466_v50, %v3114_v61  ;;  %v1623_v9 = vpop.f32.mrb[7].mxu0  ;;  %v1801_v55 = vmax.f32 %v1629_v17, 0.0  ;;  %v1977_v17 = vld [vmem:[#allocation4] sm:$0xff] }
 0x2ad   :  { %v1624_v54 = vadd.f32 %v3114_v61, %v1623_v9  ;;  %v1799_v48 = vmax.f32 %v1621_v36, 0.0  ;;  %v1981_v9 = vpop.xlane.xlu0 %1980 }
 0x2ae   :  { %v1802_v26 = vmax.f32 %v1632_v51, 0.0 }
 0x2af   :  { %v1800_v14 = vmax.f32 %v1624_v54, 0.0 }
 0x2b0   :  { %v3128_v59 = vpack.c.bf16 %v1802_v26, %v1801_v55  ;;  %v1982_v26 = vadd.f32 %v1981_v9, %v1977_v17 }
 0x2b1   :  { %v3130_v6 = vpack.c.bf16 %v1800_v14, %v1799_v48  ;;  %v2469_v62 = vpop.f32.mrb[8].mxu0 }
 0x2b2   :  { %v1645_v18 = vadd.f32 %v2469_v62, %v3114_v61  ;;  %v1636_v31 = vpop.f32.mrb[9].mxu0  ;;  %1984 = vst.msk [vmem:[#allocation4] sm:$0xff] %vm100_vm0, %v1982_v26 }
 0x2b3   :  { %v1637_v10 = vadd.f32 %v3114_v61, %v1636_v31  ;;  %v2470_v63 = vpop.f32.mrb[10].mxu0 }
 0x2b4   :  { %v1648_v44 = vadd.f32 %v2470_v63, %v3114_v61  ;;  %v1639_v40 = vpop.f32.mrb[11].mxu0  ;;  %v1805_v45 = vmax.f32 %v1645_v18, 0.0 }
 0x2b5   :  { %v1640_v3 = vadd.f32 %v3114_v61, %v1639_v40  ;;  %v1803_v4 = vmax.f32 %v1637_v10, 0.0 }
 0x2b6   :  { %v1806_v21 = vmax.f32 %v1648_v44, 0.0 }
 0x2b7   :  { %v1804_v37 = vmax.f32 %v1640_v3, 0.0 }
 0x2b8   :  { %v3136_v7 = vpack.c.bf16 %v1806_v21, %v1805_v45 }
 0x2b9   :  { %v3138_v8 = vpack.c.bf16 %v1804_v37, %v1803_v4  ;;  %v2473_v11 = vpop.f32.mrb[12].mxu0 }
 0x2ba   :  { %v1661_v58 = vadd.f32 %v2473_v11, %v3114_v61  ;;  %v1652_v49 = vpop.f32.mrb[13].mxu0  ;;  %v1988_v11 = vld [vmem:[#allocation4] sm:$0xff] }
 0x2bb   :  { %v1653_v12 = vadd.f32 %v3114_v61, %v1652_v49  ;;  %v2474_v60 = vpop.f32.mrb[14].mxu0  ;;  %v1989_v49 = vmax.f32 %v1988_v11, 1.0 }
 0x2bc   :  { %v1664_v52 = vadd.f32 %v2474_v60, %v3114_v61  ;;  %v1655_v41 = vpop.f32.mrb[15].mxu0  ;;  %v1809_v20 = vmax.f32 %v1661_v58, 0.0 }
 0x2bd   :  { %v1656_v19 = vadd.f32 %v3114_v61, %v1655_v41  ;;  %v1807_v0 = vmax.f32 %v1653_v12, 0.0  ;;  %1992 = vperm.xlu0 %2704, %v1989_v49  }
 0x2be   :  { %v1810_v22 = vmax.f32 %v1664_v52, 0.0 }
 0x2bf   :  { %v1808_v25 = vmax.f32 %v1656_v19, 0.0 }
 0x2c0   :  { %v3144_v27 = vpack.c.bf16 %v1810_v22, %v1809_v20 }
 0x2c1   :  { %v3146_v56 = vpack.c.bf16 %v1808_v25, %v1807_v0  ;;  %v2477_v15 = vpop.f32.mrb[16].mxu0 }
 0x2c2   :  { %v1677_v28 = vadd.f32 %v2477_v15, %v3114_v61  ;;  %v1668_v32 = vpop.f32.mrb[17].mxu0 }
 0x2c3   :  { %v1669_v33 = vadd.f32 %v3114_v61, %v1668_v32  ;;  %v2478_v53 = vpop.f32.mrb[18].mxu0 }
 0x2c4   :  { %v1680_v34 = vadd.f32 %v2478_v53, %v3114_v61  ;;  %v1671_v35 = vpop.f32.mrb[19].mxu0  ;;  %v1813_v5 = vmax.f32 %v1677_v28, 0.0 }
 0x2c5   :  { %v1672_v13 = vadd.f32 %v3114_v61, %v1671_v35  ;;  %v1811_v38 = vmax.f32 %v1669_v33, 0.0 }
 0x2c6   :  { %v1814_v2 = vmax.f32 %v1680_v34, 0.0 }
 0x2c7   :  { %v1812_v24 = vmax.f32 %v1672_v13, 0.0 }
 0x2c8   :  { %v1880_v39 = vpack.c.bf16 %v1814_v2, %v1813_v5 }
 0x2c9   :  { %v2481_v57 = vpop.f32.mrb[20].mxu0  ;;  %v1879_v43 = vpack.c.bf16 %v1812_v24, %v1811_v38 }
 0x2ca   :  { %v1693_v47 = vadd.f32 %v2481_v57, %v3114_v61  ;;  %v1684_v36 = vpop.f32.mrb[21].mxu0 }
 0x2cb   :  { %v1685_v50 = vadd.f32 %v3114_v61, %v1684_v36  ;;  %v2482_v51 = vpop.f32.mrb[22].mxu0  ;;  %2339 = vmatprep.subr.bf16.mxu1 %v1879_v43 }
 0x2cc   :  { %v1696_v54 = vadd.f32 %v2482_v51, %v3114_v61  ;;  %v1687_v55 = vpop.f32.mrb[23].mxu0  ;;  %2340 = vmatpush3.bf16.msra.mxu1 %v3122_v46  ;;  %v1817_v14 = vmax.f32 %v1693_v47, 0.0 }
 0x2cd   :  { %v1688_v48 = vadd.f32 %v3114_v61, %v1687_v55  ;;  %2341 = vmatprep.subr.bf16.mxu1 %v1880_v39  ;;  %v1815_v18 = vmax.f32 %v1685_v50, 0.0 }
 0x2ce   :  { %v1818_v62 = vmax.f32 %v1696_v54, 0.0 }
 0x2cf   :  { %v1816_v31 = vmax.f32 %v1688_v48, 0.0 }
 0x2d0   :  { %v1882_v10 = vpack.c.bf16 %v1818_v62, %v1817_v14  ;;  %2342 = vmatpush3.bf16.msra.mxu1 %v3120_v42 }
 0x2d1   :  { %v1881_v63 = vpack.c.bf16 %v1816_v31, %v1815_v18  ;;  %v2485_v44 = vpop.f32.mrb[24].mxu0 }
 0x2d2   :  { %v1709_v40 = vadd.f32 %v2485_v44, %v3114_v61  ;;  %v1700_v3 = vpop.f32.mrb[25].mxu0 }
 0x2d3   :  { %v1701_v46 = vadd.f32 %v3114_v61, %v1700_v3  ;;  %v2486_v45 = vpop.f32.mrb[26].mxu0  ;;  %2343 = vmatprep.subr.bf16.mxu1 %v1881_v63 }
 0x2d4   :  { %v1712_v21 = vadd.f32 %v2486_v45, %v3114_v61  ;;  %v1703_v4 = vpop.f32.mrb[27].mxu0  ;;  %2344 = vmatpush3.bf16.msra.mxu1 %v3130_v6  ;;  %v1821_v58 = vmax.f32 %v1709_v40, 0.0 }
 0x2d5   :  { %v1704_v37 = vadd.f32 %v3114_v61, %v1703_v4  ;;  %2345 = vmatprep.subr.bf16.mxu1 %v1882_v10  ;;  %v1819_v12 = vmax.f32 %v1701_v46, 0.0 }
 0x2d6   :  { %v1822_v42 = vmax.f32 %v1712_v21, 0.0 }
 0x2d7   :  { %v1820_v60 = vmax.f32 %v1704_v37, 0.0 }
 0x2d8   :  { %v1884_v52 = vpack.c.bf16 %v1822_v42, %v1821_v58  ;;  %2346 = vmatpush3.bf16.msra.mxu1 %v3128_v59 }
 0x2d9   :  { %v1883_v41 = vpack.c.bf16 %v1820_v60, %v1819_v12  ;;  %v2489_v19 = vpop.f32.mrb[28].mxu0 }
 0x2da   :  { %v1725_v20 = vadd.f32 %v2489_v19, %v3114_v61  ;;  %v1716_v22 = vpop.f32.mrb[29].mxu0 }
 0x2db   :  { %v1717_v6 = vadd.f32 %v3114_v61, %v1716_v22  ;;  %v2490_v0 = vpop.f32.mrb[30].mxu0  ;;  %2347 = vmatprep.subr.bf16.mxu1 %v1883_v41 }
 0x2dc   :  { %v1728_v25 = vadd.f32 %v2490_v0, %v3114_v61  ;;  %v1719_v15 = vpop.f32.mrb[31].mxu0  ;;  %2348 = vmatpush3.bf16.msra.mxu1 %v3138_v8  ;;  %v1825_v32 = vmax.f32 %v1725_v20, 0.0 }
 0x2dd   :  { %v1720_v28 = vadd.f32 %v3114_v61, %v1719_v15  ;;  %2349 = vmatprep.subr.bf16.mxu1 %v1884_v52  ;;  %v1823_v33 = vmax.f32 %v1717_v6, 0.0 }
 0x2de   :  { %v1826_v59 = vmax.f32 %v1728_v25, 0.0 }
 0x2df   :  { %v1824_v53 = vmax.f32 %v1720_v28, 0.0 }
 0x2e0   :  { %v1886_v34 = vpack.c.bf16 %v1826_v59, %v1825_v32  ;;  %2350 = vmatpush3.bf16.msra.mxu1 %v3136_v7 }
 0x2e1   :  { %v1885_v35 = vpack.c.bf16 %v1824_v53, %v1823_v33  ;;  %v2493_v13 = vpop.f32.mrb[32].mxu0  ;;  %v2714_v53 = vld [vmem:[%s3258_s7 + $0x8] sm:$0xff]  }
 0x2e2   :  { %v1741_v5 = vadd.f32 %v2493_v13, %v3114_v61  ;;  %v1732_v2 = vpop.f32.mrb[33].mxu0  ;;  %v2720_v13 = vld [vmem:[%s3258_s7 + $0x38] sm:$0xff]  }
 0x2e3   :  { %v1733_v38 = vadd.f32 %v3114_v61, %v1732_v2  ;;  %v2494_v24 = vpop.f32.mrb[34].mxu0  ;;  %2351 = vmatprep.subr.bf16.mxu1 %v1885_v35  ;;  %v2719_v35 = vld [vmem:[%s3258_s7 + $0x30] sm:$0xff]  }
 0x2e4   :  { %v1829_v8 = vmax.f32 %v1741_v5, 0.0  ;;  %v1744_v39 = vadd.f32 %v2494_v24, %v3114_v61  ;;  %v1735_v57 = vpop.f32.mrb[35].mxu0  ;;  %2352 = vmatpush3.bf16.msra.mxu1 %v3146_v56 }
 0x2e5   :  { %v1736_v43 = vadd.f32 %v3114_v61, %v1735_v57  ;;  %2353 = vmatprep.subr.bf16.mxu1 %v1886_v34  ;;  %v1827_v7 = vmax.f32 %v1733_v38, 0.0  ;;  %v2718_v34 = vld [vmem:[%s3258_s7 + $0x28] sm:$0xff]   ;;  %v1867_v57 = vld [vmem:[#allocation3] sm:$0xff] }
 0x2e6   :  { %v1830_v17 = vmax.f32 %v1744_v39, 0.0 }
 0x2e7   :  { %v1828_v47 = vmax.f32 %v1736_v43, 0.0 }
 0x2e8   :  { %v1888_v36 = vpack.c.bf16 %v1830_v17, %v1829_v8  ;;  %2354 = vmatpush3.bf16.msra.mxu1 %v3144_v27 }
 0x2e9   :  { %v1887_v50 = vpack.c.bf16 %v1828_v47, %v1827_v7  ;;  %v2497_v51 = vpop.f32.mrb[36].mxu0  ;;  %2507 = vmatprep.subr.bf16.mxu1 %v2723_v1 }
 0x2ea   :  { %v1757_v56 = vadd.f32 %v2497_v51, %v3114_v61  ;;  %v1748_v9 = vpop.f32.mrb[37].mxu0 }
 0x2eb   :  { %v1749_v54 = vadd.f32 %v3114_v61, %v1748_v9  ;;  %v2498_v55 = vpop.f32.mrb[38].mxu0  ;;  %2261 = vmatmul.mubr.msk.bf16.vlgmr.msra.gmra.mrb[0].mxu1 %vm2260_vm5, %v2725_v30  ;;  %v2264_v9 = vld [vmem:[%s3259_s8] ss:$0 sm:$0xff] }
 0x2ec   :  { %v1833_v26 = vmax.f32 %v1757_v56, 0.0  ;;  %v1760_v27 = vadd.f32 %v2498_v55, %v3114_v61  ;;  %v1751_v48 = vpop.f32.mrb[39].mxu0  ;;  %2508 = vmatpush3.bf16.msra.mxu1 %v1887_v50  ;;  %2523 = vmatprep.mubr.msk.bf16.mxu1 %vm2727_vm6, %v2723_v1 }
 0x2ed   :  { %v1752_v29 = vadd.f32 %v3114_v61, %v1751_v48  ;;  %2509 = vmatprep.subr.bf16.mxu1 %v2723_v1  ;;  %v1831_v62 = vmax.f32 %v1749_v54, 0.0  ;;  %v2273_v48 = vld [vmem:[%s3260_s9] ss:$0 sm:$0xff] }
 0x2ee   :  { %v1834_v14 = vmax.f32 %v1760_v27, 0.0 }
 0x2ef   :  { %v1832_v18 = vmax.f32 %v1752_v29, 0.0 }
 0x2f0   :  { %v1890_v31 = vpack.c.bf16 %v1834_v14, %v1833_v26  ;;  %2510 = vmatpush3.bf16.msra.mxu1 %v1888_v36 }
 0x2f1   :  { %v1889_v10 = vpack.c.bf16 %v1832_v18, %v1831_v62  ;;  %v2501_v63 = vpop.f32.mrb[40].mxu0  ;;  %2511 = vmatprep.subr.bf16.mxu1 %v2723_v1  ;;  %v2274_v18 = vld [vmem:[#allocation8] ss:$0 sm:$0xff] }
 0x2f2   :  { %v1773_v44 = vadd.f32 %v2501_v63, %v3114_v61  ;;  %v1764_v40 = vpop.f32.mrb[41].mxu0 }
 0x2f3   :  { %v1765_v3 = vadd.f32 %v3114_v61, %v1764_v40  ;;  %v2502_v46 = vpop.f32.mrb[42].mxu0 }
 0x2f4   :  { %v1837_v45 = vmax.f32 %v1773_v44, 0.0  ;;  %v1776_v21 = vadd.f32 %v2502_v46, %v3114_v61  ;;  %v1767_v4 = vpop.f32.mrb[43].mxu0  ;;  %2512 = vmatpush3.bf16.msra.mxu1 %v1889_v10 }
 0x2f5   :  { %v1768_v37 = vadd.f32 %v3114_v61, %v1767_v4  ;;  %2513 = vmatprep.subr.bf16.mxu1 %v2723_v1  ;;  %v1835_v58 = vmax.f32 %v1765_v3, 0.0 }
 0x2f6   :  { %v1838_v11 = vmax.f32 %v1776_v21, 0.0 }
 0x2f7   :  { %v1836_v42 = vmax.f32 %v1768_v37, 0.0 }
 0x2f8   :  { %v1892_v49 = vpack.c.bf16 %v1838_v11, %v1837_v45  ;;  %2514 = vmatpush3.bf16.msra.mxu1 %v1890_v31 }
 0x2f9   :  { %v1891_v12 = vpack.c.bf16 %v1836_v42, %v1835_v58  ;;  %v2505_v60 = vpop.f32.mrb[44].mxu0  ;;  %2515 = vmatprep.subr.bf16.mxu1 %v2723_v1 }
 0x2fa   :  { %v1789_v52 = vadd.f32 %v2505_v60, %v3114_v61  ;;  %v1780_v41 = vpop.f32.mrb[45].mxu0 }
 0x2fb   :  { %v1781_v19 = vadd.f32 %v3114_v61, %v1780_v41  ;;  %v2506_v20 = vpop.f32.mrb[46].mxu0 }
 0x2fc   :  { %v1841_v22 = vmax.f32 %v1789_v52, 0.0  ;;  %v1792_v6 = vadd.f32 %v2506_v20, %v3114_v61  ;;  %v1783_v0 = vpop.f32.mrb[47].mxu0  ;;  %2516 = vmatpush3.bf16.msra.mxu1 %v1891_v12 }
 0x2fd   :  { %v1784_v25 = vadd.f32 %v3114_v61, %v1783_v0  ;;  %2517 = vmatprep.subr.bf16.mxu1 %v2723_v1  ;;  %v1839_v28 = vmax.f32 %v1781_v19, 0.0  ;;  %v2713_v61 = vld [vmem:[%s3258_s7] sm:$0xff]  }
 0x2fe   :  { %v1842_v15 = vmax.f32 %v1792_v6, 0.0 }
 0x2ff   :  { %v1840_v32 = vmax.f32 %v1784_v25, 0.0 }
 0x300   :  { %v1894_v59 = vpack.c.bf16 %v1842_v15, %v1841_v22  ;;  %2518 = vmatpush3.bf16.msra.mxu1 %v1892_v49 }
 0x301   :  { %v1893_v33 = vpack.c.bf16 %v1840_v32, %v1839_v28  ;;  %2519 = vmatprep.subr.bf16.mxu1 %v2723_v1 }
 0x304   :  { %2520 = vmatpush3.bf16.msra.mxu1 %v1893_v33 }
 0x305   :  { %2521 = vmatprep.subr.bf16.mxu1 %v2723_v1 }
 0x308   :  { %2522 = vmatpush3.bf16.msra.mxu1 %v1894_v59 }
 0x309   :  { %2527 = vmatprep.subr.bf16.mxu1 %v2723_v1 }
 0x30b   :  { %2524 = vmatmul.mubr.msk.bf16.vlgmr.msra.gmra.mrb[4].mxu1 %vm2262_vm7, %v2725_v30  ;;  %v2717_v30 = vld [vmem:[%s3258_s7 + $0x20] sm:$0xff]  }
 0x30c   :  { %2543 = vmatprep.mubr.msk.bf16.mxu1 %vm2727_vm6, %v2723_v1  ;;  %2528 = vmatpush3.bf16.msra.mxu1 %v2713_v61 }
 0x30d   :  { %2529 = vmatprep.subr.bf16.mxu1 %v2723_v1 }
 0x310   :  { %2530 = vmatpush3.bf16.msra.mxu1 %v2714_v53 }
 0x311   :  { %2531 = vmatprep.subr.bf16.mxu1 %v2723_v1 }
 0x314   :  { %2532 = vmatpush3.bf16.msra.mxu1 %v2715_v16 }
 0x315   :  { %2533 = vmatprep.subr.bf16.mxu1 %v2723_v1 }
 0x318   :  { %2534 = vmatpush3.bf16.msra.mxu1 %v2716_v23 }
 0x319   :  { %2535 = vmatprep.subr.bf16.mxu1 %v2723_v1 }
 0x31c   :  { %2536 = vmatpush3.bf16.msra.mxu1 %v2717_v30 }
 0x31d   :  { %2537 = vmatprep.subr.bf16.mxu1 %v2723_v1 }
 0x320   :  { %2538 = vmatpush3.bf16.msra.mxu1 %v2718_v34 }
 0x321   :  { %2539 = vmatprep.subr.bf16.mxu1 %v2723_v1 }
 0x324   :  { %2540 = vmatpush3.bf16.msra.mxu1 %v2719_v35 }
 0x325   :  { %2541 = vmatprep.subr.bf16.mxu1 %v2723_v1 }
 0x328   :  { %2542 = vmatpush3.bf16.msra.mxu1 %v2720_v13 }
 0x33c   :  { %v1993_v39 = vpop.permute.xlu0 %1992 }
 0x33d   :  { %2721 = vrcp.f32 %v1993_v39 }
 0x347   :  { %v2722_v47 = vpop.eup %2721 }
 0x3be   :  { %v2355_v5 = vpop.f32.mrb[0].mxu1 }
 0x3bf   :  { %v2356_v2 = vpop.f32.mrb[1].mxu1 }
 0x3c0   :  { %v2357_v38 = vadd.f32 %v2356_v2, %v2355_v5  ;;  %v2358_v24 = vpop.f32.mrb[2].mxu1 }
 0x3c1   :  { %v2359_v8 = vpop.f32.mrb[3].mxu1 }
 0x3de   :  { %v1969_v43 = vpop.f32.mrb[4].mxu1 }
 0x3df   :  { %v1970_v17 = vadd.f32 %v2357_v38, %v1969_v43  ;;  %v2525_v7 = vpop.f32.mrb[5].mxu1 }
 0x3e0   :  { %v1972_v36 = vpop.f32.mrb[6].mxu1 }
 0x3e1   :  { %v1975_v50 = vadd.f32 %v1970_v17, %v1867_v57  ;;  %v2526_v1 = vpop.f32.mrb[7].mxu1 }
 0x3e3   :  { %1976 = vst [vmem:[#allocation3] sm:$0xff] %v1975_v50  ;;  %v1996_v51 = vmul.f32 %v2722_v47, %v1975_v50 }
 0x3e5   :  { %v1997_v56 = vpack.c.bf16 %v1996_v51, %v1996_v51 }
 0x3e7   :  { %2544 = vmatmul.mubr.bf16.vlgmr.msra.gmra.mrb[8].mxu1 %v1997_v56 }
 0x4ba   :  { %v2103_v54 = vpop.f32.mrb[8].mxu1 }
 0x4bb   :  { %v2104_v55 = vadd.f32 %v2264_v9, %v2103_v54  ;;  %v2545_v26 = vpop.f32.mrb[9].mxu1 }
 0x4bc   :  { %v2106_v27 = vpop.f32.mrb[10].mxu1 }
 0x4bd   :  { %v2109_v29 = vmax.f32 %v2104_v55, 0.0  ;;  %v2546_v14 = vpop.f32.mrb[11].mxu1 }
 0x4bf   :  { %v2117_v62 = vmul.f32 %v2273_v48, %v2109_v29 }
 0x4c1   :  { %2118 = vadd.xlane.f32.xlu1 %v2117_v62 }
 0x54e   :  { %v2119_v31 = vpop.xlane.xlu1 %2118 }
 0x54f   :  { %v2127_v10 = vadd.f32 %v2274_v18, %v2119_v31 }
 0x551   :  { %2129 = vst.msk [vmem:[%s3262_s11] sm:$0xff] %vm100_vm0, %v2127_v10 }

// kernel: _lambda_.2
= control target key start
LH: loop header
LB: loop body
LE: loop exit
PB: predicated region body
PF: predicated region fallthrough
CT: control target
= control target key end

     0   :  { %13 = vsyncpa [#allocation7], 0  ;;  %s2805_s24 = smov [#allocation6]   ;;  %s3243_s0 = inlined_call_operand.<no memory space> [shape: s32[1], index: 0, kind: input, shape index: {}]   ;;  %s3244_s1 = inlined_call_operand.<no memory space> [shape: s32[1], index: 1, kind: input, shape index: {}]   ;;  %s3245_s2 = inlined_call_operand.hbm [shape: bf16[384,384], index: 2, kind: input, shape index: {}]   ;;  %s3246_s3 = inlined_call_operand.vmem [shape: bf16[384,8], index: 3, kind: input, shape index: {}]   ;;  %s3247_s4 = inlined_call_operand.vmem [shape: bf16[8,128], index: 4, kind: input, shape index: {}]   ;;  %s3248_s5 = inlined_call_operand.vmem [shape: f32[1,128], index: 5, kind: input, shape index: {}]   ;;  %s3249_s6 = inlined_call_operand.vmem [shape: bf16[384,128], index: 6, kind: output, shape index: {}]  }
   0x1   :  { %s2255_s23 = smul.u32 192, %s3243_s0  ;;  %s24_s25 = sshll.u32 %s2805_s24, 4  ;;  %s25_s25 = int_to_ptr.vmem [resolvable:$true] %s24_s25 }
   0x2   :  { %s2781_s8 = scalar_lea.hbm %s3245_s2, 9216 }
   0x3   :  { %s23_s28 = scalar_lea.hbm %s3245_s2, %s2255_s23 }
   0x4   :  { %s2779_s29 = scalar_lea.hbm %s23_s28, 9216  ;;  %p2782_p1 = scmp.lt.u32.totalorder %s23_s28, %s3245_s2 }
   0x5   :  { %p2780_p0 = scmp.ne.s32.totalorder %s23_s28, %s2779_s29  ;;  %p2783_p2 = scmp.lt.u32.totalorder %s2781_s8, %s2779_s29 }
   0x6   :  { %p2785_p4 = scmp.lt.u32.totalorder %s2779_s29, %s23_s28 }
   0x7   :  { %p2784_p3 = por %p2783_p2, %p2782_p1 }
   0x9   :  { %p2786_p5 = por %p2785_p4, %p2784_p3 }
   0xb   :  { %p2787_p6 = pnand %p2786_p5, %p2780_p0 }
   0xd   :  { %2790 = shalt.err (!%p2787_p6)
}
   0xe   :  { %s2791_s11 = scalar_lea.vmem %s25_s25, 9216  ;;  %p2796_p8 = scmp.lt.s32.totalorder %s25_s25, %s25_s25 }
   0xf   :  { %p2792_p7 = scmp.ne.s32.totalorder %s25_s25, %s2791_s11  ;;  %p2797_p9 = scmp.lt.s32.totalorder %s2791_s11, %s2791_s11 }
  0x11   :  { %p2798_p10 = por %p2797_p9, %p2796_p8 }
  0x13   :  { %p2799_p11 = pnand %p2798_p10, %p2792_p7 }
  0x15   :  { %2802 = shalt.err (!%p2799_p11)
}
  0x16   :  { %s2806_s12 = smov 192   ;;  %s2807_s13 = smov 12  }
  0x17   :  { %30 = dma.hbm_to_vmem [thread:$0]  %s23_s28, 9216, %s25_s25, [#allocation7], %s2806_s12, %s2806_s12, %s2807_s13  }
  0x18   :  { %2803 = dma.done.wait [#allocation7], 9216  }
  0x19   :  { %2804 = vsyncadd [#allocation7], 4294958080  ;;  %s62_s15 = smul.u32 48, %s3243_s0  ;;  %vm75_vm0 = vcmask 64512   ;;  %v2808_v0 = vmov 0.0   ;;  %p2085_p13 = scmp.le.s32.totalorder %s3244_s1, 0 }
  0x1a   :  { %76 = vst.msk [vmem:[#allocation2] sm:$0xff] %vm75_vm0, %v2808_v0  ;;  %77 = vst.msk [vmem:[#allocation2 + $0x8] sm:$0xff] %vm75_vm0, %v2808_v0  ;;  %v2809_v2 = vmov (!%p2085_p13), 0   ;;  %v2677_v7 = vld [vmem:[#allocation6 + $0x4] ss:$12 sps:$4 sm:$0xff] (!%p2085_p13)  }
  0x1b   :  { %78 = vst.msk [vmem:[#allocation2 + $0x10] sm:$0xff] %vm75_vm0, %v2808_v0  ;;  %79 = vst.msk [vmem:[#allocation2 + $0x18] sm:$0xff] %vm75_vm0, %v2808_v0  ;;  %p63_p12 = scmp.lt.s32.totalorder %s62_s15, 47  ;;  %849 = vmatprep.subr.bf16.mxu0 (!%p2085_p13), %v2809_v2  ;;  %2618 = vmatprep.subr.bf16.mxu1 (!%p2085_p13), %v2809_v2  ;;  %v2680_v9 = vld [vmem:[#allocation6 + $0x1b4] ss:$12 sps:$4 sm:$0xff] (!%p2085_p13)  }
  0x1c   :  { %80 = vst.msk [vmem:[#allocation2 + $0x20] sm:$0xff] %vm75_vm0, %v2808_v0  ;;  %81 = vst.msk [vmem:[#allocation2 + $0x28] sm:$0xff] %vm75_vm0, %v2808_v0  ;;  %881 = vmatprep.mubr.bf16.mxu0 (!%p2085_p13), %v2677_v7  ;;  %1025 = vmatprep.mubr.bf16.mxu1 (!%p2085_p13), %v2680_v9  ;;  %v2675_v20 = vld [vmem:[#allocation6] ss:$12 sps:$4 sm:$0xff] (!%p2085_p13)   ;;  %v2678_v22 = vld [vmem:[#allocation6 + $0x1b0] ss:$12 sps:$4 sm:$0xff] (!%p2085_p13)  }
  0x1d   :  { %82 = vst.msk [vmem:[#allocation2 + $0x30] sm:$0xff] %vm75_vm0, %v2808_v0  ;;  %83 = vst.msk [vmem:[#allocation2 + $0x38] sm:$0xff] %vm75_vm0, %v2808_v0  ;;  %s3251_s15 = smov (!%p63_p12, %s62_s15), 47  ;;  %v2683_v24 = vld [vmem:[#allocation6 + $0x1c] ss:$12 sps:$4 sm:$0xff] (!%p2085_p13)  }
  0x1e   :  { %84 = vst.msk [vmem:[#allocation2 + $0x40] sm:$0xff] %vm75_vm0, %v2808_v0  ;;  %85 = vst.msk [vmem:[#allocation2 + $0x48] sm:$0xff] %vm75_vm0, %v2808_v0  ;;  %s2083_s20 = sshll.u32 %s3251_s15, 2  ;;  %v2685_v25 = vld [vmem:[#allocation6 + $0x1cc] ss:$12 sps:$4 sm:$0xff] (!%p2085_p13)  }
  0x1f   :  { %86 = vst.msk [vmem:[#allocation2 + $0x50] sm:$0xff] %vm75_vm0, %v2808_v0  ;;  %87 = vst.msk [vmem:[#allocation2 + $0x58] sm:$0xff] %vm75_vm0, %v2808_v0  ;;  %s2919_s23 = scalar_lea.vmem %s3246_s3, %s2083_s20  ;;  %v2687_v27 = vld [vmem:[#allocation6 + $0x18] ss:$12 sps:$4 sm:$0xff] (!%p2085_p13)   ;;  %v2688_v28 = vld [vmem:[#allocation6 + $0x1c8] ss:$12 sps:$4 sm:$0xff] (!%p2085_p13)  }
  0x20   :  { %88 = vst.msk [vmem:[#allocation2 + $0x60] sm:$0xff] %vm75_vm0, %v2808_v0  ;;  %89 = vst.msk [vmem:[#allocation2 + $0x68] sm:$0xff] %vm75_vm0, %v2808_v0  ;;  %v2659_v1 = vld [vmem:[%s2919_s23] sm:$0xff] (!%p2085_p13)   ;;  %v2660_v3 = vld [vmem:[%s2919_s23 + $0x8] sm:$0xff] (!%p2085_p13)  }
  0x21   :  { %90 = vst.msk [vmem:[#allocation2 + $0x70] sm:$0xff] %vm75_vm0, %v2808_v0  ;;  %91 = vst.msk [vmem:[#allocation2 + $0x78] sm:$0xff] %vm75_vm0, %v2808_v0  ;;  %850 = vmatpush1.bf16.msra.mxu0 (!%p2085_p13), %v2659_v1  ;;  %2634 = vmatpush1.bf16.msra.mxu1 (!%p2085_p13), %v2659_v1  ;;  %v2661_v4 = vld [vmem:[%s2919_s23 + $0x10] sm:$0xff] (!%p2085_p13)   ;;  %v2662_v5 = vld [vmem:[%s2919_s23 + $0x18] sm:$0xff] (!%p2085_p13)  }
  0x22   :  { %92 = vst.msk [vmem:[#allocation2 + $0x80] sm:$0xff] %vm75_vm0, %v2808_v0  ;;  %93 = vst.msk [vmem:[#allocation2 + $0x88] sm:$0xff] %vm75_vm0, %v2808_v0  ;;  %851 = vmatprep.subr.bf16.mxu0 (!%p2085_p13), %v2809_v2  ;;  %2619 = vmatprep.subr.bf16.mxu1 (!%p2085_p13), %v2809_v2  ;;  %v2663_v6 = vld [vmem:[%s2919_s23 + $0x20] sm:$0xff] (!%p2085_p13)   ;;  %v2664_v8 = vld [vmem:[%s2919_s23 + $0x28] sm:$0xff] (!%p2085_p13)  }
  0x23   :  { %94 = vst.msk [vmem:[#allocation2 + $0x90] sm:$0xff] %vm75_vm0, %v2808_v0  ;;  %95 = vst.msk [vmem:[#allocation2 + $0x98] sm:$0xff] %vm75_vm0, %v2808_v0  ;;  %v2665_v10 = vld [vmem:[%s2919_s23 + $0x30] sm:$0xff] (!%p2085_p13)   ;;  %v2666_v11 = vld [vmem:[%s2919_s23 + $0x38] sm:$0xff] (!%p2085_p13)  }
  0x24   :  { %96 = vst.msk [vmem:[#allocation2 + $0xa0] sm:$0xff] %vm75_vm0, %v2808_v0  ;;  %97 = vst.msk [vmem:[#allocation2 + $0xa8] sm:$0xff] %vm75_vm0, %v2808_v0  ;;  %v2667_v12 = vld [vmem:[%s2919_s23 + $0x40] sm:$0xff] (!%p2085_p13)   ;;  %v2668_v13 = vld [vmem:[%s2919_s23 + $0x48] sm:$0xff] (!%p2085_p13)  }
  0x25   :  { %98 = vst.msk [vmem:[#allocation2 + $0xb0] sm:$0xff] %vm75_vm0, %v2808_v0  ;;  %99 = vst.msk [vmem:[#allocation2 + $0xb8] sm:$0xff] %vm75_vm0, %v2808_v0  ;;  %852 = vmatpush1.bf16.msra.mxu0 (!%p2085_p13), %v2660_v3  ;;  %2635 = vmatpush1.bf16.msra.mxu1 (!%p2085_p13), %v2660_v3  ;;  %v2669_v14 = vld [vmem:[%s2919_s23 + $0x50] sm:$0xff] (!%p2085_p13)   ;;  %v2670_v15 = vld [vmem:[%s2919_s23 + $0x58] sm:$0xff] (!%p2085_p13)  }
  0x26   :  { %100 = vst.msk [vmem:[#allocation2 + $0xc0] sm:$0xff] %vm75_vm0, %v2808_v0  ;;  %101 = vst.msk [vmem:[#allocation2 + $0xc8] sm:$0xff] %vm75_vm0, %v2808_v0  ;;  %853 = vmatprep.subr.bf16.mxu0 (!%p2085_p13), %v2809_v2  ;;  %2620 = vmatprep.subr.bf16.mxu1 (!%p2085_p13), %v2809_v2  ;;  %v2671_v16 = vld [vmem:[%s2919_s23 + $0x60] sm:$0xff] (!%p2085_p13)   ;;  %v2672_v17 = vld [vmem:[%s2919_s23 + $0x68] sm:$0xff] (!%p2085_p13)  }
  0x27   :  { %102 = vst.msk [vmem:[#allocation2 + $0xd0] sm:$0xff] %vm75_vm0, %v2808_v0  ;;  %103 = vst.msk [vmem:[#allocation2 + $0xd8] sm:$0xff] %vm75_vm0, %v2808_v0  ;;  %v2673_v18 = vld [vmem:[%s2919_s23 + $0x70] sm:$0xff] (!%p2085_p13)   ;;  %v2674_v19 = vld [vmem:[%s2919_s23 + $0x78] sm:$0xff] (!%p2085_p13)  }
  0x28   :  { %104 = vst.msk [vmem:[#allocation2 + $0xe0] sm:$0xff] %vm75_vm0, %v2808_v0  ;;  %105 = vst.msk [vmem:[#allocation2 + $0xe8] sm:$0xff] %vm75_vm0, %v2808_v0  ;;  %v2681_v21 = vld [vmem:[%s2919_s23 + $0x80] sm:$0xff] (!%p2085_p13)   ;;  %v2682_v23 = vld [vmem:[%s2919_s23 + $0x88] sm:$0xff] (!%p2085_p13)  }
  0x29   :  { %106 = vst.msk [vmem:[#allocation2 + $0xf0] sm:$0xff] %vm75_vm0, %v2808_v0  ;;  %107 = vst.msk [vmem:[#allocation2 + $0xf8] sm:$0xff] %vm75_vm0, %v2808_v0  ;;  %854 = vmatpush1.bf16.msra.mxu0 (!%p2085_p13), %v2661_v4  ;;  %2636 = vmatpush1.bf16.msra.mxu1 (!%p2085_p13), %v2661_v4  ;;  %v2689_v26 = vld [vmem:[%s2919_s23 + $0x90] sm:$0xff] (!%p2085_p13)   ;;  %v2696_v31 = vld [vmem:[%s2919_s23 + $0x98] sm:$0xff] (!%p2085_p13)  }
  0x2a   :  { %108 = vst.msk [vmem:[#allocation2 + $0x100] sm:$0xff] %vm75_vm0, %v2808_v0  ;;  %109 = vst.msk [vmem:[#allocation2 + $0x108] sm:$0xff] %vm75_vm0, %v2808_v0  ;;  %855 = vmatprep.subr.bf16.mxu0 (!%p2085_p13), %v2809_v2  ;;  %2621 = vmatprep.subr.bf16.mxu1 (!%p2085_p13), %v2809_v2  ;;  %v2690_v29 = vld [vmem:[#allocation6 + $0x34] ss:$12 sps:$4 sm:$0xff] (!%p2085_p13)   ;;  %v2692_v30 = vld [vmem:[#allocation6 + $0x1e4] ss:$12 sps:$4 sm:$0xff] (!%p2085_p13)  }
  0x2b   :  { %110 = vst.msk [vmem:[#allocation2 + $0x110] sm:$0xff] %vm75_vm0, %v2808_v0  ;;  %111 = vst.msk [vmem:[#allocation2 + $0x118] sm:$0xff] %vm75_vm0, %v2808_v0  ;;  %128 = sbr.rel (%p2085_p13) target bundleno = 452 (0x1c4), region = 29  ;;  %v2703_v32 = vld [vmem:[%s2919_s23 + $0xa0] sm:$0xff] (!%p2085_p13)   ;;  %v2694_v33 = vld [vmem:[#allocation6 + $0x30] ss:$12 sps:$4 sm:$0xff] (!%p2085_p13)  }
  0x2c   :  { %112 = vst.msk [vmem:[#allocation2 + $0x120] sm:$0xff] %vm75_vm0, %v2808_v0  ;;  %113 = vst.msk [vmem:[#allocation2 + $0x128] sm:$0xff] %vm75_vm0, %v2808_v0  ;;  %v2695_v34 = vld [vmem:[#allocation6 + $0x1e0] ss:$12 sps:$4 sm:$0xff] (!%p2085_p13)   ;;  %v2699_v36 = vld [vmem:[#allocation6 + $0x1fc] ss:$12 sps:$4 sm:$0xff] (!%p2085_p13)  }
  0x2d   :  { %114 = vst.msk [vmem:[#allocation2 + $0x130] sm:$0xff] %vm75_vm0, %v2808_v0  ;;  %115 = vst.msk [vmem:[#allocation2 + $0x138] sm:$0xff] %vm75_vm0, %v2808_v0  ;;  %856 = vmatpush1.bf16.msra.mxu0 (!%p2085_p13), %v2662_v5  ;;  %2637 = vmatpush1.bf16.msra.mxu1 (!%p2085_p13), %v2662_v5  ;;  %v2697_v35 = vld [vmem:[#allocation6 + $0x4c] ss:$12 sps:$4 sm:$0xff] (!%p2085_p13)   ;;  %v2711_v38 = vld [vmem:[%s2919_s23 + $0xb0] sm:$0xff] (!%p2085_p13)  }
  0x2e   :  { %116 = vst.msk [vmem:[#allocation2 + $0x140] sm:$0xff] %vm75_vm0, %v2808_v0  ;;  %117 = vst.msk [vmem:[#allocation2 + $0x148] sm:$0xff] %vm75_vm0, %v2808_v0  ;;  %857 = vmatprep.subr.bf16.mxu0 (!%p2085_p13), %v2809_v2  ;;  %2622 = vmatprep.subr.bf16.mxu1 (!%p2085_p13), %v2809_v2  ;;  %v2704_v37 = vld [vmem:[%s2919_s23 + $0xa8] sm:$0xff] (!%p2085_p13)   ;;  %v2702_v40 = vld [vmem:[#allocation6 + $0x1f8] ss:$12 sps:$4 sm:$0xff] (!%p2085_p13)  }
  0x2f   :  { %118 = vst.msk [vmem:[#allocation2 + $0x150] sm:$0xff] %vm75_vm0, %v2808_v0  ;;  %119 = vst.msk [vmem:[#allocation2 + $0x158] sm:$0xff] %vm75_vm0, %v2808_v0  ;;  %v2701_v39 = vld [vmem:[#allocation6 + $0x48] ss:$12 sps:$4 sm:$0xff] (!%p2085_p13)   ;;  %v2705_v41 = vld [vmem:[#allocation6 + $0x64] ss:$12 sps:$4 sm:$0xff] (!%p2085_p13)  }
  0x30   :  { %120 = vst.msk [vmem:[#allocation2 + $0x160] sm:$0xff] %vm75_vm0, %v2808_v0  ;;  %121 = vst.msk [vmem:[#allocation2 + $0x168] sm:$0xff] %vm75_vm0, %v2808_v0  ;;  %v2707_v42 = vld [vmem:[#allocation6 + $0x214] ss:$12 sps:$4 sm:$0xff] (!%p2085_p13)   ;;  %v2718_v43 = vld [vmem:[%s2919_s23 + $0xb8] sm:$0xff] (!%p2085_p13)  }
  0x31   :  { %122 = vst.msk [vmem:[#allocation2 + $0x170] sm:$0xff] %vm75_vm0, %v2808_v0  ;;  %123 = vst.msk [vmem:[#allocation2 + $0x178] sm:$0xff] %vm75_vm0, %v2808_v0  ;;  %858 = vmatpush1.bf16.msra.mxu0 (!%p2085_p13), %v2663_v6  ;;  %2638 = vmatpush1.bf16.msra.mxu1 (!%p2085_p13), %v2663_v6  ;;  %v2709_v44 = vld [vmem:[#allocation6 + $0x60] ss:$12 sps:$4 sm:$0xff] (!%p2085_p13)   ;;  %v2710_v45 = vld [vmem:[#allocation6 + $0x210] ss:$12 sps:$4 sm:$0xff] (!%p2085_p13)  }
  0x32   :  { %859 = vmatprep.subr.bf16.mxu0 %v2809_v2  ;;  %2623 = vmatprep.subr.bf16.mxu1 %v2809_v2  ;;  %v2712_v46 = vld [vmem:[#allocation6 + $0x7c] ss:$12 sps:$4 sm:$0xff]   ;;  %v2714_v47 = vld [vmem:[#allocation6 + $0x22c] ss:$12 sps:$4 sm:$0xff]   ;;  %v2719_v50 = vld [vmem:[#allocation6 + $0x94] ss:$12 sps:$4 sm:$0xff]  }
  0x33   :  { %v2716_v48 = vld [vmem:[#allocation6 + $0x78] ss:$12 sps:$4 sm:$0xff]   ;;  %v2717_v49 = vld [vmem:[#allocation6 + $0x228] ss:$12 sps:$4 sm:$0xff]   ;;  %v2722_v52 = vld [vmem:[#allocation6 + $0x90] ss:$12 sps:$4 sm:$0xff]  }
  0x34   :  { %v2721_v51 = vld [vmem:[#allocation6 + $0x8] ss:$12 sps:$4 sm:$0xff]   ;;  %v2723_v53 = vld [vmem:[#allocation6 + $0x20] ss:$12 sps:$4 sm:$0xff]   ;;  %v2726_v55 = vld [vmem:[#allocation6 + $0x38] ss:$12 sps:$4 sm:$0xff]  }
  0x35   :  { %860 = vmatpush1.bf16.msra.mxu0 %v2664_v8  ;;  %2639 = vmatpush1.bf16.msra.mxu1 %v2664_v8  ;;  %v2724_v54 = vld [vmem:[#allocation6 + $0xac] ss:$12 sps:$4 sm:$0xff]   ;;  %v2727_v56 = vld [vmem:[#allocation6 + $0xa8] ss:$12 sps:$4 sm:$0xff]   ;;  %v2728_v57 = vld [vmem:[#allocation6 + $0x50] ss:$12 sps:$4 sm:$0xff]  }
  0x36   :  { %861 = vmatprep.subr.bf16.mxu0 %v2809_v2  ;;  %2624 = vmatprep.subr.bf16.mxu1 %v2809_v2  ;;  %v2729_v58 = vld [vmem:[#allocation6 + $0xc4] ss:$12 sps:$4 sm:$0xff]   ;;  %v2731_v59 = vld [vmem:[#allocation6 + $0x68] ss:$12 sps:$4 sm:$0xff]   ;;  %v2732_v60 = vld [vmem:[#allocation6 + $0xc0] ss:$12 sps:$4 sm:$0xff]  }
  0x37   :  { %v2733_v61 = vld [vmem:[#allocation6 + $0x80] ss:$12 sps:$4 sm:$0xff]   ;;  %v2734_v62 = vld [vmem:[#allocation6 + $0xdc] ss:$12 sps:$4 sm:$0xff]   ;;  %v2736_v63 = vld [vmem:[#allocation6 + $0x98] ss:$12 sps:$4 sm:$0xff]  }
  0x38   :  { %v2737_v0 = vld [vmem:[#allocation6 + $0xd8] ss:$12 sps:$4 sm:$0xff]   ;;  %v2738_v1 = vld [vmem:[#allocation6 + $0xb0] ss:$12 sps:$4 sm:$0xff]   ;;  %v2741_v3 = vld [vmem:[#allocation6 + $0xc8] ss:$12 sps:$4 sm:$0xff]  }
  0x39   :  { %862 = vmatpush1.bf16.msra.mxu0 %v2665_v10  ;;  %2640 = vmatpush1.bf16.msra.mxu1 %v2665_v10  ;;  %v2742_v4 = vld [vmem:[#allocation6 + $0xf0] ss:$12 sps:$4 sm:$0xff]   ;;  %v2743_v5 = vld [vmem:[#allocation6 + $0xe0] ss:$12 sps:$4 sm:$0xff]   ;;  %v2746_v7 = vld [vmem:[#allocation6 + $0xf8] ss:$12 sps:$4 sm:$0xff]  }
  0x3a   :  { %863 = vmatprep.subr.bf16.mxu0 %v2809_v2  ;;  %2625 = vmatprep.subr.bf16.mxu1 %v2809_v2  ;;  %v2744_v6 = vld [vmem:[#allocation6 + $0x10c] ss:$12 sps:$4 sm:$0xff]   ;;  %v2747_v8 = vld [vmem:[#allocation6 + $0x108] ss:$12 sps:$4 sm:$0xff]   ;;  %v2748_v9 = vld [vmem:[#allocation6 + $0x110] ss:$12 sps:$4 sm:$0xff]  }
  0x3b   :  { %v2749_v10 = vld [vmem:[#allocation6 + $0x124] ss:$12 sps:$4 sm:$0xff]  }
  0x3d   :  { %864 = vmatpush1.bf16.msra.mxu0 %v2666_v11  ;;  %2641 = vmatpush1.bf16.msra.mxu1 %v2666_v11  ;;  %v2751_v11 = vld [vmem:[#allocation6 + $0x128] ss:$12 sps:$4 sm:$0xff]  }
  0x3e   :  { %865 = vmatprep.subr.bf16.mxu0 %v2809_v2  ;;  %2626 = vmatprep.subr.bf16.mxu1 %v2809_v2 }
  0x41   :  { %866 = vmatpush1.bf16.msra.mxu0 %v2667_v12  ;;  %2642 = vmatpush1.bf16.msra.mxu1 %v2667_v12  ;;  %v2752_v12 = vld [vmem:[#allocation6 + $0x120] ss:$12 sps:$4 sm:$0xff]  }
  0x42   :  { %867 = vmatprep.subr.bf16.mxu0 %v2809_v2  ;;  %2627 = vmatprep.subr.bf16.mxu1 %v2809_v2 }
  0x45   :  { %868 = vmatpush1.bf16.msra.mxu0 %v2668_v13  ;;  %2643 = vmatpush1.bf16.msra.mxu1 %v2668_v13  ;;  %v2753_v13 = vld [vmem:[#allocation6 + $0x140] ss:$12 sps:$4 sm:$0xff]  }
  0x46   :  { %869 = vmatprep.subr.bf16.mxu0 %v2809_v2  ;;  %2628 = vmatprep.subr.bf16.mxu1 %v2809_v2 }
  0x49   :  { %870 = vmatpush1.bf16.msra.mxu0 %v2669_v14  ;;  %2644 = vmatpush1.bf16.msra.mxu1 %v2669_v14  ;;  %v2754_v14 = vld [vmem:[#allocation6 + $0x13c] ss:$12 sps:$4 sm:$0xff]  }
  0x4a   :  { %871 = vmatprep.subr.bf16.mxu0 %v2809_v2  ;;  %2629 = vmatprep.subr.bf16.mxu1 %v2809_v2 }
  0x4d   :  { %872 = vmatpush1.bf16.msra.mxu0 %v2670_v15  ;;  %2645 = vmatpush1.bf16.msra.mxu1 %v2670_v15  ;;  %v2756_v15 = vld [vmem:[#allocation6 + $0x158] ss:$12 sps:$4 sm:$0xff]  }
  0x4e   :  { %873 = vmatprep.subr.bf16.mxu0 %v2809_v2  ;;  %2630 = vmatprep.subr.bf16.mxu1 %v2809_v2 }
  0x51   :  { %874 = vmatpush1.bf16.msra.mxu0 %v2671_v16  ;;  %2646 = vmatpush1.bf16.msra.mxu1 %v2671_v16  ;;  %v2757_v16 = vld [vmem:[#allocation6 + $0x138] ss:$12 sps:$4 sm:$0xff]  }
  0x52   :  { %875 = vmatprep.subr.bf16.mxu0 %v2809_v2  ;;  %2631 = vmatprep.subr.bf16.mxu1 %v2809_v2 }
  0x55   :  { %876 = vmatpush1.bf16.msra.mxu0 %v2672_v17  ;;  %2647 = vmatpush1.bf16.msra.mxu1 %v2672_v17  ;;  %v2758_v17 = vld [vmem:[#allocation6 + $0x170] ss:$12 sps:$4 sm:$0xff]  }
  0x56   :  { %877 = vmatprep.subr.bf16.mxu0 %v2809_v2  ;;  %2632 = vmatprep.subr.bf16.mxu1 %v2809_v2 }
  0x59   :  { %878 = vmatpush1.bf16.msra.mxu0 %v2673_v18  ;;  %2648 = vmatpush1.bf16.msra.mxu1 %v2673_v18  ;;  %v2759_v18 = vld [vmem:[#allocation6 + $0x154] ss:$12 sps:$4 sm:$0xff]  }
  0x5a   :  { %879 = vmatprep.subr.bf16.mxu0 %v2809_v2  ;;  %2633 = vmatprep.subr.bf16.mxu1 %v2809_v2  ;;  %v2739_v2 = vld [vmem:[#allocation6 + $0xf4] ss:$12 sps:$4 sm:$0xff]  }
  0x5d   :  { %880 = vmatpush1.bf16.msra.mxu0 %v2674_v19  ;;  %2649 = vmatpush1.bf16.msra.mxu1 %v2674_v19  ;;  %v2761_v19 = vld [vmem:[#allocation6 + $0x188] ss:$12 sps:$4 sm:$0xff]  }
  0x5e   :  { %2504 = vmatprep.subr.bf16.mxu1 %v2681_v21 }
  0x60   :  { %882 = vmatmul.mubr.bf16.vlgmr.msra.gmra.mrb[0].mxu0 %v2675_v20  ;;  %1026 = vmatmul.mubr.bf16.vlgmr.msra.gmra.mrb[0].mxu1 %v2678_v22  ;;  %v2762_v20 = vld [vmem:[#allocation6 + $0x150] ss:$12 sps:$4 sm:$0xff]   ;;  %v2764_v22 = vld [vmem:[#allocation6 + $0x16c] ss:$12 sps:$4 sm:$0xff]  }
  0x61   :  { %2505 = vmatpush3.bf16.msra.mxu1 %v2681_v21  ;;  %889 = vmatprep.mubr.bf16.mxu0 %v2683_v24  ;;  %v2763_v21 = vld [vmem:[#allocation6 + $0x1a0] ss:$12 sps:$4 sm:$0xff]   ;;  %v2767_v24 = vld [vmem:[#allocation6 + $0x168] ss:$12 sps:$4 sm:$0xff]  }
  0x62   :  { %2506 = vmatprep.subr.bf16.mxu1 %v2682_v23  ;;  %1033 = vmatprep.mubr.bf16.mxu1 %v2685_v25  ;;  %v2768_v25 = vld [vmem:[#allocation6 + $0x1d0] ss:$12 sps:$4 sm:$0xff]  }
  0x65   :  { %2507 = vmatpush3.bf16.msra.mxu1 %v2682_v23  ;;  %v2766_v23 = vld [vmem:[#allocation6 + $0x1b8] ss:$12 sps:$4 sm:$0xff]  }
  0x66   :  { %2508 = vmatprep.subr.bf16.mxu1 %v2689_v26 }
  0x68   :  { %890 = vmatmul.mubr.bf16.gmra.mrb[4].mxu0 %v2687_v27  ;;  %1034 = vmatmul.mubr.bf16.gmra.mrb[4].mxu1 %v2688_v28  ;;  %v2771_v27 = vld [vmem:[#allocation6 + $0x1e8] ss:$12 sps:$4 sm:$0xff]   ;;  %v2772_v28 = vld [vmem:[#allocation6 + $0x180] ss:$12 sps:$4 sm:$0xff]  }
  0x69   :  { %2509 = vmatpush3.bf16.msra.mxu1 %v2689_v26  ;;  %897 = vmatprep.mubr.bf16.mxu0 %v2690_v29  ;;  %v2769_v26 = vld [vmem:[#allocation6 + $0x184] ss:$12 sps:$4 sm:$0xff]   ;;  %v2773_v29 = vld [vmem:[#allocation6 + $0x200] ss:$12 sps:$4 sm:$0xff]  }
  0x6a   :  { %1041 = vmatprep.mubr.bf16.mxu1 %v2692_v30  ;;  %2510 = vmatprep.subr.bf16.mxu1 %v2696_v31  ;;  %v2774_v30 = vld [vmem:[#allocation6 + $0x19c] ss:$12 sps:$4 sm:$0xff]  }
  0x6d   :  { %2511 = vmatpush3.bf16.msra.mxu1 %v2696_v31  ;;  %v2776_v31 = vld [vmem:[#allocation6 + $0x218] ss:$12 sps:$4 sm:$0xff]  }
  0x6e   :  { %2512 = vmatprep.subr.bf16.mxu1 %v2703_v32 }
  0x70   :  { %898 = vmatmul.mubr.bf16.gmra.mrb[8].mxu0 %v2694_v33  ;;  %1042 = vmatmul.mubr.bf16.gmra.mrb[8].mxu1 %v2695_v34  ;;  %v2778_v33 = vld [vmem:[#allocation6 + $0x230] ss:$12 sps:$4 sm:$0xff]  }
  0x71   :  { %905 = vmatprep.mubr.bf16.mxu0 %v2697_v35  ;;  %1049 = vmatprep.mubr.bf16.mxu1 %v2699_v36 }
  0x72   :  { %2513 = vmatpush3.bf16.msra.mxu1 %v2703_v32  ;;  %v2777_v32 = vld [vmem:[#allocation6 + $0x198] ss:$12 sps:$4 sm:$0xff]  }
  0x73   :  { %2514 = vmatprep.subr.bf16.mxu1 %v2704_v37 }
  0x76   :  { %2515 = vmatpush3.bf16.msra.mxu1 %v2704_v37 }
  0x77   :  { %2516 = vmatprep.subr.bf16.mxu1 %v2711_v38 }
  0x78   :  { %906 = vmatmul.mubr.bf16.gmra.mrb[12].mxu0 %v2701_v39  ;;  %1050 = vmatmul.mubr.bf16.gmra.mrb[12].mxu1 %v2702_v40 }
  0x79   :  { %913 = vmatprep.mubr.bf16.mxu0 %v2705_v41  ;;  %1057 = vmatprep.mubr.bf16.mxu1 %v2707_v42 }
  0x7a   :  { %2517 = vmatpush3.bf16.msra.mxu1 %v2711_v38 }
  0x7b   :  { %2518 = vmatprep.subr.bf16.mxu1 %v2718_v43 }
  0x7e   :  { %2519 = vmatpush3.bf16.msra.mxu1 %v2718_v43 }
  0x80   :  { %914 = vmatmul.mubr.bf16.gmra.mrb[16].mxu0 %v2709_v44  ;;  %1058 = vmatmul.mubr.bf16.gmra.mrb[16].mxu1 %v2710_v45 }
  0x81   :  { %921 = vmatprep.mubr.bf16.mxu0 %v2712_v46  ;;  %1065 = vmatprep.mubr.bf16.mxu1 %v2714_v47 }
  0x88   :  { %922 = vmatmul.mubr.bf16.gmra.mrb[20].mxu0 %v2716_v48  ;;  %1066 = vmatmul.mubr.bf16.gmra.mrb[20].mxu1 %v2717_v49 }
  0x89   :  { %929 = vmatprep.mubr.bf16.mxu0 %v2719_v50  ;;  %2520 = vmatprep.mubr.bf16.mxu1 %v2721_v51 }
  0x90   :  { %930 = vmatmul.mubr.bf16.gmra.mrb[24].mxu0 %v2722_v52  ;;  %2521 = vmatmul.mubr.bf16.vlgmr.msra.gmra.mrb[24].mxu1 %v2723_v53 }
  0x91   :  { %937 = vmatprep.mubr.bf16.mxu0 %v2724_v54  ;;  %2524 = vmatprep.mubr.bf16.mxu1 %v2726_v55 }
  0x98   :  { %938 = vmatmul.mubr.bf16.gmra.mrb[28].mxu0 %v2727_v56  ;;  %2525 = vmatmul.mubr.bf16.gmra.mrb[28].mxu1 %v2728_v57 }
  0x99   :  { %945 = vmatprep.mubr.bf16.mxu0 %v2729_v58  ;;  %2528 = vmatprep.mubr.bf16.mxu1 %v2731_v59 }
  0xa0   :  { %946 = vmatmul.mubr.bf16.gmra.mrb[32].mxu0 %v2732_v60  ;;  %2529 = vmatmul.mubr.bf16.gmra.mrb[32].mxu1 %v2733_v61 }
  0xa1   :  { %953 = vmatprep.mubr.bf16.mxu0 %v2734_v62  ;;  %2532 = vmatprep.mubr.bf16.mxu1 %v2736_v63 }
  0xa8   :  { %954 = vmatmul.mubr.bf16.gmra.mrb[36].mxu0 %v2737_v0  ;;  %2533 = vmatmul.mubr.bf16.gmra.mrb[36].mxu1 %v2738_v1 }
  0xa9   :  { %961 = vmatprep.mubr.bf16.mxu0 %v2739_v2  ;;  %2536 = vmatprep.mubr.bf16.mxu1 %v2741_v3 }
  0xb0   :  { %962 = vmatmul.mubr.bf16.gmra.mrb[40].mxu0 %v2742_v4  ;;  %2537 = vmatmul.mubr.bf16.gmra.mrb[40].mxu1 %v2743_v5 }
  0xb1   :  { %969 = vmatprep.mubr.bf16.mxu0 %v2744_v6  ;;  %2540 = vmatprep.mubr.bf16.mxu1 %v2746_v7 }
  0xb8   :  { %970 = vmatmul.mubr.bf16.gmra.mrb[44].mxu0 %v2747_v8  ;;  %2541 = vmatmul.mubr.bf16.gmra.mrb[44].mxu1 %v2748_v9 }
  0xb9   :  { %977 = vmatprep.mubr.bf16.mxu0 %v2749_v10  ;;  %2544 = vmatprep.mubr.bf16.mxu1 %v2751_v11 }
  0xc0   :  { %978 = vmatmul.mubr.bf16.gmra.mrb[48].mxu0 %v2752_v12  ;;  %2545 = vmatmul.mubr.bf16.gmra.mrb[48].mxu1 %v2753_v13 }
  0xc1   :  { %985 = vmatprep.mubr.bf16.mxu0 %v2754_v14  ;;  %2548 = vmatprep.mubr.bf16.mxu1 %v2756_v15 }
  0xc8   :  { %986 = vmatmul.mubr.bf16.gmra.mrb[52].mxu0 %v2757_v16  ;;  %2549 = vmatmul.mubr.bf16.gmra.mrb[52].mxu1 %v2758_v17 }
  0xc9   :  { %993 = vmatprep.mubr.bf16.mxu0 %v2759_v18  ;;  %2552 = vmatprep.mubr.bf16.mxu1 %v2761_v19  ;;  %v131_v19 = vld [vmem:[#allocation2 + $0x10] sm:$0xff] }
  0xd0   :  { %994 = vmatmul.mubr.bf16.gmra.mrb[56].mxu0 %v2762_v20  ;;  %2553 = vmatmul.mubr.bf16.gmra.mrb[56].mxu1 %v2763_v21 }
  0xd1   :  { %1001 = vmatprep.mubr.bf16.mxu0 %v2764_v22  ;;  %2556 = vmatprep.mubr.bf16.mxu1 %v2766_v23  ;;  %v129_v23 = vld [vmem:[#allocation2] sm:$0xff] }
  0xd8   :  { %1002 = vmatmul.mubr.bf16.gmra.mrb[60].mxu0 %v2767_v24  ;;  %2557 = vmatmul.mubr.bf16.gmra.mrb[60].mxu1 %v2768_v25 }
  0xd9   :  { %1009 = vmatprep.mubr.bf16.mxu0 %v2769_v26  ;;  %2560 = vmatprep.mubr.bf16.mxu1 %v2771_v27  ;;  %v132_v27 = vld [vmem:[#allocation2 + $0x18] sm:$0xff] }
  0xe0   :  { %1010 = vmatmul.mubr.bf16.gmra.mrb[64].mxu0 %v2772_v28  ;;  %2561 = vmatmul.mubr.bf16.gmra.mrb[64].mxu1 %v2773_v29 }
  0xe1   :  { %1017 = vmatprep.mubr.bf16.mxu0 %v2774_v30  ;;  %2564 = vmatprep.mubr.bf16.mxu1 %v2776_v31 }
  0xe8   :  { %1018 = vmatmul.mubr.bf16.gmra.mrb[68].mxu0 %v2777_v32  ;;  %2565 = vmatmul.mubr.bf16.gmra.mrb[68].mxu1 %v2778_v33  ;;  %v130_v32 = vld [vmem:[#allocation2 + $0x8] sm:$0xff] }
 0x133   :  { %v883_v34 = vpop.f32.mrb[0].mxu0  ;;  %v2980_v35 = vpop.f32.mrb[0].mxu1 }
 0x134   :  { %v885_v36 = vpop.f32.mrb[1].mxu0  ;;  %v1029_v37 = vpop.f32.mrb[1].mxu1 }
 0x135   :  { %v886_v38 = vpop.f32.mrb[2].mxu0  ;;  %v2982_v39 = vpop.f32.mrb[2].mxu1 }
 0x136   :  { %v888_v40 = vpop.f32.mrb[3].mxu0  ;;  %v1032_v41 = vpop.f32.mrb[3].mxu1 }
 0x13b   :  { %v891_v42 = vpop.f32.mrb[4].mxu0  ;;  %v2984_v43 = vpop.f32.mrb[4].mxu1 }
 0x13c   :  { %v893_v44 = vpop.f32.mrb[5].mxu0  ;;  %v1037_v45 = vpop.f32.mrb[5].mxu1 }
 0x13d   :  { %v894_v46 = vpop.f32.mrb[6].mxu0  ;;  %v2986_v47 = vpop.f32.mrb[6].mxu1 }
 0x13e   :  { %v896_v48 = vpop.f32.mrb[7].mxu0  ;;  %v1040_v49 = vpop.f32.mrb[7].mxu1 }
 0x13f   :  { %v133_v48 = vld [vmem:[#allocation2 + $0x20] sm:$0xff] }
 0x143   :  { %v2988_v50 = vpop.f32.mrb[8].mxu0  ;;  %v2990_v51 = vpop.f32.mrb[8].mxu1 }
 0x144   :  { %v901_v52 = vpop.f32.mrb[9].mxu0  ;;  %v1045_v53 = vpop.f32.mrb[9].mxu1 }
 0x145   :  { %v2992_v54 = vpop.f32.mrb[10].mxu0  ;;  %v2994_v55 = vpop.f32.mrb[10].mxu1  ;;  %v136_v53 = vld [vmem:[#allocation2 + $0x38] sm:$0xff] }
 0x146   :  { %v904_v56 = vpop.f32.mrb[11].mxu0  ;;  %v1048_v57 = vpop.f32.mrb[11].mxu1 }
 0x14b   :  { %v907_v58 = vpop.f32.mrb[12].mxu0  ;;  %v2996_v59 = vpop.f32.mrb[12].mxu1 }
 0x14c   :  { %v909_v60 = vpop.f32.mrb[13].mxu0  ;;  %v1053_v61 = vpop.f32.mrb[13].mxu1 }
 0x14d   :  { %v910_v62 = vpop.f32.mrb[14].mxu0  ;;  %v2998_v63 = vpop.f32.mrb[14].mxu1 }
 0x14e   :  { %v912_v0 = vpop.f32.mrb[15].mxu0  ;;  %v1056_v1 = vpop.f32.mrb[15].mxu1 }
 0x14f   :  { %v134_v0 = vld [vmem:[#allocation2 + $0x28] sm:$0xff] }
 0x153   :  { %v3000_v2 = vpop.f32.mrb[16].mxu0  ;;  %v3002_v3 = vpop.f32.mrb[16].mxu1 }
 0x154   :  { %v917_v4 = vpop.f32.mrb[17].mxu0  ;;  %v1061_v5 = vpop.f32.mrb[17].mxu1 }
 0x155   :  { %v3004_v6 = vpop.f32.mrb[18].mxu0  ;;  %v3006_v7 = vpop.f32.mrb[18].mxu1 }
 0x156   :  { %v920_v8 = vpop.f32.mrb[19].mxu0  ;;  %v1064_v9 = vpop.f32.mrb[19].mxu1 }
 0x157   :  { %v139_v9 = vld [vmem:[#allocation2 + $0x50] sm:$0xff] }
 0x15b   :  { %v923_v10 = vpop.f32.mrb[20].mxu0  ;;  %v3008_v11 = vpop.f32.mrb[20].mxu1 }
 0x15c   :  { %v925_v12 = vpop.f32.mrb[21].mxu0  ;;  %v1069_v13 = vpop.f32.mrb[21].mxu1 }
 0x15d   :  { %v3010_v14 = vpop.f32.mrb[22].mxu0  ;;  %v3012_v15 = vpop.f32.mrb[22].mxu1 }
 0x15e   :  { %v928_v16 = vpop.f32.mrb[23].mxu0  ;;  %v1072_v17 = vpop.f32.mrb[23].mxu1 }
 0x15f   :  { %v137_v16 = vld [vmem:[#allocation2 + $0x40] sm:$0xff] }
 0x163   :  { %v3014_v18 = vpop.f32.mrb[24].mxu0  ;;  %v2522_v20 = vpop.f32.mrb[24].mxu1 }
 0x164   :  { %v1117_v21 = vadd.f32 %v2522_v20, %v891_v42  ;;  %v933_v22 = vpop.f32.mrb[25].mxu0  ;;  %v1108_v24 = vpop.f32.mrb[25].mxu1  ;;  %v135_v42 = vld [vmem:[#allocation2 + $0x30] sm:$0xff]  ;;  %v140_v20 = vld [vmem:[#allocation2 + $0x58] sm:$0xff] }
 0x165   :  { %v1109_v25 = vadd.f32 %v1108_v24, %v883_v34  ;;  %v3016_v26 = vpop.f32.mrb[26].mxu0  ;;  %v2523_v28 = vpop.f32.mrb[26].mxu1 }
 0x166   :  { %v1301_v29 = vadd.f32 %v1117_v21, %v131_v19  ;;  %v1120_v30 = vadd.f32 %v2523_v28, %v894_v46  ;;  %v936_v31 = vpop.f32.mrb[27].mxu0  ;;  %v1111_v33 = vpop.f32.mrb[27].mxu1 }
 0x167   :  { %v1299_v36 = vadd.f32 %v1109_v25, %v129_v23  ;;  %v1112_v37 = vadd.f32 %v1111_v33, %v886_v38  ;;  %v138_v25 = vld [vmem:[#allocation2 + $0x48] sm:$0xff]  ;;  %v143_v31 = vld [vmem:[#allocation2 + $0x70] sm:$0xff] }
 0x168   :  { %1350 = vst.msk [vmem:[#allocation2 + $0x10] sm:$0xff] %vm75_vm0, %v1301_v29  ;;  %v1302_v40 = vadd.f32 %v1120_v30, %v132_v27 }
 0x169   :  { %1348 = vst.msk [vmem:[#allocation2] sm:$0xff] %vm75_vm0, %v1299_v36  ;;  %v1300_v41 = vadd.f32 %v1112_v37, %v130_v32  ;;  %v141_v36 = vld [vmem:[#allocation2 + $0x60] sm:$0xff] }
 0x16a   :  { %1351 = vst.msk [vmem:[#allocation2 + $0x18] sm:$0xff] %vm75_vm0, %v1302_v40 }
 0x16b   :  { %1349 = vst.msk [vmem:[#allocation2 + $0x8] sm:$0xff] %vm75_vm0, %v1300_v41  ;;  %v939_v34 = vpop.f32.mrb[28].mxu0  ;;  %v2526_v44 = vpop.f32.mrb[28].mxu1  ;;  %v144_v41 = vld [vmem:[#allocation2 + $0x78] sm:$0xff] }
 0x16c   :  { %v1133_v45 = vadd.f32 %v2526_v44, %v907_v58  ;;  %v941_v46 = vpop.f32.mrb[29].mxu0  ;;  %v1124_v49 = vpop.f32.mrb[29].mxu1 }
 0x16d   :  { %v1125_v52 = vadd.f32 %v1124_v49, %v2988_v50  ;;  %v942_v38 = vpop.f32.mrb[30].mxu0  ;;  %v2527_v56 = vpop.f32.mrb[30].mxu1 }
 0x16e   :  { %v1305_v57 = vadd.f32 %v1133_v45, %v135_v42  ;;  %v1136_v60 = vadd.f32 %v2527_v56, %v910_v62  ;;  %v944_v61 = vpop.f32.mrb[31].mxu0  ;;  %v1127_v1 = vpop.f32.mrb[31].mxu1 }
 0x16f   :  { %v1303_v4 = vadd.f32 %v1125_v52, %v133_v48  ;;  %v1128_v5 = vadd.f32 %v1127_v1, %v2992_v54  ;;  %v142_v48 = vld [vmem:[#allocation2 + $0x68] sm:$0xff] }
 0x170   :  { %1354 = vst.msk [vmem:[#allocation2 + $0x30] sm:$0xff] %vm75_vm0, %v1305_v57  ;;  %v1306_v8 = vadd.f32 %v1136_v60, %v136_v53  ;;  %v147_v57 = vld [vmem:[#allocation2 + $0x90] sm:$0xff] }
 0x171   :  { %1352 = vst.msk [vmem:[#allocation2 + $0x20] sm:$0xff] %vm75_vm0, %v1303_v4  ;;  %v1304_v58 = vadd.f32 %v1128_v5, %v134_v0  ;;  %v145_v0 = vld [vmem:[#allocation2 + $0x80] sm:$0xff] }
 0x172   :  { %1355 = vst.msk [vmem:[#allocation2 + $0x38] sm:$0xff] %vm75_vm0, %v1306_v8 }
 0x173   :  { %1353 = vst.msk [vmem:[#allocation2 + $0x28] sm:$0xff] %vm75_vm0, %v1304_v58  ;;  %v947_v50 = vpop.f32.mrb[32].mxu0  ;;  %v2530_v12 = vpop.f32.mrb[32].mxu1 }
 0x174   :  { %v1149_v62 = vadd.f32 %v2530_v12, %v923_v10  ;;  %v949_v13 = vpop.f32.mrb[33].mxu0  ;;  %v1140_v17 = vpop.f32.mrb[33].mxu1 }
 0x175   :  { %v1141_v19 = vadd.f32 %v1140_v17, %v3000_v2  ;;  %v950_v54 = vpop.f32.mrb[34].mxu0  ;;  %v2531_v21 = vpop.f32.mrb[34].mxu1 }
 0x176   :  { %v1309_v22 = vadd.f32 %v1149_v62, %v139_v9  ;;  %v1152_v23 = vadd.f32 %v2531_v21, %v3010_v14  ;;  %v952_v24 = vpop.f32.mrb[35].mxu0  ;;  %v1143_v27 = vpop.f32.mrb[35].mxu1  ;;  %v146_v62 = vld [vmem:[#allocation2 + $0x88] sm:$0xff]  ;;  %v151_v21 = vld [vmem:[#allocation2 + $0xb0] sm:$0xff] }
 0x177   :  { %v1307_v28 = vadd.f32 %v1141_v19, %v137_v16  ;;  %v1144_v29 = vadd.f32 %v1143_v27, %v3004_v6 }
 0x178   :  { %1358 = vst.msk [vmem:[#allocation2 + $0x50] sm:$0xff] %vm75_vm0, %v1309_v22  ;;  %v1310_v10 = vadd.f32 %v1152_v23, %v140_v20 }
 0x179   :  { %1356 = vst.msk [vmem:[#allocation2 + $0x40] sm:$0xff] %vm75_vm0, %v1307_v28  ;;  %v1308_v30 = vadd.f32 %v1144_v29, %v138_v25  ;;  %v149_v25 = vld [vmem:[#allocation2 + $0xa0] sm:$0xff] }
 0x17a   :  { %1359 = vst.msk [vmem:[#allocation2 + $0x58] sm:$0xff] %vm75_vm0, %v1310_v10 }
 0x17b   :  { %1357 = vst.msk [vmem:[#allocation2 + $0x48] sm:$0xff] %vm75_vm0, %v1308_v30  ;;  %v955_v2 = vpop.f32.mrb[36].mxu0  ;;  %v2534_v32 = vpop.f32.mrb[36].mxu1 }
 0x17c   :  { %v1165_v14 = vadd.f32 %v2534_v32, %v939_v34  ;;  %v957_v33 = vpop.f32.mrb[37].mxu0  ;;  %v1156_v37 = vpop.f32.mrb[37].mxu1  ;;  %v150_v32 = vld [vmem:[#allocation2 + $0xa8] sm:$0xff] }
 0x17d   :  { %v1157_v40 = vadd.f32 %v1156_v37, %v3014_v18  ;;  %v958_v6 = vpop.f32.mrb[38].mxu0  ;;  %v2535_v42 = vpop.f32.mrb[38].mxu1 }
 0x17e   :  { %v1313_v44 = vadd.f32 %v1165_v14, %v143_v31  ;;  %v1168_v45 = vadd.f32 %v2535_v42, %v942_v38  ;;  %v960_v46 = vpop.f32.mrb[39].mxu0  ;;  %v1159_v49 = vpop.f32.mrb[39].mxu1 }
 0x17f   :  { %v1311_v52 = vadd.f32 %v1157_v40, %v141_v36  ;;  %v1160_v53 = vadd.f32 %v1159_v49, %v3016_v26  ;;  %v148_v26 = vld [vmem:[#allocation2 + $0x98] sm:$0xff] }
 0x180   :  { %1362 = vst.msk [vmem:[#allocation2 + $0x70] sm:$0xff] %vm75_vm0, %v1313_v44  ;;  %v1314_v56 = vadd.f32 %v1168_v45, %v144_v41  ;;  %v153_v44 = vld [vmem:[#allocation2 + $0xc0] sm:$0xff] }
 0x181   :  { %1360 = vst.msk [vmem:[#allocation2 + $0x60] sm:$0xff] %vm75_vm0, %v1311_v52  ;;  %v1312_v34 = vadd.f32 %v1160_v53, %v142_v48  ;;  %v154_v53 = vld [vmem:[#allocation2 + $0xc8] sm:$0xff] }
 0x182   :  { %1363 = vst.msk [vmem:[#allocation2 + $0x78] sm:$0xff] %vm75_vm0, %v1314_v56 }
 0x183   :  { %1361 = vst.msk [vmem:[#allocation2 + $0x68] sm:$0xff] %vm75_vm0, %v1312_v34  ;;  %v963_v18 = vpop.f32.mrb[40].mxu0  ;;  %v2538_v60 = vpop.f32.mrb[40].mxu1 }
 0x184   :  { %v1181_v38 = vadd.f32 %v2538_v60, %v955_v2  ;;  %v965_v61 = vpop.f32.mrb[41].mxu0  ;;  %v1172_v1 = vpop.f32.mrb[41].mxu1  ;;  %v155_v60 = vld [vmem:[#allocation2 + $0xd0] sm:$0xff] }
 0x185   :  { %v1173_v4 = vadd.f32 %v1172_v1, %v947_v50  ;;  %v966_v5 = vpop.f32.mrb[42].mxu0  ;;  %v2539_v8 = vpop.f32.mrb[42].mxu1 }
 0x186   :  { %v1317_v58 = vadd.f32 %v1181_v38, %v147_v57  ;;  %v1184_v9 = vadd.f32 %v2539_v8, %v958_v6  ;;  %v968_v12 = vpop.f32.mrb[43].mxu0  ;;  %v1175_v13 = vpop.f32.mrb[43].mxu1 }
 0x187   :  { %v1315_v16 = vadd.f32 %v1173_v4, %v145_v0  ;;  %v1176_v17 = vadd.f32 %v1175_v13, %v950_v54  ;;  %v152_v54 = vld [vmem:[#allocation2 + $0xb8] sm:$0xff] }
 0x188   :  { %1366 = vst.msk [vmem:[#allocation2 + $0x90] sm:$0xff] %vm75_vm0, %v1317_v58  ;;  %v1318_v19 = vadd.f32 %v1184_v9, %v148_v26 }
 0x189   :  { %1364 = vst.msk [vmem:[#allocation2 + $0x80] sm:$0xff] %vm75_vm0, %v1315_v16  ;;  %v1316_v20 = vadd.f32 %v1176_v17, %v146_v62  ;;  %v157_v16 = vld [vmem:[#allocation2 + $0xe0] sm:$0xff] }
 0x18a   :  { %1367 = vst.msk [vmem:[#allocation2 + $0x98] sm:$0xff] %vm75_vm0, %v1318_v19 }
 0x18b   :  { %1365 = vst.msk [vmem:[#allocation2 + $0x88] sm:$0xff] %vm75_vm0, %v1316_v20  ;;  %v971_v50 = vpop.f32.mrb[44].mxu0  ;;  %v2542_v22 = vpop.f32.mrb[44].mxu1 }
 0x18c   :  { %v1197_v23 = vadd.f32 %v2542_v22, %v971_v50  ;;  %v973_v24 = vpop.f32.mrb[45].mxu0  ;;  %v1188_v27 = vpop.f32.mrb[45].mxu1  ;;  %v158_v22 = vld [vmem:[#allocation2 + $0xe8] sm:$0xff] }
 0x18d   :  { %v1189_v28 = vadd.f32 %v1188_v27, %v963_v18  ;;  %v974_v29 = vpop.f32.mrb[46].mxu0  ;;  %v2543_v10 = vpop.f32.mrb[46].mxu1 }
 0x18e   :  { %v1321_v30 = vadd.f32 %v1197_v23, %v151_v21  ;;  %v1200_v2 = vadd.f32 %v2543_v10, %v974_v29  ;;  %v976_v31 = vpop.f32.mrb[47].mxu0  ;;  %v1191_v14 = vpop.f32.mrb[47].mxu1  ;;  %v159_v10 = vld [vmem:[#allocation2 + $0xf0] sm:$0xff] }
 0x18f   :  { %v1319_v33 = vadd.f32 %v1189_v28, %v149_v25  ;;  %v1192_v36 = vadd.f32 %v1191_v14, %v966_v5  ;;  %v156_v5 = vld [vmem:[#allocation2 + $0xd8] sm:$0xff] }
 0x190   :  { %1370 = vst.msk [vmem:[#allocation2 + $0xb0] sm:$0xff] %vm75_vm0, %v1321_v30  ;;  %v1322_v37 = vadd.f32 %v1200_v2, %v152_v54  ;;  %v167_v2 = vld [vmem:[#allocation2 + $0x130] sm:$0xff] }
 0x191   :  { %1368 = vst.msk [vmem:[#allocation2 + $0xa0] sm:$0xff] %vm75_vm0, %v1319_v33  ;;  %v1320_v40 = vadd.f32 %v1192_v36, %v150_v32  ;;  %v165_v36 = vld [vmem:[#allocation2 + $0x120] sm:$0xff] }
 0x192   :  { %1371 = vst.msk [vmem:[#allocation2 + $0xb8] sm:$0xff] %vm75_vm0, %v1322_v37 }
 0x193   :  { %1369 = vst.msk [vmem:[#allocation2 + $0xa8] sm:$0xff] %vm75_vm0, %v1320_v40  ;;  %v979_v6 = vpop.f32.mrb[48].mxu0  ;;  %v2546_v41 = vpop.f32.mrb[48].mxu1 }
 0x194   :  { %v981_v42 = vpop.f32.mrb[49].mxu0  ;;  %v1204_v45 = vpop.f32.mrb[49].mxu1 }
 0x195   :  { %v1205_v46 = vadd.f32 %v1204_v45, %v979_v6  ;;  %v982_v48 = vpop.f32.mrb[50].mxu0  ;;  %v2547_v49 = vpop.f32.mrb[50].mxu1  ;;  %v160_v6 = vld [vmem:[#allocation2 + $0xf8] sm:$0xff] }
 0x196   :  { %v984_v52 = vpop.f32.mrb[51].mxu0  ;;  %v1207_v56 = vpop.f32.mrb[51].mxu1  ;;  %v168_v42 = vld [vmem:[#allocation2 + $0x138] sm:$0xff] }
 0x197   :  { %v1323_v34 = vadd.f32 %v1205_v46, %v153_v44  ;;  %v1208_v18 = vadd.f32 %v1207_v56, %v982_v48 }
 0x199   :  { %1372 = vst.msk [vmem:[#allocation2 + $0xc0] sm:$0xff] %vm75_vm0, %v1323_v34  ;;  %v1324_v57 = vadd.f32 %v1208_v18, %v154_v53  ;;  %v166_v53 = vld [vmem:[#allocation2 + $0x128] sm:$0xff] }
 0x19b   :  { %1373 = vst.msk [vmem:[#allocation2 + $0xc8] sm:$0xff] %vm75_vm0, %v1324_v57  ;;  %v987_v38 = vpop.f32.mrb[52].mxu0  ;;  %v2550_v61 = vpop.f32.mrb[52].mxu1 }
 0x19c   :  { %v1213_v0 = vadd.f32 %v2546_v41, %v987_v38  ;;  %v989_v1 = vpop.f32.mrb[53].mxu0  ;;  %v1220_v4 = vpop.f32.mrb[53].mxu1  ;;  %v171_v38 = vld [vmem:[#allocation2 + $0x150] sm:$0xff] }
 0x19d   :  { %v990_v26 = vpop.f32.mrb[54].mxu0  ;;  %v2551_v8 = vpop.f32.mrb[54].mxu1 }
 0x19e   :  { %v1325_v58 = vadd.f32 %v1213_v0, %v155_v60  ;;  %v1216_v9 = vadd.f32 %v2547_v49, %v990_v26  ;;  %v992_v12 = vpop.f32.mrb[55].mxu0  ;;  %v1223_v62 = vpop.f32.mrb[55].mxu1 }
 0x1a0   :  { %1374 = vst.msk [vmem:[#allocation2 + $0xd0] sm:$0xff] %vm75_vm0, %v1325_v58  ;;  %v1326_v13 = vadd.f32 %v1216_v9, %v156_v5  ;;  %v172_v9 = vld [vmem:[#allocation2 + $0x158] sm:$0xff] }
 0x1a2   :  { %1375 = vst.msk [vmem:[#allocation2 + $0xd8] sm:$0xff] %vm75_vm0, %v1326_v13 }
 0x1a3   :  { %v995_v17 = vpop.f32.mrb[56].mxu0  ;;  %v3053_v19 = vpop.f32.mrb[56].mxu1 }
 0x1a4   :  { %v1221_v20 = vadd.f32 %v1220_v4, %v995_v17  ;;  %v997_v50 = vpop.f32.mrb[57].mxu0  ;;  %v1236_v21 = vpop.f32.mrb[57].mxu1  ;;  %v169_v4 = vld [vmem:[#allocation2 + $0x140] sm:$0xff] }
 0x1a5   :  { %v998_v23 = vpop.f32.mrb[58].mxu0  ;;  %v3055_v24 = vpop.f32.mrb[58].mxu1  ;;  %v170_v50 = vld [vmem:[#allocation2 + $0x148] sm:$0xff] }
 0x1a6   :  { %v1327_v25 = vadd.f32 %v1221_v20, %v157_v16  ;;  %v1224_v27 = vadd.f32 %v1223_v62, %v998_v23  ;;  %v1000_v28 = vpop.f32.mrb[59].mxu0  ;;  %v1239_v29 = vpop.f32.mrb[59].mxu1 }
 0x1a7   :  { %v175_v28 = vld [vmem:[#allocation2 + $0x170] sm:$0xff] }
 0x1a8   :  { %1376 = vst.msk [vmem:[#allocation2 + $0xe0] sm:$0xff] %vm75_vm0, %v1327_v25  ;;  %v1328_v54 = vadd.f32 %v1224_v27, %v158_v22 }
 0x1aa   :  { %1377 = vst.msk [vmem:[#allocation2 + $0xe8] sm:$0xff] %vm75_vm0, %v1328_v54 }
 0x1ab   :  { %v1003_v30 = vpop.f32.mrb[60].mxu0  ;;  %v2558_v31 = vpop.f32.mrb[60].mxu1 }
 0x1ac   :  { %v1229_v32 = vadd.f32 %v2550_v61, %v1003_v30  ;;  %v1261_v14 = vadd.f32 %v2558_v31, %v2984_v43  ;;  %v1005_v33 = vpop.f32.mrb[61].mxu0  ;;  %v1252_v37 = vpop.f32.mrb[61].mxu1  ;;  %v173_v30 = vld [vmem:[#allocation2 + $0x160] sm:$0xff] }
 0x1ad   :  { %v1253_v40 = vadd.f32 %v1252_v37, %v2980_v35  ;;  %v1006_v41 = vpop.f32.mrb[62].mxu0  ;;  %v2559_v44 = vpop.f32.mrb[62].mxu1  ;;  %v176_v33 = vld [vmem:[#allocation2 + $0x178] sm:$0xff] }
 0x1ae   :  { %v1329_v45 = vadd.f32 %v1229_v32, %v159_v10  ;;  %v1337_v46 = vadd.f32 %v1261_v14, %v167_v2  ;;  %v1232_v48 = vadd.f32 %v2551_v8, %v1006_v41  ;;  %v1264_v49 = vadd.f32 %v2559_v44, %v2986_v47  ;;  %v1008_v52 = vpop.f32.mrb[63].mxu0  ;;  %v1255_v56 = vpop.f32.mrb[63].mxu1  ;;  %v161_v47 = vld [vmem:[#allocation2 + $0x100] sm:$0xff]  ;;  %v162_v8 = vld [vmem:[#allocation2 + $0x108] sm:$0xff]  ;;  %v164_v32 = vld [vmem:[#allocation2 + $0x118] sm:$0xff] }
 0x1af   :  { %v1335_v34 = vadd.f32 %v1253_v40, %v165_v36  ;;  %v1256_v43 = vadd.f32 %v1255_v56, %v2982_v39  ;;  %v174_v44 = vld [vmem:[#allocation2 + $0x168] sm:$0xff] }
 0x1b0   :  { %1378 = vst.msk [vmem:[#allocation2 + $0xf0] sm:$0xff] %vm75_vm0, %v1329_v45  ;;  %1386 = vst.msk [vmem:[#allocation2 + $0x130] sm:$0xff] %vm75_vm0, %v1337_v46  ;;  %v1330_v35 = vadd.f32 %v1232_v48, %v160_v6  ;;  %v1338_v18 = vadd.f32 %v1264_v49, %v168_v42 }
 0x1b1   :  { %1384 = vst.msk [vmem:[#allocation2 + $0x120] sm:$0xff] %vm75_vm0, %v1335_v34  ;;  %v1336_v57 = vadd.f32 %v1256_v43, %v166_v53 }
 0x1b2   :  { %1379 = vst.msk [vmem:[#allocation2 + $0xf8] sm:$0xff] %vm75_vm0, %v1330_v35  ;;  %1387 = vst.msk [vmem:[#allocation2 + $0x138] sm:$0xff] %vm75_vm0, %v1338_v18 }
 0x1b3   :  { %1385 = vst.msk [vmem:[#allocation2 + $0x128] sm:$0xff] %vm75_vm0, %v1336_v57  ;;  %v1011_v60 = vpop.f32.mrb[64].mxu0  ;;  %v2562_v61 = vpop.f32.mrb[64].mxu1 }
 0x1b4   :  { %v1237_v39 = vadd.f32 %v1236_v21, %v1011_v60  ;;  %v1277_v0 = vadd.f32 %v2562_v61, %v2996_v59  ;;  %v1013_v1 = vpop.f32.mrb[65].mxu0  ;;  %v1268_v5 = vpop.f32.mrb[65].mxu1 }
 0x1b5   :  { %v1269_v26 = vadd.f32 %v1268_v5, %v2990_v51  ;;  %v1014_v58 = vpop.f32.mrb[66].mxu0  ;;  %v2563_v12 = vpop.f32.mrb[66].mxu1 }
 0x1b6   :  { %v1331_v62 = vadd.f32 %v1237_v39, %v161_v47  ;;  %v1341_v13 = vadd.f32 %v1277_v0, %v171_v38  ;;  %v1240_v16 = vadd.f32 %v1239_v29, %v1014_v58  ;;  %v1280_v17 = vadd.f32 %v2563_v12, %v2998_v63  ;;  %v1016_v20 = vpop.f32.mrb[67].mxu0  ;;  %v1271_v22 = vpop.f32.mrb[67].mxu1  ;;  %v163_v63 = vld [vmem:[#allocation2 + $0x110] sm:$0xff] }
 0x1b7   :  { %v1339_v21 = vadd.f32 %v1269_v26, %v169_v4  ;;  %v1272_v59 = vadd.f32 %v1271_v22, %v2994_v55 }
 0x1b8   :  { %1380 = vst.msk [vmem:[#allocation2 + $0x100] sm:$0xff] %vm75_vm0, %v1331_v62  ;;  %1390 = vst.msk [vmem:[#allocation2 + $0x150] sm:$0xff] %vm75_vm0, %v1341_v13  ;;  %v1332_v51 = vadd.f32 %v1240_v16, %v162_v8  ;;  %v1342_v23 = vadd.f32 %v1280_v17, %v172_v9 }
 0x1b9   :  { %1388 = vst.msk [vmem:[#allocation2 + $0x140] sm:$0xff] %vm75_vm0, %v1339_v21  ;;  %v1340_v25 = vadd.f32 %v1272_v59, %v170_v50 }
 0x1ba   :  { %1381 = vst.msk [vmem:[#allocation2 + $0x108] sm:$0xff] %vm75_vm0, %v1332_v51  ;;  %1391 = vst.msk [vmem:[#allocation2 + $0x158] sm:$0xff] %vm75_vm0, %v1342_v23 }
 0x1bb   :  { %1389 = vst.msk [vmem:[#allocation2 + $0x148] sm:$0xff] %vm75_vm0, %v1340_v25  ;;  %v1019_v27 = vpop.f32.mrb[68].mxu0  ;;  %v2566_v29 = vpop.f32.mrb[68].mxu1 }
 0x1bc   :  { %v1245_v55 = vadd.f32 %v3053_v19, %v1019_v27  ;;  %v1293_v54 = vadd.f32 %v2566_v29, %v3008_v11  ;;  %v1021_v10 = vpop.f32.mrb[69].mxu0  ;;  %v1284_v2 = vpop.f32.mrb[69].mxu1 }
 0x1bd   :  { %v1285_v31 = vadd.f32 %v1284_v2, %v3002_v3  ;;  %v1022_v14 = vpop.f32.mrb[70].mxu0  ;;  %v2567_v36 = vpop.f32.mrb[70].mxu1 }
 0x1be   :  { %v1333_v37 = vadd.f32 %v1245_v55, %v163_v63  ;;  %v1345_v40 = vadd.f32 %v1293_v54, %v175_v28  ;;  %v1248_v6 = vadd.f32 %v3055_v24, %v1022_v14  ;;  %v1296_v41 = vadd.f32 %v2567_v36, %v3012_v15  ;;  %v1024_v42 = vpop.f32.mrb[71].mxu0  ;;  %v1287_v19 = vpop.f32.mrb[71].mxu1 }
 0x1bf   :  { %v1343_v45 = vadd.f32 %v1285_v31, %v173_v30  ;;  %v1288_v11 = vadd.f32 %v1287_v19, %v3006_v7 }
 0x1c0   :  { %1382 = vst.msk [vmem:[#allocation2 + $0x110] sm:$0xff] %vm75_vm0, %v1333_v37  ;;  %1394 = vst.msk [vmem:[#allocation2 + $0x170] sm:$0xff] %vm75_vm0, %v1345_v40  ;;  %v1334_v3 = vadd.f32 %v1248_v6, %v164_v32  ;;  %v1346_v46 = vadd.f32 %v1296_v41, %v176_v33 }
 0x1c1   :  { %1392 = vst.msk [vmem:[#allocation2 + $0x160] sm:$0xff] %vm75_vm0, %v1343_v45  ;;  %v1344_v48 = vadd.f32 %v1288_v11, %v174_v44 }
 0x1c2   :  { %1383 = vst.msk [vmem:[#allocation2 + $0x118] sm:$0xff] %vm75_vm0, %v1334_v3  ;;  %1395 = vst.msk [vmem:[#allocation2 + $0x178] sm:$0xff] %vm75_vm0, %v1346_v46 }
 0x1c3   :  { %1393 = vst.msk [vmem:[#allocation2 + $0x168] sm:$0xff] %vm75_vm0, %v1344_v48 }
 0x1c4 PF:  { %v1471_v7 = vld [vmem:[%s3247_s4] sm:$0xf]  ;;  %vm1552_vm1 = vcmask 1043456   ;;  %v1400_v24 = vld [vmem:[#allocation2 + $0x8] sm:$0xff]  ;;  %v1401_v34 = vld [vmem:[#allocation2 + $0x10] sm:$0xff] }
 0x1c5   :  { %v1399_v15 = vld [vmem:[#allocation2] sm:$0xff]  ;;  %2652 = vmatprep.subr.msk.bf16.mxu0 %vm1552_vm1, %v1471_v7  ;;  %2653 = vmatprep.subr.msk.bf16.mxu1 %vm1552_vm1, %v1471_v7  ;;  %v1554_v49 = vsel %vm1552_vm1, %v1471_v7, 0  ;;  %v1424_v56 = vld [vmem:[#allocation2 + $0xc8] sm:$0xff]  ;;  %v1402_v35 = vld [vmem:[#allocation2 + $0x18] sm:$0xff] }
 0x1c6   :  { %v1447_v52 = vpack.c.bf16 %v1400_v24, %v1399_v15  ;;  %v1423_v53 = vld [vmem:[#allocation2 + $0xc0] sm:$0xff]  ;;  %2569 = vmatpush3.bf16.msra.mxu0 %v1554_v49  ;;  %2651 = vmatpush3.bf16.msra.mxu1 %v1554_v49  ;;  %v1425_v18 = vld [vmem:[#allocation2 + $0xd0] sm:$0xff]  ;;  %v1426_v57 = vld [vmem:[#allocation2 + $0xd8] sm:$0xff]  ;;  %v1448_v47 = vpack.c.bf16 %v1402_v35, %v1401_v34 }
 0x1c7   :  { %v1459_v43 = vpack.c.bf16 %v1424_v56, %v1423_v53  ;;  %v1460_v60 = vpack.c.bf16 %v1426_v57, %v1425_v18  ;;  %v1403_v38 = vld [vmem:[#allocation2 + $0x20] sm:$0xff]  ;;  %v1404_v61 = vld [vmem:[#allocation2 + $0x28] sm:$0xff]  ;;  %v1405_v5 = vld [vmem:[#allocation2 + $0x30] sm:$0xff] }
 0x1c8   :  { %2570 = vmatprep.mubr.msk.bf16.mxu0 %vm75_vm0, %v1447_v52  ;;  %v1427_v39 = vld [vmem:[#allocation2 + $0xe0] sm:$0xff]  ;;  %v1449_v0 = vpack.c.bf16 %v1404_v61, %v1403_v38  ;;  %v1428_v1 = vld [vmem:[#allocation2 + $0xe8] sm:$0xff]  ;;  %v1406_v26 = vld [vmem:[#allocation2 + $0x38] sm:$0xff] }
 0x1c9   :  { %2594 = vmatprep.mubr.msk.bf16.mxu1 %vm75_vm0, %v1459_v43  ;;  %2571 = vmatmul.mubr.msk.bf16.vlgmr.msra.gmra.mrb[0].mxu0 %vm75_vm0, %v1448_v47  ;;  %v1461_v4 = vpack.c.bf16 %v1428_v1, %v1427_v39  ;;  %v1429_v8 = vld [vmem:[#allocation2 + $0xf0] sm:$0xff]  ;;  %v1430_v58 = vld [vmem:[#allocation2 + $0xf8] sm:$0xff]  ;;  %v1407_v9 = vld [vmem:[#allocation2 + $0x40] sm:$0xff]  ;;  %v1450_v16 = vpack.c.bf16 %v1406_v26, %v1405_v5 }
 0x1ca   :  { %2595 = vmatmul.mubr.msk.bf16.vlgmr.msra.gmra.mrb[0].mxu1 %vm75_vm0, %v1460_v60  ;;  %2574 = vmatprep.mubr.msk.bf16.mxu0 %vm75_vm0, %v1449_v0  ;;  %v1408_v12 = vld [vmem:[#allocation2 + $0x48] sm:$0xff]  ;;  %v1431_v62 = vld [vmem:[#allocation2 + $0x100] sm:$0xff]  ;;  %v1462_v17 = vpack.c.bf16 %v1430_v58, %v1429_v8  ;;  %v1409_v22 = vld [vmem:[#allocation2 + $0x50] sm:$0xff] }
 0x1cb   :  { %2598 = vmatprep.mubr.msk.bf16.mxu1 %vm75_vm0, %v1461_v4  ;;  %v1432_v13 = vld [vmem:[#allocation2 + $0x108] sm:$0xff]  ;;  %v1451_v20 = vpack.c.bf16 %v1408_v12, %v1407_v9  ;;  %v1410_v21 = vld [vmem:[#allocation2 + $0x58] sm:$0xff]  ;;  %v1433_v59 = vld [vmem:[#allocation2 + $0x110] sm:$0xff] }
 0x1cc   :  { %v1463_v50 = vpack.c.bf16 %v1432_v13, %v1431_v62  ;;  %v1434_v51 = vld [vmem:[#allocation2 + $0x118] sm:$0xff]  ;;  %v1411_v23 = vld [vmem:[#allocation2 + $0x60] sm:$0xff]  ;;  %v1412_v25 = vld [vmem:[#allocation2 + $0x68] sm:$0xff]  ;;  %v1452_v28 = vpack.c.bf16 %v1410_v21, %v1409_v22 }
 0x1cd   :  { %v1435_v63 = vld [vmem:[#allocation2 + $0x120] sm:$0xff]  ;;  %v1436_v27 = vld [vmem:[#allocation2 + $0x128] sm:$0xff]  ;;  %v1464_v29 = vpack.c.bf16 %v1434_v51, %v1433_v59  ;;  %v1453_v55 = vpack.c.bf16 %v1412_v25, %v1411_v23  ;;  %v1413_v10 = vld [vmem:[#allocation2 + $0x70] sm:$0xff] }
 0x1ce   :  { %v1465_v54 = vpack.c.bf16 %v1436_v27, %v1435_v63  ;;  %v1414_v30 = vld [vmem:[#allocation2 + $0x78] sm:$0xff]  ;;  %v1437_v2 = vld [vmem:[#allocation2 + $0x130] sm:$0xff]  ;;  %v1415_v32 = vld [vmem:[#allocation2 + $0x80] sm:$0xff] }
 0x1cf   :  { %v1438_v31 = vld [vmem:[#allocation2 + $0x138] sm:$0xff]  ;;  %v1416_v14 = vld [vmem:[#allocation2 + $0x88] sm:$0xff]  ;;  %v1439_v33 = vld [vmem:[#allocation2 + $0x140] sm:$0xff]  ;;  %v1454_v37 = vpack.c.bf16 %v1414_v30, %v1413_v10 }
 0x1d0   :  { %v1440_v36 = vld [vmem:[#allocation2 + $0x148] sm:$0xff]  ;;  %v1466_v40 = vpack.c.bf16 %v1438_v31, %v1437_v2  ;;  %v1455_v6 = vpack.c.bf16 %v1416_v14, %v1415_v32  ;;  %v1417_v42 = vld [vmem:[#allocation2 + $0x90] sm:$0xff]  ;;  %v1418_v44 = vld [vmem:[#allocation2 + $0x98] sm:$0xff] }
 0x1d1   :  { %2575 = vmatmul.mubr.msk.bf16.gmra.mrb[4].mxu0 %vm75_vm0, %v1450_v16  ;;  %v1467_v41 = vpack.c.bf16 %v1440_v36, %v1439_v33  ;;  %v1441_v19 = vld [vmem:[#allocation2 + $0x150] sm:$0xff]  ;;  %v1442_v45 = vld [vmem:[#allocation2 + $0x158] sm:$0xff]  ;;  %v1419_v11 = vld [vmem:[#allocation2 + $0xa0] sm:$0xff]  ;;  %v1456_v7 = vpack.c.bf16 %v1418_v44, %v1417_v42 }
 0x1d2   :  { %2599 = vmatmul.mubr.msk.bf16.gmra.mrb[4].mxu1 %vm75_vm0, %v1462_v17  ;;  %2578 = vmatprep.mubr.msk.bf16.mxu0 %vm75_vm0, %v1451_v20  ;;  %v1420_v3 = vld [vmem:[#allocation2 + $0xa8] sm:$0xff]  ;;  %v1443_v46 = vld [vmem:[#allocation2 + $0x160] sm:$0xff]  ;;  %v1468_v15 = vpack.c.bf16 %v1442_v45, %v1441_v19  ;;  %v1421_v52 = vld [vmem:[#allocation2 + $0xb0] sm:$0xff] }
 0x1d3   :  { %2602 = vmatprep.mubr.msk.bf16.mxu1 %vm75_vm0, %v1463_v50  ;;  %v1444_v48 = vld [vmem:[#allocation2 + $0x168] sm:$0xff]  ;;  %v1457_v24 = vpack.c.bf16 %v1420_v3, %v1419_v11  ;;  %v1422_v53 = vld [vmem:[#allocation2 + $0xb8] sm:$0xff]  ;;  %v1445_v56 = vld [vmem:[#allocation2 + $0x170] sm:$0xff] }
 0x1d4   :  { %v1469_v49 = vpack.c.bf16 %v1444_v48, %v1443_v46  ;;  %v1446_v34 = vld [vmem:[#allocation2 + $0x178] sm:$0xff]  ;;  %v1458_v43 = vpack.c.bf16 %v1422_v53, %v1421_v52  ;;  %v3121_v18 = vld [vmem:[%s3248_s5] ss:$0 sm:$0xff] }
 0x1d5   :  { %v1470_v35 = vpack.c.bf16 %v1446_v34, %v1445_v56 }
 0x1d9   :  { %2579 = vmatmul.mubr.msk.bf16.gmra.mrb[8].mxu0 %vm75_vm0, %v1452_v28 }
 0x1da   :  { %2603 = vmatmul.mubr.msk.bf16.gmra.mrb[8].mxu1 %vm75_vm0, %v1464_v29  ;;  %2582 = vmatprep.mubr.msk.bf16.mxu0 %vm75_vm0, %v1453_v55 }
 0x1db   :  { %2606 = vmatprep.mubr.msk.bf16.mxu1 %vm75_vm0, %v1465_v54 }
 0x1e1   :  { %2583 = vmatmul.mubr.msk.bf16.gmra.mrb[12].mxu0 %vm75_vm0, %v1454_v37 }
 0x1e2   :  { %2607 = vmatmul.mubr.msk.bf16.gmra.mrb[12].mxu1 %vm75_vm0, %v1466_v40  ;;  %2586 = vmatprep.mubr.msk.bf16.mxu0 %vm75_vm0, %v1455_v6 }
 0x1e3   :  { %2610 = vmatprep.mubr.msk.bf16.mxu1 %vm75_vm0, %v1467_v41 }
 0x1e9   :  { %2587 = vmatmul.mubr.msk.bf16.gmra.mrb[16].mxu0 %vm75_vm0, %v1456_v7 }
 0x1ea   :  { %2611 = vmatmul.mubr.msk.bf16.gmra.mrb[16].mxu1 %vm75_vm0, %v1468_v15  ;;  %2590 = vmatprep.mubr.msk.bf16.mxu0 %vm75_vm0, %v1457_v24 }
 0x1eb   :  { %2614 = vmatprep.mubr.msk.bf16.mxu1 %vm75_vm0, %v1469_v49 }
 0x1f1   :  { %2591 = vmatmul.mubr.msk.bf16.gmra.mrb[20].mxu0 %vm75_vm0, %v1458_v43 }
 0x1f2   :  { %2615 = vmatmul.mubr.msk.bf16.gmra.mrb[20].mxu1 %vm75_vm0, %v1470_v35 }
 0x29c   :  { %v2572_v57 = vpop.f32.mrb[0].mxu0 }
 0x29d   :  { %v2596_v47 = vpop.f32.mrb[0].mxu1  ;;  %v1599_v60 = vadd.f32 %v2572_v57, %v3121_v18  ;;  %v1590_v61 = vpop.f32.mrb[1].mxu0 }
 0x29e   :  { %v1695_v38 = vadd.f32 %v2596_v47, %v3121_v18  ;;  %v1686_v39 = vpop.f32.mrb[1].mxu1  ;;  %v1591_v0 = vadd.f32 %v3121_v18, %v1590_v61  ;;  %v2573_v4 = vpop.f32.mrb[2].mxu0 }
 0x29f   :  { %v1687_v1 = vadd.f32 %v3121_v18, %v1686_v39  ;;  %v2597_v5 = vpop.f32.mrb[2].mxu1  ;;  %v1602_v26 = vadd.f32 %v2573_v4, %v3121_v18  ;;  %v1593_v58 = vpop.f32.mrb[3].mxu0  ;;  %v1783_v13 = vmax.f32 %v1599_v60, 0.0 }
 0x2a0   :  { %v1698_v8 = vadd.f32 %v2597_v5, %v3121_v18  ;;  %v1689_v9 = vpop.f32.mrb[3].mxu1  ;;  %v1594_v12 = vadd.f32 %v3121_v18, %v1593_v58  ;;  %v1807_v16 = vmax.f32 %v1695_v38, 0.0  ;;  %v1781_v50 = vmax.f32 %v1591_v0, 0.0 }
 0x2a1   :  { %v1690_v62 = vadd.f32 %v3121_v18, %v1689_v9  ;;  %v1784_v17 = vmax.f32 %v1602_v26, 0.0  ;;  %v1805_v22 = vmax.f32 %v1687_v1, 0.0 }
 0x2a2   :  { %v1808_v20 = vmax.f32 %v1698_v8, 0.0  ;;  %v1782_v21 = vmax.f32 %v1594_v12, 0.0 }
 0x2a3   :  { %v1806_v59 = vmax.f32 %v1690_v62, 0.0  ;;  %v2312_v51 = vpack.c.bf16 %v1784_v17, %v1783_v13 }
 0x2a4   :  { %v2372_v23 = vpack.c.bf16 %v1808_v20, %v1807_v16  ;;  %v2307_v25 = vpack.c.bf16 %v1782_v21, %v1781_v50  ;;  %v2576_v27 = vpop.f32.mrb[4].mxu0 }
 0x2a5   :  { %v2367_v63 = vpack.c.bf16 %v1806_v59, %v1805_v22  ;;  %v2600_v28 = vpop.f32.mrb[4].mxu1  ;;  %2424 = vst [vmem:[%s3249_s6 + $0x8] sm:$0xff] %v2312_v51   ;;  %v1615_v29 = vadd.f32 %v2576_v27, %v3121_v18  ;;  %v1606_v54 = vpop.f32.mrb[5].mxu0 }
 0x2a6   :  { %2436 = vst [vmem:[%s3249_s6 + $0x68] sm:$0xff] %v2372_v23   ;;  %v1711_v55 = vadd.f32 %v2600_v28, %v3121_v18  ;;  %v1702_v10 = vpop.f32.mrb[5].mxu1  ;;  %2308 = vst [vmem:[%s3249_s6] sm:$0xff] %v2307_v25   ;;  %v1607_v30 = vadd.f32 %v3121_v18, %v1606_v54  ;;  %v2577_v31 = vpop.f32.mrb[6].mxu0 }
 0x2a7   :  { %2435 = vst [vmem:[%s3249_s6 + $0x60] sm:$0xff] %v2367_v63   ;;  %v1703_v2 = vadd.f32 %v3121_v18, %v1702_v10  ;;  %v2601_v32 = vpop.f32.mrb[6].mxu1  ;;  %v1618_v14 = vadd.f32 %v2577_v31, %v3121_v18  ;;  %v1609_v36 = vpop.f32.mrb[7].mxu0  ;;  %v1787_v41 = vmax.f32 %v1615_v29, 0.0 }
 0x2a8   :  { %v1714_v33 = vadd.f32 %v2601_v32, %v3121_v18  ;;  %v1705_v37 = vpop.f32.mrb[7].mxu1  ;;  %v1610_v40 = vadd.f32 %v3121_v18, %v1609_v36  ;;  %v1811_v42 = vmax.f32 %v1711_v55, 0.0  ;;  %v1785_v45 = vmax.f32 %v1607_v30, 0.0 }
 0x2a9   :  { %v1706_v6 = vadd.f32 %v3121_v18, %v1705_v37  ;;  %v1788_v44 = vmax.f32 %v1618_v14, 0.0  ;;  %v1809_v11 = vmax.f32 %v1703_v2, 0.0 }
 0x2aa   :  { %v1812_v19 = vmax.f32 %v1714_v33, 0.0  ;;  %v1786_v3 = vmax.f32 %v1610_v40, 0.0 }
 0x2ab   :  { %v1810_v46 = vmax.f32 %v1706_v6, 0.0  ;;  %v2322_v48 = vpack.c.bf16 %v1788_v44, %v1787_v41 }
 0x2ac   :  { %v2382_v7 = vpack.c.bf16 %v1812_v19, %v1811_v42  ;;  %v2317_v15 = vpack.c.bf16 %v1786_v3, %v1785_v45  ;;  %v2580_v49 = vpop.f32.mrb[8].mxu0 }
 0x2ad   :  { %v2377_v24 = vpack.c.bf16 %v1810_v46, %v1809_v11  ;;  %v2604_v52 = vpop.f32.mrb[8].mxu1  ;;  %2426 = vst [vmem:[%s3249_s6 + $0x18] sm:$0xff] %v2322_v48   ;;  %v1631_v53 = vadd.f32 %v2580_v49, %v3121_v18  ;;  %v1622_v34 = vpop.f32.mrb[9].mxu0 }
 0x2ae   :  { %2438 = vst [vmem:[%s3249_s6 + $0x78] sm:$0xff] %v2382_v7   ;;  %v1727_v56 = vadd.f32 %v2604_v52, %v3121_v18  ;;  %v1718_v43 = vpop.f32.mrb[9].mxu1  ;;  %2425 = vst [vmem:[%s3249_s6 + $0x10] sm:$0xff] %v2317_v15   ;;  %v1623_v35 = vadd.f32 %v3121_v18, %v1622_v34  ;;  %v2581_v47 = vpop.f32.mrb[10].mxu0 }
 0x2af   :  { %2437 = vst [vmem:[%s3249_s6 + $0x70] sm:$0xff] %v2377_v24   ;;  %v1719_v57 = vadd.f32 %v3121_v18, %v1718_v43  ;;  %v2605_v60 = vpop.f32.mrb[10].mxu1  ;;  %v1634_v38 = vadd.f32 %v2581_v47, %v3121_v18  ;;  %v1625_v39 = vpop.f32.mrb[11].mxu0  ;;  %v1791_v5 = vmax.f32 %v1631_v53, 0.0 }
 0x2b0   :  { %v1730_v61 = vadd.f32 %v2605_v60, %v3121_v18  ;;  %v1721_v0 = vpop.f32.mrb[11].mxu1  ;;  %v1626_v1 = vadd.f32 %v3121_v18, %v1625_v39  ;;  %v1815_v26 = vmax.f32 %v1727_v56, 0.0  ;;  %v1789_v9 = vmax.f32 %v1623_v35, 0.0 }
 0x2b1   :  { %v1722_v4 = vadd.f32 %v3121_v18, %v1721_v0  ;;  %v1792_v8 = vmax.f32 %v1634_v38, 0.0  ;;  %v1813_v12 = vmax.f32 %v1719_v57, 0.0 }
 0x2b2   :  { %v1816_v58 = vmax.f32 %v1730_v61, 0.0  ;;  %v1790_v62 = vmax.f32 %v1626_v1, 0.0 }
 0x2b3   :  { %v1814_v13 = vmax.f32 %v1722_v4, 0.0  ;;  %v2332_v16 = vpack.c.bf16 %v1792_v8, %v1791_v5 }
 0x2b4   :  { %v2392_v17 = vpack.c.bf16 %v1816_v58, %v1815_v26  ;;  %v2327_v20 = vpack.c.bf16 %v1790_v62, %v1789_v9  ;;  %v2584_v22 = vpop.f32.mrb[12].mxu0 }
 0x2b5   :  { %v2387_v50 = vpack.c.bf16 %v1814_v13, %v1813_v12  ;;  %v2608_v21 = vpop.f32.mrb[12].mxu1  ;;  %2428 = vst [vmem:[%s3249_s6 + $0x28] sm:$0xff] %v2332_v16   ;;  %v1647_v59 = vadd.f32 %v2584_v22, %v3121_v18  ;;  %v1638_v23 = vpop.f32.mrb[13].mxu0 }
 0x2b6   :  { %2440 = vst [vmem:[%s3249_s6 + $0x88] sm:$0xff] %v2392_v17   ;;  %v1743_v51 = vadd.f32 %v2608_v21, %v3121_v18  ;;  %v1734_v25 = vpop.f32.mrb[13].mxu1  ;;  %2427 = vst [vmem:[%s3249_s6 + $0x20] sm:$0xff] %v2327_v20   ;;  %v1639_v63 = vadd.f32 %v3121_v18, %v1638_v23  ;;  %v2585_v28 = vpop.f32.mrb[14].mxu0 }
 0x2b7   :  { %2439 = vst [vmem:[%s3249_s6 + $0x80] sm:$0xff] %v2387_v50   ;;  %v1735_v27 = vadd.f32 %v3121_v18, %v1734_v25  ;;  %v2609_v29 = vpop.f32.mrb[14].mxu1  ;;  %v1650_v55 = vadd.f32 %v2585_v28, %v3121_v18  ;;  %v1641_v10 = vpop.f32.mrb[15].mxu0  ;;  %v1795_v32 = vmax.f32 %v1647_v59, 0.0 }
 0x2b8   :  { %v1746_v54 = vadd.f32 %v2609_v29, %v3121_v18  ;;  %v1737_v30 = vpop.f32.mrb[15].mxu1  ;;  %v1642_v2 = vadd.f32 %v3121_v18, %v1641_v10  ;;  %v1819_v14 = vmax.f32 %v1743_v51, 0.0  ;;  %v1793_v37 = vmax.f32 %v1639_v63, 0.0 }
 0x2b9   :  { %v1738_v31 = vadd.f32 %v3121_v18, %v1737_v30  ;;  %v1796_v33 = vmax.f32 %v1650_v55, 0.0  ;;  %v1817_v40 = vmax.f32 %v1735_v27, 0.0 }
 0x2ba   :  { %v1820_v36 = vmax.f32 %v1746_v54, 0.0  ;;  %v1794_v6 = vmax.f32 %v1642_v2, 0.0 }
 0x2bb   :  { %v1818_v41 = vmax.f32 %v1738_v31, 0.0  ;;  %v2342_v42 = vpack.c.bf16 %v1796_v33, %v1795_v32 }
 0x2bc   :  { %v2402_v44 = vpack.c.bf16 %v1820_v36, %v1819_v14  ;;  %v2337_v19 = vpack.c.bf16 %v1794_v6, %v1793_v37  ;;  %v2588_v11 = vpop.f32.mrb[16].mxu0 }
 0x2bd   :  { %v2397_v45 = vpack.c.bf16 %v1818_v41, %v1817_v40  ;;  %v2612_v3 = vpop.f32.mrb[16].mxu1  ;;  %2430 = vst [vmem:[%s3249_s6 + $0x38] sm:$0xff] %v2342_v42   ;;  %v1663_v46 = vadd.f32 %v2588_v11, %v3121_v18  ;;  %v1654_v7 = vpop.f32.mrb[17].mxu0 }
 0x2be   :  { %2442 = vst [vmem:[%s3249_s6 + $0x98] sm:$0xff] %v2402_v44   ;;  %v1759_v48 = vadd.f32 %v2612_v3, %v3121_v18  ;;  %v1750_v15 = vpop.f32.mrb[17].mxu1  ;;  %2429 = vst [vmem:[%s3249_s6 + $0x30] sm:$0xff] %v2337_v19   ;;  %v1655_v24 = vadd.f32 %v3121_v18, %v1654_v7  ;;  %v2589_v52 = vpop.f32.mrb[18].mxu0 }
 0x2bf   :  { %2441 = vst [vmem:[%s3249_s6 + $0x90] sm:$0xff] %v2397_v45   ;;  %v1751_v49 = vadd.f32 %v3121_v18, %v1750_v15  ;;  %v2613_v53 = vpop.f32.mrb[18].mxu1  ;;  %v1666_v56 = vadd.f32 %v2589_v52, %v3121_v18  ;;  %v1657_v43 = vpop.f32.mrb[19].mxu0  ;;  %v1799_v60 = vmax.f32 %v1663_v46, 0.0 }
 0x2c0   :  { %v1762_v34 = vadd.f32 %v2613_v53, %v3121_v18  ;;  %v1753_v35 = vpop.f32.mrb[19].mxu1  ;;  %v1658_v57 = vadd.f32 %v3121_v18, %v1657_v43  ;;  %v1823_v38 = vmax.f32 %v1759_v48, 0.0  ;;  %v1797_v0 = vmax.f32 %v1655_v24, 0.0 }
 0x2c1   :  { %v1754_v47 = vadd.f32 %v3121_v18, %v1753_v35  ;;  %v1800_v61 = vmax.f32 %v1666_v56, 0.0  ;;  %v1821_v1 = vmax.f32 %v1751_v49, 0.0 }
 0x2c2   :  { %v1824_v39 = vmax.f32 %v1762_v34, 0.0  ;;  %v1798_v4 = vmax.f32 %v1658_v57, 0.0 }
 0x2c3   :  { %v1822_v5 = vmax.f32 %v1754_v47, 0.0  ;;  %v2352_v26 = vpack.c.bf16 %v1800_v61, %v1799_v60 }
 0x2c4   :  { %v2412_v8 = vpack.c.bf16 %v1824_v39, %v1823_v38  ;;  %v2347_v58 = vpack.c.bf16 %v1798_v4, %v1797_v0  ;;  %v2592_v12 = vpop.f32.mrb[20].mxu0 }
 0x2c5   :  { %v2407_v9 = vpack.c.bf16 %v1822_v5, %v1821_v1  ;;  %v2616_v62 = vpop.f32.mrb[20].mxu1  ;;  %2432 = vst [vmem:[%s3249_s6 + $0x48] sm:$0xff] %v2352_v26   ;;  %v1679_v13 = vadd.f32 %v2592_v12, %v3121_v18  ;;  %v1670_v17 = vpop.f32.mrb[21].mxu0 }
 0x2c6   :  { %2444 = vst [vmem:[%s3249_s6 + $0xa8] sm:$0xff] %v2412_v8   ;;  %v1775_v16 = vadd.f32 %v2616_v62, %v3121_v18  ;;  %v1766_v20 = vpop.f32.mrb[21].mxu1  ;;  %2431 = vst [vmem:[%s3249_s6 + $0x40] sm:$0xff] %v2347_v58   ;;  %v1671_v50 = vadd.f32 %v3121_v18, %v1670_v17  ;;  %v2593_v21 = vpop.f32.mrb[22].mxu0 }
 0x2c7   :  { %2443 = vst [vmem:[%s3249_s6 + $0xa0] sm:$0xff] %v2407_v9   ;;  %v1767_v22 = vadd.f32 %v3121_v18, %v1766_v20  ;;  %v2617_v59 = vpop.f32.mrb[22].mxu1  ;;  %v1682_v51 = vadd.f32 %v2593_v21, %v3121_v18  ;;  %v1673_v25 = vpop.f32.mrb[23].mxu0  ;;  %v1803_v29 = vmax.f32 %v1679_v13, 0.0 }
 0x2c8   :  { %v1778_v23 = vadd.f32 %v2617_v59, %v3121_v18  ;;  %v1769_v63 = vpop.f32.mrb[23].mxu1  ;;  %v1674_v27 = vadd.f32 %v3121_v18, %v1673_v25  ;;  %v1827_v55 = vmax.f32 %v1775_v16, 0.0  ;;  %v1801_v30 = vmax.f32 %v1671_v50, 0.0 }
 0x2c9   :  { %v1770_v28 = vadd.f32 %v3121_v18, %v1769_v63  ;;  %v1804_v54 = vmax.f32 %v1682_v51, 0.0  ;;  %v1825_v2 = vmax.f32 %v1767_v22, 0.0 }
 0x2ca   :  { %v1828_v10 = vmax.f32 %v1778_v23, 0.0  ;;  %v1802_v31 = vmax.f32 %v1674_v27, 0.0 }
 0x2cb   :  { %v1826_v32 = vmax.f32 %v1770_v28, 0.0  ;;  %v2362_v14 = vpack.c.bf16 %v1804_v54, %v1803_v29 }
 0x2cc   :  { %v2422_v33 = vpack.c.bf16 %v1828_v10, %v1827_v55  ;;  %v2357_v36 = vpack.c.bf16 %v1802_v31, %v1801_v30 }
 0x2cd   :  { %v2417_v37 = vpack.c.bf16 %v1826_v32, %v1825_v2  ;;  %2434 = vst [vmem:[%s3249_s6 + $0x58] sm:$0xff] %v2362_v14  }
 0x2ce   :  { %2446 = vst [vmem:[%s3249_s6 + $0xb8] sm:$0xff] %v2422_v33   ;;  %2433 = vst [vmem:[%s3249_s6 + $0x50] sm:$0xff] %v2357_v36  }
 0x2cf   :  { %2445 = vst [vmem:[%s3249_s6 + $0xb0] sm:$0xff] %v2417_v37  }
 0x2d0   :  { %2073 = vsyncpa [#allocation7], 1 }

</bundles_post_ra>
